<compile_context>
chip_gen: v7x
topology: tpu7x:2x2x1
jax: 0.10.0
libtpu: 0.0.40
codegen_flags: <defaults>
</compile_context>

<pallas_src>
import math

import jax
import jax.numpy as jnp
from jax.experimental import pallas as pl
from jax.experimental.pallas import tpu as pltpu

# ----------------------------------------------------------------------------
# Static geometry (input 3x32x32, as implied by fc1 = Linear(16*6*6, 120)).
# ----------------------------------------------------------------------------
H = W = 32
C_IN = 3
K1, C1, C1P = 5, 10, 16          # conv1: 3 -> 10 (out channels padded to 16), 5x5
K2, C2 = 3, 16                   # conv2: 10 -> 16, 3x3
N_FC1, N_FC2, N_FC3 = 120, 84, 3
OUT_PAD = 128                    # pad the 3 logits to 128 lanes (lane-dense store)

PATCH = K1 * K1 * C_IN           # 75 = conv1 im2col patch length
POOL_GRID = 14                   # compact grid width after pool1 (28/2)
GROUP = 208                      # rows per pool-offset group: 196 valid (14*14) + 12 pad
                                 #   pad keeps conv2 tap slices (last row 197) in bounds;
                                 #   padded rows hold relu(b1) and only feed unused a2 rows.
L_A2 = 168                       # conv2 rows computed; valid rows y2*14+x2 <= 165
L_P2 = 152                       # dilated pool2 rows computed; gathered rows <= 150

# conv2 taps on the compact 14-wide grid, and the final 6x6 feature gather
# (pool2 output for (yo, xo) lives at row 2*(yo*14 + xo) of the dilated map).
SHIFTS2 = tuple(i * POOL_GRID + j for i in range(K2) for j in range(K2))
SEL = tuple(2 * (yo * POOL_GRID + xo) for yo in range(6) for xo in range(6))


def _tree_sum(terms):
    """Pairwise (tree) reduction -> shorter MXU-pop -> VPU-add dependence chain."""
    while len(terms) > 1:
        nxt = [terms[i] + terms[i + 1] for i in range(0, len(terms) - 1, 2)]
        if len(terms) % 2:
            nxt.append(terms[-1])
        terms = nxt
    return terms[0]


# ----------------------------------------------------------------------------
# Kernel: whole Net forward for one image, fully fused in VMEM / vregs.
# ----------------------------------------------------------------------------
def _net_kernel(xcol_ref, w1_ref, b1_ref, w2_ref, b2_ref,
                wf1_ref, bf1_ref, wf2_ref, bf2_ref, wf3_ref, bf3_ref,
                o_ref, p1c_ref, a2_ref, p2_ref):
    # ---- conv1 (5x5) + ReLU + 2x2/2 max-pool, fused ------------------------
    # xcol rows are grouped by pool offset (dy,dx): group k holds the 14x14
    # patch grid for output positions (2*y1+dy, 2*x1+dx).  One bf16 MXU dot
    # per group; the pool is then just an elementwise max of the 4 results.
    w1 = w1_ref[...]                                            # (75, 16) bf16
    raw = [jnp.dot(xcol_ref[GROUP * k:GROUP * (k + 1), :], w1,
                   preferred_element_type=jnp.float32)          # (208, 16) f32
           for k in range(4)]
    m = jnp.maximum(jnp.maximum(raw[0], raw[1]), jnp.maximum(raw[2], raw[3]))
    # relu(conv + b) then max == relu(max(conv) + b): fold bias/ReLU once.
    p1c_ref[...] = jnp.maximum(m + b1_ref[...], 0.0)            # compact 14x14 map

    # ---- conv2 (3x3) + ReLU on the compact 14x14 grid ----------------------
    terms = [jnp.dot(p1c_ref[s:s + L_A2, :], w2_ref[C1P * t:C1P * (t + 1), :],
                     preferred_element_type=jnp.float32)        # (168, 16)
             for t, s in enumerate(SHIFTS2)]
    a2_ref[...] = jnp.maximum(_tree_sum(terms) + b2_ref[...], 0.0)

    # ---- 2x2/2 max-pool (output kept dilated on the 14-wide grid) ----------
    p2_ref[...] = jnp.maximum(
        jnp.maximum(a2_ref[0:L_P2, :], a2_ref[1:1 + L_P2, :]),
        jnp.maximum(a2_ref[POOL_GRID:POOL_GRID + L_P2, :],
                    a2_ref[POOL_GRID + 1:POOL_GRID + 1 + L_P2, :]))

    # TODO(synk): AdaptiveAvgPool2d((6,6)) is the identity for 32x32 inputs and
    # is dropped here; other input resolutions would need an averaging step.

    # ---- Flatten(16x6x6) + fc1 fused: 36 gathered M=1 dots, tree-summed ----
    h_terms = [jnp.dot(p2_ref[r:r + 1, :], wf1_ref[C2 * q:C2 * (q + 1), :],
                       preferred_element_type=jnp.float32)      # (1, 120)
               for q, r in enumerate(SEL)]
    h = jnp.maximum(_tree_sum(h_terms) + bf1_ref[...], 0.0)

    # ---- fc2 + ReLU, fc3 (logits padded to 128 lanes -> lane-dense store) --
    h = jnp.maximum(
        jnp.dot(h, wf2_ref[...], preferred_element_type=jnp.float32) + bf2_ref[...],
        0.0)                                                    # (1, 84)
    o_ref[...] = (jnp.dot(h, wf3_ref[...], preferred_element_type=jnp.float32)
                  + bf3_ref[...])                               # (1, 128)


# ----------------------------------------------------------------------------
# Host-side glue
# ----------------------------------------------------------------------------
def _conv1_im2col(x):
    """NCHW (n,3,32,32) -> (n, 4*GROUP, 75) bf16 conv1 patches.

    Rows are grouped by 2x2-pool offset: group k = dy*2+dx holds the 14x14
    grid of patches centered at (2*y1+dy, 2*x1+dx), row within group is
    q = y1*14 + x1.  Patch feature order is (ky, kx, in_channel) to match the
    conv1 weight layout.  Each group is zero-padded 196 -> 208 rows.
    """
    n = x.shape[0]
    xh = x.transpose(0, 2, 3, 1)                                  # NHWC
    cols = [xh[:, i:i + 28, j:j + 28, :] for i in range(K1) for j in range(K1)]
    patches = jnp.concatenate(cols, axis=-1)                      # (n,28,28,75)
    p = patches.reshape(n, 14, 2, 14, 2, PATCH)                   # (n,y1,dy,x1,dx,f)
    p = p.transpose(0, 2, 4, 1, 3, 5)                             # (n,dy,dx,y1,x1,f)
    p = p.reshape(n, 4, 196, PATCH)
    p = jnp.pad(p, ((0, 0), (0, 0), (0, GROUP - 196), (0, 0)))
    return p.reshape(n, 4 * GROUP, PATCH).astype(jnp.bfloat16)


def net_forward(prepped, x):
    """Fused forward: x is (N, 3, 32, 32) NCHW float32, returns (N, 3) logits."""
    n = x.shape[0]
    xcol = _conv1_im2col(x)

    out = pl.pallas_call(
        _net_kernel,
        out_shape=jax.ShapeDtypeStruct((n, 1, OUT_PAD), jnp.float32),
        grid=(n,),
        in_specs=[
            pl.BlockSpec((None, 4 * GROUP, PATCH), lambda i: (i, 0, 0)),  # im2col input
            pl.BlockSpec((PATCH, C1P), lambda i: (0, 0)),                 # conv1 weights
            pl.BlockSpec((1, C1P), lambda i: (0, 0)),                     # conv1 bias
            pl.BlockSpec((K2 * K2 * C1P, C2), lambda i: (0, 0)),          # conv2 weights
            pl.BlockSpec((1, C2), lambda i: (0, 0)),                      # conv2 bias
            pl.BlockSpec((36 * C2, N_FC1), lambda i: (0, 0)),             # fc1 weights (permuted)
            pl.BlockSpec((1, N_FC1), lambda i: (0, 0)),                   # fc1 bias
            pl.BlockSpec((N_FC1, N_FC2), lambda i: (0, 0)),               # fc2 weights
            pl.BlockSpec((1, N_FC2), lambda i: (0, 0)),                   # fc2 bias
            pl.BlockSpec((N_FC2, OUT_PAD), lambda i: (0, 0)),             # fc3 weights (lane-padded)
            pl.BlockSpec((1, OUT_PAD), lambda i: (0, 0)),                 # fc3 bias (lane-padded)
        ],
        out_specs=pl.BlockSpec((None, 1, OUT_PAD), lambda i: (i, 0, 0)),
        scratch_shapes=[
            pltpu.VMEM((GROUP, C1P), jnp.float32),    # compact pooled conv1 map
            pltpu.VMEM((L_A2, C2), jnp.float32),      # conv2 activation
            pltpu.VMEM((L_P2, C2), jnp.float32),      # pool2 output (dilated)
        ],
        compiler_params=pltpu.CompilerParams(
            dimension_semantics=("parallel",),
        ),
    )(xcol, prepped["w1"], prepped["b1"], prepped["w2"], prepped["b2"],
      prepped["wf1"], prepped["bf1"], prepped["wf2"], prepped["bf2"],
      prepped["wf3"], prepped["bf3"])
    return out[:, 0, :N_FC3]


def prepare_params(p):
    """One-time re-layout / padding of the PyTorch-style parameters."""
    # conv1: (10,3,5,5) -> (ky*kx*Cin, 16) rows ordered (tap, in_ch); out
    # channels zero-padded 10 -> 16; stored bf16 (MXU operand).
    w1 = jnp.zeros((C1P, C_IN, K1, K1), jnp.float32).at[:C1].set(p["conv1_w"])
    w1 = w1.transpose(2, 3, 1, 0).reshape(PATCH, C1P).astype(jnp.bfloat16)
    b1 = jnp.zeros((1, C1P), jnp.float32).at[0, :C1].set(p["conv1_b"])

    # conv2: (16,10,3,3) -> (tap*16, 16) rows ordered (tap, in_ch); *input*
    # channels zero-padded 10 -> 16 to match conv1's padded output.
    w2 = jnp.zeros((C2, C1P, K2, K2), jnp.float32).at[:, :C1].set(p["conv2_w"])
    w2 = w2.transpose(2, 3, 1, 0).reshape(K2 * K2 * C1P, C2)
    b2 = p["conv2_b"].reshape(1, C2)

    # fc1: PyTorch flattens (16,6,6) -> feature c*36 + q (q = yo*6+xo); the
    # kernel gathers features ordered (q, c), so permute the weight once.
    wf1 = p["fc1_w"].reshape(N_FC1, C2, 36).transpose(2, 1, 0).reshape(36 * C2, N_FC1)
    bf1 = p["fc1_b"].reshape(1, N_FC1)
    wf2 = p["fc2_w"].T
    bf2 = p["fc2_b"].reshape(1, N_FC2)

    # fc3: pad the 3 logits out to 128 lanes for an unmasked lane-dense store.
    wf3 = jnp.zeros((N_FC2, OUT_PAD), jnp.float32).at[:, :N_FC3].set(p["fc3_w"].T)
    bf3 = jnp.zeros((1, OUT_PAD), jnp.float32).at[0, :N_FC3].set(p["fc3_b"])

    return dict(w1=w1, b1=b1, w2=w2, b2=b2, wf1=wf1, bf1=bf1,
                wf2=wf2, bf2=bf2, wf3=wf3, bf3=bf3)


def init_params(key):
    def uniform(k, shape, fan_in):
        bound = 1.0 / math.sqrt(fan_in)
        return jax.random.uniform(k, shape, jnp.float32, -bound, bound)

    keys = jax.random.split(key, 10)
    return {
        "conv1_w": uniform(keys[0], (10, 3, 5, 5), 3 * 5 * 5),
        "conv1_b": uniform(keys[1], (10,), 3 * 5 * 5),
        "conv2_w": uniform(keys[2], (16, 10, 3, 3), 10 * 3 * 3),
        "conv2_b": uniform(keys[3], (16,), 10 * 3 * 3),
        "fc1_w": uniform(keys[4], (120, 16 * 6 * 6), 16 * 6 * 6),
        "fc1_b": uniform(keys[5], (120,), 16 * 6 * 6),
        "fc2_w": uniform(keys[6], (84, 120), 120),
        "fc2_b": uniform(keys[7], (84,), 120),
        "fc3_w": uniform(keys[8], (3, 84), 84),
        "fc3_b": uniform(keys[9], (3,), 84),
    }


def reference_forward(p, x):
    """Pure-JAX/XLA reference with PyTorch semantics (f32 throughout)."""
    dn = ("NCHW", "OIHW", "NCHW")
    y = jax.lax.conv_general_dilated(x, p["conv1_w"], (1, 1), "VALID",
                                     dimension_numbers=dn)
    y = jax.nn.relu(y + p["conv1_b"][None, :, None, None])
    n, c, h, w = y.shape
    y = y.reshape(n, c, h // 2, 2, w // 2, 2).max(axis=(3, 5))
    y = jax.lax.conv_general_dilated(y, p["conv2_w"], (1, 1), "VALID",
                                     dimension_numbers=dn)
    y = jax.nn.relu(y + p["conv2_b"][None, :, None, None])
    n, c, h, w = y.shape
    y = y.reshape(n, c, h // 2, 2, w // 2, 2).max(axis=(3, 5))
    # AdaptiveAvgPool2d((6,6)) on the resulting 6x6 map is the identity.
    f = y.reshape(n, -1)
    h1 = jax.nn.relu(f @ p["fc1_w"].T + p["fc1_b"])
    h2 = jax.nn.relu(h1 @ p["fc2_w"].T + p["fc2_b"])
    return h2 @ p["fc3_w"].T + p["fc3_b"]


if __name__ == "__main__":
    key = jax.random.PRNGKey(0)
    pkey, xkey = jax.random.split(key)
    params = init_params(pkey)
    prepped = prepare_params(params)              # one-time weight re-layout
    x = jax.random.normal(xkey, (2, 3, 32, 32), jnp.float32)

    out = jax.jit(net_forward)(prepped, x)
    out = jax.block_until_ready(out)
    assert out.shape == (2, 3), out.shape
    assert out.dtype == jnp.float32

    # Numerical lock-in against the XLA reference (conv1 operands are bf16 in
    # the kernel -> small, bounded deviation from the f32 reference).
    ref = reference_forward(params, x)
    err = float(jnp.max(jnp.abs(out - ref)))
    assert err < 5e-2, f"max |kernel - reference| = {err}"
    print("KERNEL_OK")
</pallas_src>

<mosaic_0001>
module attributes {stable_mosaic.version = 11 : i64} {
  func.func @_net_kernel(%arg0: i32, %arg1: memref<1x832x75xbf16, #tpu.memory_space<vmem>>, %arg2: memref<75x16xbf16, #tpu.memory_space<vmem>>, %arg3: memref<1x16xf32, #tpu.memory_space<vmem>>, %arg4: memref<144x16xf32, #tpu.memory_space<vmem>>, %arg5: memref<1x16xf32, #tpu.memory_space<vmem>>, %arg6: memref<576x120xf32, #tpu.memory_space<vmem>>, %arg7: memref<1x120xf32, #tpu.memory_space<vmem>>, %arg8: memref<120x84xf32, #tpu.memory_space<vmem>>, %arg9: memref<1x84xf32, #tpu.memory_space<vmem>>, %arg10: memref<84x128xf32, #tpu.memory_space<vmem>>, %arg11: memref<1x128xf32, #tpu.memory_space<vmem>>, %arg12: memref<1x1x128xf32, #tpu.memory_space<vmem>>, %arg13: memref<208x16xf32, #tpu.memory_space<vmem>>, %arg14: memref<168x16xf32, #tpu.memory_space<vmem>>, %arg15: memref<152x16xf32, #tpu.memory_space<vmem>>) attributes {dimension_semantics = [#tpu.dimension_semantics<parallel>], iteration_bounds = array<i64: 2>, scalar_prefetch = 0 : i64, scratch_operands = 3 : i64, tpu.core_type = #tpu.core_type<tc>, window_params = [{transform_indices = @transform_0, window_bounds = array<i64: 1, 832, 75>}, {pipeline_mode = #tpu.pipeline_mode<synchronous>, transform_indices = @transform_1, window_bounds = array<i64: 75, 16>}, {pipeline_mode = #tpu.pipeline_mode<synchronous>, transform_indices = @transform_2, window_bounds = array<i64: 1, 16>}, {pipeline_mode = #tpu.pipeline_mode<synchronous>, transform_indices = @transform_3, window_bounds = array<i64: 144, 16>}, {pipeline_mode = #tpu.pipeline_mode<synchronous>, transform_indices = @transform_4, window_bounds = array<i64: 1, 16>}, {pipeline_mode = #tpu.pipeline_mode<synchronous>, transform_indices = @transform_5, window_bounds = array<i64: 576, 120>}, {pipeline_mode = #tpu.pipeline_mode<synchronous>, transform_indices = @transform_6, window_bounds = array<i64: 1, 120>}, {pipeline_mode = #tpu.pipeline_mode<synchronous>, transform_indices = @transform_7, window_bounds = array<i64: 120, 84>}, {pipeline_mode = #tpu.pipeline_mode<synchronous>, transform_indices = @transform_8, window_bounds = array<i64: 1, 84>}, {pipeline_mode = #tpu.pipeline_mode<synchronous>, transform_indices = @transform_9, window_bounds = array<i64: 84, 128>}, {pipeline_mode = #tpu.pipeline_mode<synchronous>, transform_indices = @transform_10, window_bounds = array<i64: 1, 128>}, {transform_indices = @transform_11, window_bounds = array<i64: 1, 1, 128>}]} {
    %c0 = arith.constant 0 : index
    %c0_0 = arith.constant 0 : index
    %0 = vector.load %arg2[%c0, %c0_0] : memref<75x16xbf16, #tpu.memory_space<vmem>>, vector<75x16xbf16>
    %c0_1 = arith.constant 0 : index
    %c0_2 = arith.constant 0 : index
    %c0_3 = arith.constant 0 : index
    %1 = vector.load %arg1[%c0_1, %c0_2, %c0_3] : memref<1x832x75xbf16, #tpu.memory_space<vmem>>, vector<1x208x75xbf16>
    %2 = vector.shape_cast %1 : vector<1x208x75xbf16> to vector<208x75xbf16>
    %cst = arith.constant dense<0.000000e+00> : vector<208x16xf32>
    %3 = tpu.matmul %2, %0, %cst {dimension_numbers = #tpu.dot_dimension_numbers<[1], [0], [0], [1], [0, 0, 1, 1], [], []>} : vector<208x75xbf16>, vector<75x16xbf16>, vector<208x16xf32> -> vector<208x16xf32>
    %c0_4 = arith.constant 0 : index
    %c208 = arith.constant 208 : index
    %c0_5 = arith.constant 0 : index
    %4 = vector.load %arg1[%c0_4, %c208, %c0_5] : memref<1x832x75xbf16, #tpu.memory_space<vmem>>, vector<1x208x75xbf16>
    %5 = vector.shape_cast %4 : vector<1x208x75xbf16> to vector<208x75xbf16>
    %cst_6 = arith.constant dense<0.000000e+00> : vector<208x16xf32>
    %6 = tpu.matmul %5, %0, %cst_6 {dimension_numbers = #tpu.dot_dimension_numbers<[1], [0], [0], [1], [0, 0, 1, 1], [], []>} : vector<208x75xbf16>, vector<75x16xbf16>, vector<208x16xf32> -> vector<208x16xf32>
    %c0_7 = arith.constant 0 : index
    %c416 = arith.constant 416 : index
    %c0_8 = arith.constant 0 : index
    %7 = vector.load %arg1[%c0_7, %c416, %c0_8] : memref<1x832x75xbf16, #tpu.memory_space<vmem>>, vector<1x208x75xbf16>
    %8 = vector.shape_cast %7 : vector<1x208x75xbf16> to vector<208x75xbf16>
    %cst_9 = arith.constant dense<0.000000e+00> : vector<208x16xf32>
    %9 = tpu.matmul %8, %0, %cst_9 {dimension_numbers = #tpu.dot_dimension_numbers<[1], [0], [0], [1], [0, 0, 1, 1], [], []>} : vector<208x75xbf16>, vector<75x16xbf16>, vector<208x16xf32> -> vector<208x16xf32>
    %c0_10 = arith.constant 0 : index
    %c624 = arith.constant 624 : index
    %c0_11 = arith.constant 0 : index
    %10 = vector.load %arg1[%c0_10, %c624, %c0_11] : memref<1x832x75xbf16, #tpu.memory_space<vmem>>, vector<1x208x75xbf16>
    %11 = vector.shape_cast %10 : vector<1x208x75xbf16> to vector<208x75xbf16>
    %cst_12 = arith.constant dense<0.000000e+00> : vector<208x16xf32>
    %12 = tpu.matmul %11, %0, %cst_12 {dimension_numbers = #tpu.dot_dimension_numbers<[1], [0], [0], [1], [0, 0, 1, 1], [], []>} : vector<208x75xbf16>, vector<75x16xbf16>, vector<208x16xf32> -> vector<208x16xf32>
    %13 = arith.maximumf %3, %6 : vector<208x16xf32>
    %14 = arith.maximumf %9, %12 : vector<208x16xf32>
    %15 = arith.maximumf %13, %14 : vector<208x16xf32>
    %c0_13 = arith.constant 0 : index
    %c0_14 = arith.constant 0 : index
    %16 = vector.load %arg3[%c0_13, %c0_14] : memref<1x16xf32, #tpu.memory_space<vmem>>, vector<1x16xf32>
    %17 = vector.broadcast %16 : vector<1x16xf32> to vector<208x16xf32>
    %18 = arith.addf %15, %17 : vector<208x16xf32>
    %cst_15 = arith.constant 0.000000e+00 : f32
    %19 = vector.broadcast %cst_15 : f32 to vector<208x16xf32>
    %20 = arith.maximumf %18, %19 : vector<208x16xf32>
    %c0_16 = arith.constant 0 : index
    %c0_17 = arith.constant 0 : index
    %21 = vector.load %arg13[%c0_16, %c0_17] : memref<208x16xf32, #tpu.memory_space<vmem>>, vector<208x16xf32>
    tpu.vector_store %arg13[%c0_16, %c0_17], %20 {strides = array<i32>} : memref<208x16xf32, #tpu.memory_space<vmem>>, vector<208x16xf32>,
    %c0_18 = arith.constant 0 : index
    %c0_19 = arith.constant 0 : index
    %22 = vector.load %arg13[%c0_18, %c0_19] : memref<208x16xf32, #tpu.memory_space<vmem>>, vector<168x16xf32>
    %c0_20 = arith.constant 0 : index
    %c0_21 = arith.constant 0 : index
    %23 = vector.load %arg4[%c0_20, %c0_21] : memref<144x16xf32, #tpu.memory_space<vmem>>, vector<16x16xf32>
    %cst_22 = arith.constant dense<0.000000e+00> : vector<168x16xf32>
    %24 = tpu.matmul %22, %23, %cst_22 {dimension_numbers = #tpu.dot_dimension_numbers<[1], [0], [0], [1], [0, 0, 1, 1], [], []>} : vector<168x16xf32>, vector<16x16xf32>, vector<168x16xf32> -> vector<168x16xf32>
    %c1 = arith.constant 1 : index
    %c0_23 = arith.constant 0 : index
    %25 = vector.load %arg13[%c1, %c0_23] : memref<208x16xf32, #tpu.memory_space<vmem>>, vector<168x16xf32>
    %c16 = arith.constant 16 : index
    %c0_24 = arith.constant 0 : index
    %26 = vector.load %arg4[%c16, %c0_24] : memref<144x16xf32, #tpu.memory_space<vmem>>, vector<16x16xf32>
    %cst_25 = arith.constant dense<0.000000e+00> : vector<168x16xf32>
    %27 = tpu.matmul %25, %26, %cst_25 {dimension_numbers = #tpu.dot_dimension_numbers<[1], [0], [0], [1], [0, 0, 1, 1], [], []>} : vector<168x16xf32>, vector<16x16xf32>, vector<168x16xf32> -> vector<168x16xf32>
    %c2 = arith.constant 2 : index
    %c0_26 = arith.constant 0 : index
    %28 = vector.load %arg13[%c2, %c0_26] : memref<208x16xf32, #tpu.memory_space<vmem>>, vector<168x16xf32>
    %c32 = arith.constant 32 : index
    %c0_27 = arith.constant 0 : index
    %29 = vector.load %arg4[%c32, %c0_27] : memref<144x16xf32, #tpu.memory_space<vmem>>, vector<16x16xf32>
    %cst_28 = arith.constant dense<0.000000e+00> : vector<168x16xf32>
    %30 = tpu.matmul %28, %29, %cst_28 {dimension_numbers = #tpu.dot_dimension_numbers<[1], [0], [0], [1], [0, 0, 1, 1], [], []>} : vector<168x16xf32>, vector<16x16xf32>, vector<168x16xf32> -> vector<168x16xf32>
    %c14 = arith.constant 14 : index
    %c0_29 = arith.constant 0 : index
    %31 = vector.load %arg13[%c14, %c0_29] : memref<208x16xf32, #tpu.memory_space<vmem>>, vector<168x16xf32>
    %c48 = arith.constant 48 : index
    %c0_30 = arith.constant 0 : index
    %32 = vector.load %arg4[%c48, %c0_30] : memref<144x16xf32, #tpu.memory_space<vmem>>, vector<16x16xf32>
    %cst_31 = arith.constant dense<0.000000e+00> : vector<168x16xf32>
    %33 = tpu.matmul %31, %32, %cst_31 {dimension_numbers = #tpu.dot_dimension_numbers<[1], [0], [0], [1], [0, 0, 1, 1], [], []>} : vector<168x16xf32>, vector<16x16xf32>, vector<168x16xf32> -> vector<168x16xf32>
    %c15 = arith.constant 15 : index
    %c0_32 = arith.constant 0 : index
    %34 = vector.load %arg13[%c15, %c0_32] : memref<208x16xf32, #tpu.memory_space<vmem>>, vector<168x16xf32>
    %c64 = arith.constant 64 : index
    %c0_33 = arith.constant 0 : index
    %35 = vector.load %arg4[%c64, %c0_33] : memref<144x16xf32, #tpu.memory_space<vmem>>, vector<16x16xf32>
    %cst_34 = arith.constant dense<0.000000e+00> : vector<168x16xf32>
    %36 = tpu.matmul %34, %35, %cst_34 {dimension_numbers = #tpu.dot_dimension_numbers<[1], [0], [0], [1], [0, 0, 1, 1], [], []>} : vector<168x16xf32>, vector<16x16xf32>, vector<168x16xf32> -> vector<168x16xf32>
    %c16_35 = arith.constant 16 : index
    %c0_36 = arith.constant 0 : index
    %37 = vector.load %arg13[%c16_35, %c0_36] : memref<208x16xf32, #tpu.memory_space<vmem>>, vector<168x16xf32>
    %c80 = arith.constant 80 : index
    %c0_37 = arith.constant 0 : index
    %38 = vector.load %arg4[%c80, %c0_37] : memref<144x16xf32, #tpu.memory_space<vmem>>, vector<16x16xf32>
    %cst_38 = arith.constant dense<0.000000e+00> : vector<168x16xf32>
    %39 = tpu.matmul %37, %38, %cst_38 {dimension_numbers = #tpu.dot_dimension_numbers<[1], [0], [0], [1], [0, 0, 1, 1], [], []>} : vector<168x16xf32>, vector<16x16xf32>, vector<168x16xf32> -> vector<168x16xf32>
    %c28 = arith.constant 28 : index
    %c0_39 = arith.constant 0 : index
    %40 = vector.load %arg13[%c28, %c0_39] : memref<208x16xf32, #tpu.memory_space<vmem>>, vector<168x16xf32>
    %c96 = arith.constant 96 : index
    %c0_40 = arith.constant 0 : index
    %41 = vector.load %arg4[%c96, %c0_40] : memref<144x16xf32, #tpu.memory_space<vmem>>, vector<16x16xf32>
    %cst_41 = arith.constant dense<0.000000e+00> : vector<168x16xf32>
    %42 = tpu.matmul %40, %41, %cst_41 {dimension_numbers = #tpu.dot_dimension_numbers<[1], [0], [0], [1], [0, 0, 1, 1], [], []>} : vector<168x16xf32>, vector<16x16xf32>, vector<168x16xf32> -> vector<168x16xf32>
    %c29 = arith.constant 29 : index
    %c0_42 = arith.constant 0 : index
    %43 = vector.load %arg13[%c29, %c0_42] : memref<208x16xf32, #tpu.memory_space<vmem>>, vector<168x16xf32>
    %c112 = arith.constant 112 : index
    %c0_43 = arith.constant 0 : index
    %44 = vector.load %arg4[%c112, %c0_43] : memref<144x16xf32, #tpu.memory_space<vmem>>, vector<16x16xf32>
    %cst_44 = arith.constant dense<0.000000e+00> : vector<168x16xf32>
    %45 = tpu.matmul %43, %44, %cst_44 {dimension_numbers = #tpu.dot_dimension_numbers<[1], [0], [0], [1], [0, 0, 1, 1], [], []>} : vector<168x16xf32>, vector<16x16xf32>, vector<168x16xf32> -> vector<168x16xf32>
    %c30 = arith.constant 30 : index
    %c0_45 = arith.constant 0 : index
    %46 = vector.load %arg13[%c30, %c0_45] : memref<208x16xf32, #tpu.memory_space<vmem>>, vector<168x16xf32>
    %c128 = arith.constant 128 : index
    %c0_46 = arith.constant 0 : index
    %47 = vector.load %arg4[%c128, %c0_46] : memref<144x16xf32, #tpu.memory_space<vmem>>, vector<16x16xf32>
    %cst_47 = arith.constant dense<0.000000e+00> : vector<168x16xf32>
    %48 = tpu.matmul %46, %47, %cst_47 {dimension_numbers = #tpu.dot_dimension_numbers<[1], [0], [0], [1], [0, 0, 1, 1], [], []>} : vector<168x16xf32>, vector<16x16xf32>, vector<168x16xf32> -> vector<168x16xf32>
    %49 = arith.addf %24, %27 : vector<168x16xf32>
    %50 = arith.addf %30, %33 : vector<168x16xf32>
    %51 = arith.addf %36, %39 : vector<168x16xf32>
    %52 = arith.addf %42, %45 : vector<168x16xf32>
    %53 = arith.addf %49, %50 : vector<168x16xf32>
    %54 = arith.addf %51, %52 : vector<168x16xf32>
    %55 = arith.addf %53, %54 : vector<168x16xf32>
    %56 = arith.addf %55, %48 : vector<168x16xf32>
    %c0_48 = arith.constant 0 : index
    %c0_49 = arith.constant 0 : index
    %57 = vector.load %arg5[%c0_48, %c0_49] : memref<1x16xf32, #tpu.memory_space<vmem>>, vector<1x16xf32>
    %58 = vector.broadcast %57 : vector<1x16xf32> to vector<168x16xf32>
    %59 = arith.addf %56, %58 : vector<168x16xf32>
    %cst_50 = arith.constant 0.000000e+00 : f32
    %60 = vector.broadcast %cst_50 : f32 to vector<168x16xf32>
    %61 = arith.maximumf %59, %60 : vector<168x16xf32>
    %c0_51 = arith.constant 0 : index
    %c0_52 = arith.constant 0 : index
    %62 = vector.load %arg14[%c0_51, %c0_52] : memref<168x16xf32, #tpu.memory_space<vmem>>, vector<168x16xf32>
    tpu.vector_store %arg14[%c0_51, %c0_52], %61 {strides = array<i32>} : memref<168x16xf32, #tpu.memory_space<vmem>>, vector<168x16xf32>,
    %c0_53 = arith.constant 0 : index
    %c0_54 = arith.constant 0 : index
    %63 = vector.load %arg14[%c0_53, %c0_54] : memref<168x16xf32, #tpu.memory_space<vmem>>, vector<152x16xf32>
    %c1_55 = arith.constant 1 : index
    %c0_56 = arith.constant 0 : index
    %64 = vector.load %arg14[%c1_55, %c0_56] : memref<168x16xf32, #tpu.memory_space<vmem>>, vector<152x16xf32>
    %65 = arith.maximumf %63, %64 : vector<152x16xf32>
    %c14_57 = arith.constant 14 : index
    %c0_58 = arith.constant 0 : index
    %66 = vector.load %arg14[%c14_57, %c0_58] : memref<168x16xf32, #tpu.memory_space<vmem>>, vector<152x16xf32>
    %c15_59 = arith.constant 15 : index
    %c0_60 = arith.constant 0 : index
    %67 = vector.load %arg14[%c15_59, %c0_60] : memref<168x16xf32, #tpu.memory_space<vmem>>, vector<152x16xf32>
    %68 = arith.maximumf %66, %67 : vector<152x16xf32>
    %69 = arith.maximumf %65, %68 : vector<152x16xf32>
    %c0_61 = arith.constant 0 : index
    %c0_62 = arith.constant 0 : index
    %70 = vector.load %arg15[%c0_61, %c0_62] : memref<152x16xf32, #tpu.memory_space<vmem>>, vector<152x16xf32>
    tpu.vector_store %arg15[%c0_61, %c0_62], %69 {strides = array<i32>} : memref<152x16xf32, #tpu.memory_space<vmem>>, vector<152x16xf32>,
    %c0_63 = arith.constant 0 : index
    %c0_64 = arith.constant 0 : index
    %71 = vector.load %arg15[%c0_63, %c0_64] : memref<152x16xf32, #tpu.memory_space<vmem>>, vector<1x16xf32>
    %c0_65 = arith.constant 0 : index
    %c0_66 = arith.constant 0 : index
    %72 = vector.load %arg6[%c0_65, %c0_66] : memref<576x120xf32, #tpu.memory_space<vmem>>, vector<16x120xf32>
    %cst_67 = arith.constant dense<0.000000e+00> : vector<1x120xf32>
    %73 = tpu.matmul %71, %72, %cst_67 {dimension_numbers = #tpu.dot_dimension_numbers<[1], [0], [0], [1], [0, 0, 1, 1], [], []>} : vector<1x16xf32>, vector<16x120xf32>, vector<1x120xf32> -> vector<1x120xf32>
    %c2_68 = arith.constant 2 : index
    %c0_69 = arith.constant 0 : index
    %74 = vector.load %arg15[%c2_68, %c0_69] : memref<152x16xf32, #tpu.memory_space<vmem>>, vector<1x16xf32>
    %c16_70 = arith.constant 16 : index
    %c0_71 = arith.constant 0 : index
    %75 = vector.load %arg6[%c16_70, %c0_71] : memref<576x120xf32, #tpu.memory_space<vmem>>, vector<16x120xf32>
    %cst_72 = arith.constant dense<0.000000e+00> : vector<1x120xf32>
    %76 = tpu.matmul %74, %75, %cst_72 {dimension_numbers = #tpu.dot_dimension_numbers<[1], [0], [0], [1], [0, 0, 1, 1], [], []>} : vector<1x16xf32>, vector<16x120xf32>, vector<1x120xf32> -> vector<1x120xf32>
    %c4 = arith.constant 4 : index
    %c0_73 = arith.constant 0 : index
    %77 = vector.load %arg15[%c4, %c0_73] : memref<152x16xf32, #tpu.memory_space<vmem>>, vector<1x16xf32>
    %c32_74 = arith.constant 32 : index
    %c0_75 = arith.constant 0 : index
    %78 = vector.load %arg6[%c32_74, %c0_75] : memref<576x120xf32, #tpu.memory_space<vmem>>, vector<16x120xf32>
    %cst_76 = arith.constant dense<0.000000e+00> : vector<1x120xf32>
    %79 = tpu.matmul %77, %78, %cst_76 {dimension_numbers = #tpu.dot_dimension_numbers<[1], [0], [0], [1], [0, 0, 1, 1], [], []>} : vector<1x16xf32>, vector<16x120xf32>, vector<1x120xf32> -> vector<1x120xf32>
    %c6 = arith.constant 6 : index
    %c0_77 = arith.constant 0 : index
    %80 = vector.load %arg15[%c6, %c0_77] : memref<152x16xf32, #tpu.memory_space<vmem>>, vector<1x16xf32>
    %c48_78 = arith.constant 48 : index
    %c0_79 = arith.constant 0 : index
    %81 = vector.load %arg6[%c48_78, %c0_79] : memref<576x120xf32, #tpu.memory_space<vmem>>, vector<16x120xf32>
    %cst_80 = arith.constant dense<0.000000e+00> : vector<1x120xf32>
    %82 = tpu.matmul %80, %81, %cst_80 {dimension_numbers = #tpu.dot_dimension_numbers<[1], [0], [0], [1], [0, 0, 1, 1], [], []>} : vector<1x16xf32>, vector<16x120xf32>, vector<1x120xf32> -> vector<1x120xf32>
    %c8 = arith.constant 8 : index
    %c0_81 = arith.constant 0 : index
    %83 = vector.load %arg15[%c8, %c0_81] : memref<152x16xf32, #tpu.memory_space<vmem>>, vector<1x16xf32>
    %c64_82 = arith.constant 64 : index
    %c0_83 = arith.constant 0 : index
    %84 = vector.load %arg6[%c64_82, %c0_83] : memref<576x120xf32, #tpu.memory_space<vmem>>, vector<16x120xf32>
    %cst_84 = arith.constant dense<0.000000e+00> : vector<1x120xf32>
    %85 = tpu.matmul %83, %84, %cst_84 {dimension_numbers = #tpu.dot_dimension_numbers<[1], [0], [0], [1], [0, 0, 1, 1], [], []>} : vector<1x16xf32>, vector<16x120xf32>, vector<1x120xf32> -> vector<1x120xf32>
    %c10 = arith.constant 10 : index
    %c0_85 = arith.constant 0 : index
    %86 = vector.load %arg15[%c10, %c0_85] : memref<152x16xf32, #tpu.memory_space<vmem>>, vector<1x16xf32>
    %c80_86 = arith.constant 80 : index
    %c0_87 = arith.constant 0 : index
    %87 = vector.load %arg6[%c80_86, %c0_87] : memref<576x120xf32, #tpu.memory_space<vmem>>, vector<16x120xf32>
    %cst_88 = arith.constant dense<0.000000e+00> : vector<1x120xf32>
    %88 = tpu.matmul %86, %87, %cst_88 {dimension_numbers = #tpu.dot_dimension_numbers<[1], [0], [0], [1], [0, 0, 1, 1], [], []>} : vector<1x16xf32>, vector<16x120xf32>, vector<1x120xf32> -> vector<1x120xf32>
    %c28_89 = arith.constant 28 : index
    %c0_90 = arith.constant 0 : index
    %89 = vector.load %arg15[%c28_89, %c0_90] : memref<152x16xf32, #tpu.memory_space<vmem>>, vector<1x16xf32>
    %c96_91 = arith.constant 96 : index
    %c0_92 = arith.constant 0 : index
    %90 = vector.load %arg6[%c96_91, %c0_92] : memref<576x120xf32, #tpu.memory_space<vmem>>, vector<16x120xf32>
    %cst_93 = arith.constant dense<0.000000e+00> : vector<1x120xf32>
    %91 = tpu.matmul %89, %90, %cst_93 {dimension_numbers = #tpu.dot_dimension_numbers<[1], [0], [0], [1], [0, 0, 1, 1], [], []>} : vector<1x16xf32>, vector<16x120xf32>, vector<1x120xf32> -> vector<1x120xf32>
    %c30_94 = arith.constant 30 : index
    %c0_95 = arith.constant 0 : index
    %92 = vector.load %arg15[%c30_94, %c0_95] : memref<152x16xf32, #tpu.memory_space<vmem>>, vector<1x16xf32>
    %c112_96 = arith.constant 112 : index
    %c0_97 = arith.constant 0 : index
    %93 = vector.load %arg6[%c112_96, %c0_97] : memref<576x120xf32, #tpu.memory_space<vmem>>, vector<16x120xf32>
    %cst_98 = arith.constant dense<0.000000e+00> : vector<1x120xf32>
    %94 = tpu.matmul %92, %93, %cst_98 {dimension_numbers = #tpu.dot_dimension_numbers<[1], [0], [0], [1], [0, 0, 1, 1], [], []>} : vector<1x16xf32>, vector<16x120xf32>, vector<1x120xf32> -> vector<1x120xf32>
    %c32_99 = arith.constant 32 : index
    %c0_100 = arith.constant 0 : index
    %95 = vector.load %arg15[%c32_99, %c0_100] : memref<152x16xf32, #tpu.memory_space<vmem>>, vector<1x16xf32>
    %c128_101 = arith.constant 128 : index
    %c0_102 = arith.constant 0 : index
    %96 = vector.load %arg6[%c128_101, %c0_102] : memref<576x120xf32, #tpu.memory_space<vmem>>, vector<16x120xf32>
    %cst_103 = arith.constant dense<0.000000e+00> : vector<1x120xf32>
    %97 = tpu.matmul %95, %96, %cst_103 {dimension_numbers = #tpu.dot_dimension_numbers<[1], [0], [0], [1], [0, 0, 1, 1], [], []>} : vector<1x16xf32>, vector<16x120xf32>, vector<1x120xf32> -> vector<1x120xf32>
    %c34 = arith.constant 34 : index
    %c0_104 = arith.constant 0 : index
    %98 = vector.load %arg15[%c34, %c0_104] : memref<152x16xf32, #tpu.memory_space<vmem>>, vector<1x16xf32>
    %c144 = arith.constant 144 : index
    %c0_105 = arith.constant 0 : index
    %99 = vector.load %arg6[%c144, %c0_105] : memref<576x120xf32, #tpu.memory_space<vmem>>, vector<16x120xf32>
    %cst_106 = arith.constant dense<0.000000e+00> : vector<1x120xf32>
    %100 = tpu.matmul %98, %99, %cst_106 {dimension_numbers = #tpu.dot_dimension_numbers<[1], [0], [0], [1], [0, 0, 1, 1], [], []>} : vector<1x16xf32>, vector<16x120xf32>, vector<1x120xf32> -> vector<1x120xf32>
    %c36 = arith.constant 36 : index
    %c0_107 = arith.constant 0 : index
    %101 = vector.load %arg15[%c36, %c0_107] : memref<152x16xf32, #tpu.memory_space<vmem>>, vector<1x16xf32>
    %c160 = arith.constant 160 : index
    %c0_108 = arith.constant 0 : index
    %102 = vector.load %arg6[%c160, %c0_108] : memref<576x120xf32, #tpu.memory_space<vmem>>, vector<16x120xf32>
    %cst_109 = arith.constant dense<0.000000e+00> : vector<1x120xf32>
    %103 = tpu.matmul %101, %102, %cst_109 {dimension_numbers = #tpu.dot_dimension_numbers<[1], [0], [0], [1], [0, 0, 1, 1], [], []>} : vector<1x16xf32>, vector<16x120xf32>, vector<1x120xf32> -> vector<1x120xf32>
    %c38 = arith.constant 38 : index
    %c0_110 = arith.constant 0 : index
    %104 = vector.load %arg15[%c38, %c0_110] : memref<152x16xf32, #tpu.memory_space<vmem>>, vector<1x16xf32>
    %c176 = arith.constant 176 : index
    %c0_111 = arith.constant 0 : index
    %105 = vector.load %arg6[%c176, %c0_111] : memref<576x120xf32, #tpu.memory_space<vmem>>, vector<16x120xf32>
    %cst_112 = arith.constant dense<0.000000e+00> : vector<1x120xf32>
    %106 = tpu.matmul %104, %105, %cst_112 {dimension_numbers = #tpu.dot_dimension_numbers<[1], [0], [0], [1], [0, 0, 1, 1], [], []>} : vector<1x16xf32>, vector<16x120xf32>, vector<1x120xf32> -> vector<1x120xf32>
    %c56 = arith.constant 56 : index
    %c0_113 = arith.constant 0 : index
    %107 = vector.load %arg15[%c56, %c0_113] : memref<152x16xf32, #tpu.memory_space<vmem>>, vector<1x16xf32>
    %c192 = arith.constant 192 : index
    %c0_114 = arith.constant 0 : index
    %108 = vector.load %arg6[%c192, %c0_114] : memref<576x120xf32, #tpu.memory_space<vmem>>, vector<16x120xf32>
    %cst_115 = arith.constant dense<0.000000e+00> : vector<1x120xf32>
    %109 = tpu.matmul %107, %108, %cst_115 {dimension_numbers = #tpu.dot_dimension_numbers<[1], [0], [0], [1], [0, 0, 1, 1], [], []>} : vector<1x16xf32>, vector<16x120xf32>, vector<1x120xf32> -> vector<1x120xf32>
    %c58 = arith.constant 58 : index
    %c0_116 = arith.constant 0 : index
    %110 = vector.load %arg15[%c58, %c0_116] : memref<152x16xf32, #tpu.memory_space<vmem>>, vector<1x16xf32>
    %c208_117 = arith.constant 208 : index
    %c0_118 = arith.constant 0 : index
    %111 = vector.load %arg6[%c208_117, %c0_118] : memref<576x120xf32, #tpu.memory_space<vmem>>, vector<16x120xf32>
    %cst_119 = arith.constant dense<0.000000e+00> : vector<1x120xf32>
    %112 = tpu.matmul %110, %111, %cst_119 {dimension_numbers = #tpu.dot_dimension_numbers<[1], [0], [0], [1], [0, 0, 1, 1], [], []>} : vector<1x16xf32>, vector<16x120xf32>, vector<1x120xf32> -> vector<1x120xf32>
    %c60 = arith.constant 60 : index
    %c0_120 = arith.constant 0 : index
    %113 = vector.load %arg15[%c60, %c0_120] : memref<152x16xf32, #tpu.memory_space<vmem>>, vector<1x16xf32>
    %c224 = arith.constant 224 : index
    %c0_121 = arith.constant 0 : index
    %114 = vector.load %arg6[%c224, %c0_121] : memref<576x120xf32, #tpu.memory_space<vmem>>, vector<16x120xf32>
    %cst_122 = arith.constant dense<0.000000e+00> : vector<1x120xf32>
    %115 = tpu.matmul %113, %114, %cst_122 {dimension_numbers = #tpu.dot_dimension_numbers<[1], [0], [0], [1], [0, 0, 1, 1], [], []>} : vector<1x16xf32>, vector<16x120xf32>, vector<1x120xf32> -> vector<1x120xf32>
    %c62 = arith.constant 62 : index
    %c0_123 = arith.constant 0 : index
    %116 = vector.load %arg15[%c62, %c0_123] : memref<152x16xf32, #tpu.memory_space<vmem>>, vector<1x16xf32>
    %c240 = arith.constant 240 : index
    %c0_124 = arith.constant 0 : index
    %117 = vector.load %arg6[%c240, %c0_124] : memref<576x120xf32, #tpu.memory_space<vmem>>, vector<16x120xf32>
    %cst_125 = arith.constant dense<0.000000e+00> : vector<1x120xf32>
    %118 = tpu.matmul %116, %117, %cst_125 {dimension_numbers = #tpu.dot_dimension_numbers<[1], [0], [0], [1], [0, 0, 1, 1], [], []>} : vector<1x16xf32>, vector<16x120xf32>, vector<1x120xf32> -> vector<1x120xf32>
    %c64_126 = arith.constant 64 : index
    %c0_127 = arith.constant 0 : index
    %119 = vector.load %arg15[%c64_126, %c0_127] : memref<152x16xf32, #tpu.memory_space<vmem>>, vector<1x16xf32>
    %c256 = arith.constant 256 : index
    %c0_128 = arith.constant 0 : index
    %120 = vector.load %arg6[%c256, %c0_128] : memref<576x120xf32, #tpu.memory_space<vmem>>, vector<16x120xf32>
    %cst_129 = arith.constant dense<0.000000e+00> : vector<1x120xf32>
    %121 = tpu.matmul %119, %120, %cst_129 {dimension_numbers = #tpu.dot_dimension_numbers<[1], [0], [0], [1], [0, 0, 1, 1], [], []>} : vector<1x16xf32>, vector<16x120xf32>, vector<1x120xf32> -> vector<1x120xf32>
    %c66 = arith.constant 66 : index
    %c0_130 = arith.constant 0 : index
    %122 = vector.load %arg15[%c66, %c0_130] : memref<152x16xf32, #tpu.memory_space<vmem>>, vector<1x16xf32>
    %c272 = arith.constant 272 : index
    %c0_131 = arith.constant 0 : index
    %123 = vector.load %arg6[%c272, %c0_131] : memref<576x120xf32, #tpu.memory_space<vmem>>, vector<16x120xf32>
    %cst_132 = arith.constant dense<0.000000e+00> : vector<1x120xf32>
    %124 = tpu.matmul %122, %123, %cst_132 {dimension_numbers = #tpu.dot_dimension_numbers<[1], [0], [0], [1], [0, 0, 1, 1], [], []>} : vector<1x16xf32>, vector<16x120xf32>, vector<1x120xf32> -> vector<1x120xf32>
    %c84 = arith.constant 84 : index
    %c0_133 = arith.constant 0 : index
    %125 = vector.load %arg15[%c84, %c0_133] : memref<152x16xf32, #tpu.memory_space<vmem>>, vector<1x16xf32>
    %c288 = arith.constant 288 : index
    %c0_134 = arith.constant 0 : index
    %126 = vector.load %arg6[%c288, %c0_134] : memref<576x120xf32, #tpu.memory_space<vmem>>, vector<16x120xf32>
    %cst_135 = arith.constant dense<0.000000e+00> : vector<1x120xf32>
    %127 = tpu.matmul %125, %126, %cst_135 {dimension_numbers = #tpu.dot_dimension_numbers<[1], [0], [0], [1], [0, 0, 1, 1], [], []>} : vector<1x16xf32>, vector<16x120xf32>, vector<1x120xf32> -> vector<1x120xf32>
    %c86 = arith.constant 86 : index
    %c0_136 = arith.constant 0 : index
    %128 = vector.load %arg15[%c86, %c0_136] : memref<152x16xf32, #tpu.memory_space<vmem>>, vector<1x16xf32>
    %c304 = arith.constant 304 : index
    %c0_137 = arith.constant 0 : index
    %129 = vector.load %arg6[%c304, %c0_137] : memref<576x120xf32, #tpu.memory_space<vmem>>, vector<16x120xf32>
    %cst_138 = arith.constant dense<0.000000e+00> : vector<1x120xf32>
    %130 = tpu.matmul %128, %129, %cst_138 {dimension_numbers = #tpu.dot_dimension_numbers<[1], [0], [0], [1], [0, 0, 1, 1], [], []>} : vector<1x16xf32>, vector<16x120xf32>, vector<1x120xf32> -> vector<1x120xf32>
    %c88 = arith.constant 88 : index
    %c0_139 = arith.constant 0 : index
    %131 = vector.load %arg15[%c88, %c0_139] : memref<152x16xf32, #tpu.memory_space<vmem>>, vector<1x16xf32>
    %c320 = arith.constant 320 : index
    %c0_140 = arith.constant 0 : index
    %132 = vector.load %arg6[%c320, %c0_140] : memref<576x120xf32, #tpu.memory_space<vmem>>, vector<16x120xf32>
    %cst_141 = arith.constant dense<0.000000e+00> : vector<1x120xf32>
    %133 = tpu.matmul %131, %132, %cst_141 {dimension_numbers = #tpu.dot_dimension_numbers<[1], [0], [0], [1], [0, 0, 1, 1], [], []>} : vector<1x16xf32>, vector<16x120xf32>, vector<1x120xf32> -> vector<1x120xf32>
    %c90 = arith.constant 90 : index
    %c0_142 = arith.constant 0 : index
    %134 = vector.load %arg15[%c90, %c0_142] : memref<152x16xf32, #tpu.memory_space<vmem>>, vector<1x16xf32>
    %c336 = arith.constant 336 : index
    %c0_143 = arith.constant 0 : index
    %135 = vector.load %arg6[%c336, %c0_143] : memref<576x120xf32, #tpu.memory_space<vmem>>, vector<16x120xf32>
    %cst_144 = arith.constant dense<0.000000e+00> : vector<1x120xf32>
    %136 = tpu.matmul %134, %135, %cst_144 {dimension_numbers = #tpu.dot_dimension_numbers<[1], [0], [0], [1], [0, 0, 1, 1], [], []>} : vector<1x16xf32>, vector<16x120xf32>, vector<1x120xf32> -> vector<1x120xf32>
    %c92 = arith.constant 92 : index
    %c0_145 = arith.constant 0 : index
    %137 = vector.load %arg15[%c92, %c0_145] : memref<152x16xf32, #tpu.memory_space<vmem>>, vector<1x16xf32>
    %c352 = arith.constant 352 : index
    %c0_146 = arith.constant 0 : index
    %138 = vector.load %arg6[%c352, %c0_146] : memref<576x120xf32, #tpu.memory_space<vmem>>, vector<16x120xf32>
    %cst_147 = arith.constant dense<0.000000e+00> : vector<1x120xf32>
    %139 = tpu.matmul %137, %138, %cst_147 {dimension_numbers = #tpu.dot_dimension_numbers<[1], [0], [0], [1], [0, 0, 1, 1], [], []>} : vector<1x16xf32>, vector<16x120xf32>, vector<1x120xf32> -> vector<1x120xf32>
    %c94 = arith.constant 94 : index
    %c0_148 = arith.constant 0 : index
    %140 = vector.load %arg15[%c94, %c0_148] : memref<152x16xf32, #tpu.memory_space<vmem>>, vector<1x16xf32>
    %c368 = arith.constant 368 : index
    %c0_149 = arith.constant 0 : index
    %141 = vector.load %arg6[%c368, %c0_149] : memref<576x120xf32, #tpu.memory_space<vmem>>, vector<16x120xf32>
    %cst_150 = arith.constant dense<0.000000e+00> : vector<1x120xf32>
    %142 = tpu.matmul %140, %141, %cst_150 {dimension_numbers = #tpu.dot_dimension_numbers<[1], [0], [0], [1], [0, 0, 1, 1], [], []>} : vector<1x16xf32>, vector<16x120xf32>, vector<1x120xf32> -> vector<1x120xf32>
    %c112_151 = arith.constant 112 : index
    %c0_152 = arith.constant 0 : index
    %143 = vector.load %arg15[%c112_151, %c0_152] : memref<152x16xf32, #tpu.memory_space<vmem>>, vector<1x16xf32>
    %c384 = arith.constant 384 : index
    %c0_153 = arith.constant 0 : index
    %144 = vector.load %arg6[%c384, %c0_153] : memref<576x120xf32, #tpu.memory_space<vmem>>, vector<16x120xf32>
    %cst_154 = arith.constant dense<0.000000e+00> : vector<1x120xf32>
    %145 = tpu.matmul %143, %144, %cst_154 {dimension_numbers = #tpu.dot_dimension_numbers<[1], [0], [0], [1], [0, 0, 1, 1], [], []>} : vector<1x16xf32>, vector<16x120xf32>, vector<1x120xf32> -> vector<1x120xf32>
    %c114 = arith.constant 114 : index
    %c0_155 = arith.constant 0 : index
    %146 = vector.load %arg15[%c114, %c0_155] : memref<152x16xf32, #tpu.memory_space<vmem>>, vector<1x16xf32>
    %c400 = arith.constant 400 : index
    %c0_156 = arith.constant 0 : index
    %147 = vector.load %arg6[%c400, %c0_156] : memref<576x120xf32, #tpu.memory_space<vmem>>, vector<16x120xf32>
    %cst_157 = arith.constant dense<0.000000e+00> : vector<1x120xf32>
    %148 = tpu.matmul %146, %147, %cst_157 {dimension_numbers = #tpu.dot_dimension_numbers<[1], [0], [0], [1], [0, 0, 1, 1], [], []>} : vector<1x16xf32>, vector<16x120xf32>, vector<1x120xf32> -> vector<1x120xf32>
    %c116 = arith.constant 116 : index
    %c0_158 = arith.constant 0 : index
    %149 = vector.load %arg15[%c116, %c0_158] : memref<152x16xf32, #tpu.memory_space<vmem>>, vector<1x16xf32>
    %c416_159 = arith.constant 416 : index
    %c0_160 = arith.constant 0 : index
    %150 = vector.load %arg6[%c416_159, %c0_160] : memref<576x120xf32, #tpu.memory_space<vmem>>, vector<16x120xf32>
    %cst_161 = arith.constant dense<0.000000e+00> : vector<1x120xf32>
    %151 = tpu.matmul %149, %150, %cst_161 {dimension_numbers = #tpu.dot_dimension_numbers<[1], [0], [0], [1], [0, 0, 1, 1], [], []>} : vector<1x16xf32>, vector<16x120xf32>, vector<1x120xf32> -> vector<1x120xf32>
    %c118 = arith.constant 118 : index
    %c0_162 = arith.constant 0 : index
    %152 = vector.load %arg15[%c118, %c0_162] : memref<152x16xf32, #tpu.memory_space<vmem>>, vector<1x16xf32>
    %c432 = arith.constant 432 : index
    %c0_163 = arith.constant 0 : index
    %153 = vector.load %arg6[%c432, %c0_163] : memref<576x120xf32, #tpu.memory_space<vmem>>, vector<16x120xf32>
    %cst_164 = arith.constant dense<0.000000e+00> : vector<1x120xf32>
    %154 = tpu.matmul %152, %153, %cst_164 {dimension_numbers = #tpu.dot_dimension_numbers<[1], [0], [0], [1], [0, 0, 1, 1], [], []>} : vector<1x16xf32>, vector<16x120xf32>, vector<1x120xf32> -> vector<1x120xf32>
    %c120 = arith.constant 120 : index
    %c0_165 = arith.constant 0 : index
    %155 = vector.load %arg15[%c120, %c0_165] : memref<152x16xf32, #tpu.memory_space<vmem>>, vector<1x16xf32>
    %c448 = arith.constant 448 : index
    %c0_166 = arith.constant 0 : index
    %156 = vector.load %arg6[%c448, %c0_166] : memref<576x120xf32, #tpu.memory_space<vmem>>, vector<16x120xf32>
    %cst_167 = arith.constant dense<0.000000e+00> : vector<1x120xf32>
    %157 = tpu.matmul %155, %156, %cst_167 {dimension_numbers = #tpu.dot_dimension_numbers<[1], [0], [0], [1], [0, 0, 1, 1], [], []>} : vector<1x16xf32>, vector<16x120xf32>, vector<1x120xf32> -> vector<1x120xf32>
    %c122 = arith.constant 122 : index
    %c0_168 = arith.constant 0 : index
    %158 = vector.load %arg15[%c122, %c0_168] : memref<152x16xf32, #tpu.memory_space<vmem>>, vector<1x16xf32>
    %c464 = arith.constant 464 : index
    %c0_169 = arith.constant 0 : index
    %159 = vector.load %arg6[%c464, %c0_169] : memref<576x120xf32, #tpu.memory_space<vmem>>, vector<16x120xf32>
    %cst_170 = arith.constant dense<0.000000e+00> : vector<1x120xf32>
    %160 = tpu.matmul %158, %159, %cst_170 {dimension_numbers = #tpu.dot_dimension_numbers<[1], [0], [0], [1], [0, 0, 1, 1], [], []>} : vector<1x16xf32>, vector<16x120xf32>, vector<1x120xf32> -> vector<1x120xf32>
    %c140 = arith.constant 140 : index
    %c0_171 = arith.constant 0 : index
    %161 = vector.load %arg15[%c140, %c0_171] : memref<152x16xf32, #tpu.memory_space<vmem>>, vector<1x16xf32>
    %c480 = arith.constant 480 : index
    %c0_172 = arith.constant 0 : index
    %162 = vector.load %arg6[%c480, %c0_172] : memref<576x120xf32, #tpu.memory_space<vmem>>, vector<16x120xf32>
    %cst_173 = arith.constant dense<0.000000e+00> : vector<1x120xf32>
    %163 = tpu.matmul %161, %162, %cst_173 {dimension_numbers = #tpu.dot_dimension_numbers<[1], [0], [0], [1], [0, 0, 1, 1], [], []>} : vector<1x16xf32>, vector<16x120xf32>, vector<1x120xf32> -> vector<1x120xf32>
    %c142 = arith.constant 142 : index
    %c0_174 = arith.constant 0 : index
    %164 = vector.load %arg15[%c142, %c0_174] : memref<152x16xf32, #tpu.memory_space<vmem>>, vector<1x16xf32>
    %c496 = arith.constant 496 : index
    %c0_175 = arith.constant 0 : index
    %165 = vector.load %arg6[%c496, %c0_175] : memref<576x120xf32, #tpu.memory_space<vmem>>, vector<16x120xf32>
    %cst_176 = arith.constant dense<0.000000e+00> : vector<1x120xf32>
    %166 = tpu.matmul %164, %165, %cst_176 {dimension_numbers = #tpu.dot_dimension_numbers<[1], [0], [0], [1], [0, 0, 1, 1], [], []>} : vector<1x16xf32>, vector<16x120xf32>, vector<1x120xf32> -> vector<1x120xf32>
    %c144_177 = arith.constant 144 : index
    %c0_178 = arith.constant 0 : index
    %167 = vector.load %arg15[%c144_177, %c0_178] : memref<152x16xf32, #tpu.memory_space<vmem>>, vector<1x16xf32>
    %c512 = arith.constant 512 : index
    %c0_179 = arith.constant 0 : index
    %168 = vector.load %arg6[%c512, %c0_179] : memref<576x120xf32, #tpu.memory_space<vmem>>, vector<16x120xf32>
    %cst_180 = arith.constant dense<0.000000e+00> : vector<1x120xf32>
    %169 = tpu.matmul %167, %168, %cst_180 {dimension_numbers = #tpu.dot_dimension_numbers<[1], [0], [0], [1], [0, 0, 1, 1], [], []>} : vector<1x16xf32>, vector<16x120xf32>, vector<1x120xf32> -> vector<1x120xf32>
    %c146 = arith.constant 146 : index
    %c0_181 = arith.constant 0 : index
    %170 = vector.load %arg15[%c146, %c0_181] : memref<152x16xf32, #tpu.memory_space<vmem>>, vector<1x16xf32>
    %c528 = arith.constant 528 : index
    %c0_182 = arith.constant 0 : index
    %171 = vector.load %arg6[%c528, %c0_182] : memref<576x120xf32, #tpu.memory_space<vmem>>, vector<16x120xf32>
    %cst_183 = arith.constant dense<0.000000e+00> : vector<1x120xf32>
    %172 = tpu.matmul %170, %171, %cst_183 {dimension_numbers = #tpu.dot_dimension_numbers<[1], [0], [0], [1], [0, 0, 1, 1], [], []>} : vector<1x16xf32>, vector<16x120xf32>, vector<1x120xf32> -> vector<1x120xf32>
    %c148 = arith.constant 148 : index
    %c0_184 = arith.constant 0 : index
    %173 = vector.load %arg15[%c148, %c0_184] : memref<152x16xf32, #tpu.memory_space<vmem>>, vector<1x16xf32>
    %c544 = arith.constant 544 : index
    %c0_185 = arith.constant 0 : index
    %174 = vector.load %arg6[%c544, %c0_185] : memref<576x120xf32, #tpu.memory_space<vmem>>, vector<16x120xf32>
    %cst_186 = arith.constant dense<0.000000e+00> : vector<1x120xf32>
    %175 = tpu.matmul %173, %174, %cst_186 {dimension_numbers = #tpu.dot_dimension_numbers<[1], [0], [0], [1], [0, 0, 1, 1], [], []>} : vector<1x16xf32>, vector<16x120xf32>, vector<1x120xf32> -> vector<1x120xf32>
    %c150 = arith.constant 150 : index
    %c0_187 = arith.constant 0 : index
    %176 = vector.load %arg15[%c150, %c0_187] : memref<152x16xf32, #tpu.memory_space<vmem>>, vector<1x16xf32>
    %c560 = arith.constant 560 : index
    %c0_188 = arith.constant 0 : index
    %177 = vector.load %arg6[%c560, %c0_188] : memref<576x120xf32, #tpu.memory_space<vmem>>, vector<16x120xf32>
    %cst_189 = arith.constant dense<0.000000e+00> : vector<1x120xf32>
    %178 = tpu.matmul %176, %177, %cst_189 {dimension_numbers = #tpu.dot_dimension_numbers<[1], [0], [0], [1], [0, 0, 1, 1], [], []>} : vector<1x16xf32>, vector<16x120xf32>, vector<1x120xf32> -> vector<1x120xf32>
    %179 = arith.addf %73, %76 : vector<1x120xf32>
    %180 = arith.addf %79, %82 : vector<1x120xf32>
    %181 = arith.addf %85, %88 : vector<1x120xf32>
    %182 = arith.addf %91, %94 : vector<1x120xf32>
    %183 = arith.addf %97, %100 : vector<1x120xf32>
    %184 = arith.addf %103, %106 : vector<1x120xf32>
    %185 = arith.addf %109, %112 : vector<1x120xf32>
    %186 = arith.addf %115, %118 : vector<1x120xf32>
    %187 = arith.addf %121, %124 : vector<1x120xf32>
    %188 = arith.addf %127, %130 : vector<1x120xf32>
    %189 = arith.addf %133, %136 : vector<1x120xf32>
    %190 = arith.addf %139, %142 : vector<1x120xf32>
    %191 = arith.addf %145, %148 : vector<1x120xf32>
    %192 = arith.addf %151, %154 : vector<1x120xf32>
    %193 = arith.addf %157, %160 : vector<1x120xf32>
    %194 = arith.addf %163, %166 : vector<1x120xf32>
    %195 = arith.addf %169, %172 : vector<1x120xf32>
    %196 = arith.addf %175, %178 : vector<1x120xf32>
    %197 = arith.addf %179, %180 : vector<1x120xf32>
    %198 = arith.addf %181, %182 : vector<1x120xf32>
    %199 = arith.addf %183, %184 : vector<1x120xf32>
    %200 = arith.addf %185, %186 : vector<1x120xf32>
    %201 = arith.addf %187, %188 : vector<1x120xf32>
    %202 = arith.addf %189, %190 : vector<1x120xf32>
    %203 = arith.addf %191, %192 : vector<1x120xf32>
    %204 = arith.addf %193, %194 : vector<1x120xf32>
    %205 = arith.addf %195, %196 : vector<1x120xf32>
    %206 = arith.addf %197, %198 : vector<1x120xf32>
    %207 = arith.addf %199, %200 : vector<1x120xf32>
    %208 = arith.addf %201, %202 : vector<1x120xf32>
    %209 = arith.addf %203, %204 : vector<1x120xf32>
    %210 = arith.addf %206, %207 : vector<1x120xf32>
    %211 = arith.addf %208, %209 : vector<1x120xf32>
    %212 = arith.addf %210, %211 : vector<1x120xf32>
    %213 = arith.addf %212, %205 : vector<1x120xf32>
    %c0_190 = arith.constant 0 : index
    %c0_191 = arith.constant 0 : index
    %214 = vector.load %arg7[%c0_190, %c0_191] : memref<1x120xf32, #tpu.memory_space<vmem>>, vector<1x120xf32>
    %215 = arith.addf %213, %214 : vector<1x120xf32>
    %cst_192 = arith.constant 0.000000e+00 : f32
    %216 = vector.broadcast %cst_192 : f32 to vector<1x120xf32>
    %217 = arith.maximumf %215, %216 : vector<1x120xf32>
    %c0_193 = arith.constant 0 : index
    %c0_194 = arith.constant 0 : index
    %218 = vector.load %arg8[%c0_193, %c0_194] : memref<120x84xf32, #tpu.memory_space<vmem>>, vector<120x84xf32>
    %cst_195 = arith.constant dense<0.000000e+00> : vector<1x84xf32>
    %219 = tpu.matmul %217, %218, %cst_195 {dimension_numbers = #tpu.dot_dimension_numbers<[1], [0], [0], [1], [0, 0, 1, 1], [], []>} : vector<1x120xf32>, vector<120x84xf32>, vector<1x84xf32> -> vector<1x84xf32>
    %c0_196 = arith.constant 0 : index
    %c0_197 = arith.constant 0 : index
    %220 = vector.load %arg9[%c0_196, %c0_197] : memref<1x84xf32, #tpu.memory_space<vmem>>, vector<1x84xf32>
    %221 = arith.addf %219, %220 : vector<1x84xf32>
    %cst_198 = arith.constant 0.000000e+00 : f32
    %222 = vector.broadcast %cst_198 : f32 to vector<1x84xf32>
    %223 = arith.maximumf %221, %222 : vector<1x84xf32>
    %c0_199 = arith.constant 0 : index
    %c0_200 = arith.constant 0 : index
    %224 = vector.load %arg10[%c0_199, %c0_200] : memref<84x128xf32, #tpu.memory_space<vmem>>, vector<84x128xf32>
    %cst_201 = arith.constant dense<0.000000e+00> : vector<1x128xf32>
    %225 = tpu.matmul %223, %224, %cst_201 {dimension_numbers = #tpu.dot_dimension_numbers<[1], [0], [0], [1], [0, 0, 1, 1], [], []>} : vector<1x84xf32>, vector<84x128xf32>, vector<1x128xf32> -> vector<1x128xf32>
    %c0_202 = arith.constant 0 : index
    %c0_203 = arith.constant 0 : index
    %226 = vector.load %arg11[%c0_202, %c0_203] : memref<1x128xf32, #tpu.memory_space<vmem>>, vector<1x128xf32>
    %227 = arith.addf %225, %226 : vector<1x128xf32>
    %c0_204 = arith.constant 0 : index
    %c0_205 = arith.constant 0 : index
    %c0_206 = arith.constant 0 : index
    %228 = vector.load %arg12[%c0_204, %c0_205, %c0_206] : memref<1x1x128xf32, #tpu.memory_space<vmem>>, vector<1x1x128xf32>
    %229 = vector.shape_cast %228 : vector<1x1x128xf32> to vector<1x128xf32>
    %230 = vector.shape_cast %227 : vector<1x128xf32> to vector<1x1x128xf32>
    tpu.vector_store %arg12[%c0_204, %c0_205, %c0_206], %230 {strides = array<i32>} : memref<1x1x128xf32, #tpu.memory_space<vmem>>, vector<1x1x128xf32>,
    return
  }
  func.func @transform_0(%arg0: i32) -> (i32, i32, i32) {
    %c0_i32 = arith.constant 0 : i32
    %c0_i32_0 = arith.constant 0 : i32
    %c0_i32_1 = arith.constant 0 : i32
    return %arg0, %c0_i32, %c0_i32_0 : i32, i32, i32
  }
  func.func @transform_1(%arg0: i32) -> (i32, i32) {
    %c0_i32 = arith.constant 0 : i32
    %c0_i32_0 = arith.constant 0 : i32
    %c0_i32_1 = arith.constant 0 : i32
    return %c0_i32, %c0_i32_0 : i32, i32
  }
  func.func @transform_2(%arg0: i32) -> (i32, i32) {
    %c0_i32 = arith.constant 0 : i32
    %c0_i32_0 = arith.constant 0 : i32
    %c0_i32_1 = arith.constant 0 : i32
    return %c0_i32, %c0_i32_0 : i32, i32
  }
  func.func @transform_3(%arg0: i32) -> (i32, i32) {
    %c0_i32 = arith.constant 0 : i32
    %c0_i32_0 = arith.constant 0 : i32
    %c0_i32_1 = arith.constant 0 : i32
    return %c0_i32, %c0_i32_0 : i32, i32
  }
  func.func @transform_4(%arg0: i32) -> (i32, i32) {
    %c0_i32 = arith.constant 0 : i32
    %c0_i32_0 = arith.constant 0 : i32
    %c0_i32_1 = arith.constant 0 : i32
    return %c0_i32, %c0_i32_0 : i32, i32
  }
  func.func @transform_5(%arg0: i32) -> (i32, i32) {
    %c0_i32 = arith.constant 0 : i32
    %c0_i32_0 = arith.constant 0 : i32
    %c0_i32_1 = arith.constant 0 : i32
    return %c0_i32, %c0_i32_0 : i32, i32
  }
  func.func @transform_6(%arg0: i32) -> (i32, i32) {
    %c0_i32 = arith.constant 0 : i32
    %c0_i32_0 = arith.constant 0 : i32
    %c0_i32_1 = arith.constant 0 : i32
    return %c0_i32, %c0_i32_0 : i32, i32
  }
  func.func @transform_7(%arg0: i32) -> (i32, i32) {
    %c0_i32 = arith.constant 0 : i32
    %c0_i32_0 = arith.constant 0 : i32
    %c0_i32_1 = arith.constant 0 : i32
    return %c0_i32, %c0_i32_0 : i32, i32
  }
  func.func @transform_8(%arg0: i32) -> (i32, i32) {
    %c0_i32 = arith.constant 0 : i32
    %c0_i32_0 = arith.constant 0 : i32
    %c0_i32_1 = arith.constant 0 : i32
    return %c0_i32, %c0_i32_0 : i32, i32
  }
  func.func @transform_9(%arg0: i32) -> (i32, i32) {
    %c0_i32 = arith.constant 0 : i32
    %c0_i32_0 = arith.constant 0 : i32
    %c0_i32_1 = arith.constant 0 : i32
    return %c0_i32, %c0_i32_0 : i32, i32
  }
  func.func @transform_10(%arg0: i32) -> (i32, i32) {
    %c0_i32 = arith.constant 0 : i32
    %c0_i32_0 = arith.constant 0 : i32
    %c0_i32_1 = arith.constant 0 : i32
    return %c0_i32, %c0_i32_0 : i32, i32
  }
  func.func @transform_11(%arg0: i32) -> (i32, i32, i32) {
    %c0_i32 = arith.constant 0 : i32
    %c0_i32_0 = arith.constant 0 : i32
    %c0_i32_1 = arith.constant 0 : i32
    return %arg0, %c0_i32, %c0_i32_0 : i32, i32, i32
  }
}

</mosaic_0001>

<bundles_post_ra>
// kernel: net_forward.1
= control target key start
LH: loop header
LB: loop body
LE: loop exit
PB: predicated region body
PF: predicated region fallthrough
CT: control target
= control target key end

     0   :  { %s12054_s0 = inlined_call_operand.vmem [shape: bf16[2,832,75], index: 0, kind: input, shape index: {}]   ;;  %s12055_s1 = inlined_call_operand.vmem [shape: bf16[75,16], index: 1, kind: input, shape index: {}]   ;;  %s12056_s2 = inlined_call_operand.vmem [shape: f32[1,16], index: 2, kind: input, shape index: {}]   ;;  %s12057_s3 = inlined_call_operand.vmem [shape: f32[144,16], index: 3, kind: input, shape index: {}]   ;;  %s12058_s4 = inlined_call_operand.vmem [shape: f32[1,16], index: 4, kind: input, shape index: {}]   ;;  %s12059_s5 = inlined_call_operand.vmem [shape: f32[576,120], index: 5, kind: input, shape index: {}]   ;;  %s12060_s6 = inlined_call_operand.vmem [shape: f32[1,120], index: 6, kind: input, shape index: {}]   ;;  %s12061_s7 = inlined_call_operand.vmem [shape: f32[120,84], index: 7, kind: input, shape index: {}]   ;;  %s12062_s8 = inlined_call_operand.vmem [shape: f32[1,84], index: 8, kind: input, shape index: {}]   ;;  %s12063_s9 = inlined_call_operand.vmem [shape: f32[84,128], index: 9, kind: input, shape index: {}]   ;;  %s12064_s10 = inlined_call_operand.vmem [shape: f32[1,128], index: 10, kind: input, shape index: {}]   ;;  %s12065_s11 = inlined_call_operand.hbm [shape: f32[2,1,128], index: 11, kind: output, shape index: {}]  }
   0x1   :  { %12074 = sst [smem:[#allocation64_spill]] %s12054_s0 }
   0x2   :  { %16 = vsyncpa [#allocation6], 0 }
   0x3   :  { %18 = vsyncpa [#allocation6 + $0x1], 0  ;;  %s9604_s17 = smov 0   ;;  %s9606_s18 = smov 0  }
   0x4   :  { %s9608_s19 = smov 0   ;;  %s9610_s20 = smov 0  }
   0x5 LB: > { %s9625_s21 = sadd.s32 4294967295, %s9537_s20   ;;  %s7280_s22 = sadd.s32 4294967294, %s9537_s20   ;;  %s9537_s20 = sphi %s9610_s20, %s12227_s20   ;;  %s9533_s19 = sphi %s9608_s19, %s12226_s19   ;;  %s9529_s18 = sphi %s9606_s18, %s12225_s18   ;;  %s9525_s17 = sphi %s9604_s17, %s12224_s17  }
   0x6   : > { %s9629_s23 = sadd.s32 1, %s9537_s20   ;;  %s267_s24 = sadd.s32 1, %s9533_s19 }
   0x7   : > { %s264_s25 = ssub.s32 %s9537_s20, %s9629_s23  ;;  %p277_p0 = scmp.ne.s32.totalorder %s9533_s19, %s9529_s18 }
   0x8   : > { %p265_p1 = scmp.eq.s32.totalorder %s264_s25, 0  ;;  %p278_p2 = scmp.eq.s32.totalorder %s9625_s21, 1 }
   0x9   : > { %p283_p3 = scmp.ne.s32.totalorder %s9529_s18, %s9525_s17  ;;  %p284_p4 = scmp.eq.s32.totalorder %s7280_s22, 1 }
   0xa   : > { %s9640_s26 = scalar_select %p265_p1, %s9533_s19, %s267_s24  }
   0xb   : > { %p9642_p5 = por %p278_p2, %p277_p0  ;;  %p9646_p6 = por %p284_p4, %p283_p3 }
   0xc   : > { %p7283_p7 = scmp.ge.s32.totalorder %s9537_s20, 1  ;;  %p340_p8 = scmp.lt.s32.totalorder %s9537_s20, 3 }
   0xe   : > { %p341_p9 = pnand %p7283_p7, %p340_p8 }
  0x10   : > { %344 = sbr.rel (%p341_p9) target bundleno = 1754 (0x6da), region = 64 }
  0x17   : > { %v9418_v0 = vld [vmem:[%s12055_s1] sm:$0xff]   ;;  %v12068_v1 = vmov 0.0   ;;  %v9419_v2 = vld [vmem:[%s12055_s1 + $0x8] sm:$0xff]   ;;  %vm555_vm0 = vcmask 1044480   ;;  %p379_p10 = scmp.lt.s32.totalorder %s9625_s21, 1  ;;  %v9420_v3 = vld [vmem:[%s12055_s1 + $0x10] sm:$0xff]  }
  0x18   : > { %8042 = vmatprep.subr.bf16.mxu0 %v12068_v1  ;;  %8104 = vmatprep.subr.bf16.mxu1 %v12068_v1  ;;  %vm556_vm1 = vcmask 1045504   ;;  %v9540_v4 = vmov 65535   ;;  %vm9541_vm2 = vmmov 0   ;;  %v9421_v6 = vld [vmem:[%s12055_s1 + $0x18] sm:$0xff]   ;;  %v9422_v7 = vld [vmem:[%s12055_s1 + $0x20] sm:$0x3f]  }
  0x19   : > { %8043 = vmatpush3.bf16.msra.mxu0 %v9418_v0  ;;  %8105 = vmatpush3.bf16.msra.mxu1 %v9418_v0  ;;  %s380_s16 = scalar_select %p379_p10, %s9625_s21, 1  ;;  %v557_v5 = vsel %vm555_vm0, 4294967295, %v9540_v4  ;;  %vm515_vm3 = vcmask 613376   ;;  %v1708_v38 = vld [vmem:[%s12057_s3 + $0x10] sm:$0xff]  ;;  %v1709_v39 = vld [vmem:[%s12057_s3 + $0x18] sm:$0xff]  ;;  %v12066_v40 = vmov 0.0|0.0  }
  0x1a   : > { %8044 = vmatprep.subr.bf16.mxu0 %v12068_v1  ;;  %8106 = vmatprep.subr.bf16.mxu1 %v12068_v1  ;;  %v558_v8 = vsel %vm556_vm1, %v557_v5, 0  ;;  %s12077_s0 = sld [smem:[#allocation64_spill]]  ;;  %v9204_v41 = vpack.c.bf16 %v1709_v39, %v1708_v38  ;;  %v1988_v4 = vld [vmem:[%s12057_s3 + $0x38] sm:$0xff]  ;;  %vm1637_vm4 = vcmask 130048   ;;  %vm7046_vm5 = vcmask 982016   ;;  %s377_s15 = sand.u32 1, %s9529_s18  }
  0x1b   : > { %8052 = vmatprep.mubr.msk.bf16.mxu0 %vm9541_vm2, %v12068_v1  ;;  %8114 = vmatprep.mubr.msk.bf16.mxu1 %vm9541_vm2, %v12068_v1  ;;  %s9374_s22 = smul.u32 416, %s380_s16  ;;  %v560_v9 = vand.u32 %v9422_v7, %v558_v8  ;;  %vm7137_vm6 = vcmask 1043456   ;;  %vm7133_vm7 = vcmask 687104   ;;  %s7624_s24 = sshll.u32 %s9625_s21, 4 }
  0x1c   : > { %s378_s25 = scalar_lea.vmem [#allocation5], %s377_s15  ;;  %s12012_s13 = scalar_lea.hbm %s12065_s11, %s7624_s24 }
  0x1d   : > { %8045 = vmatpush3.bf16.msra.mxu0 %v9419_v2  ;;  %8107 = vmatpush3.bf16.msra.mxu1 %v9419_v2  ;;  %s7225_s29 = sshll.u32 %s378_s25, 4  ;;  %s9543_s21 = smov [#allocation5]   ;;  %s12014_s29 = int_to_ptr.vmem [resolvable:$true] %s7225_s29 }
  0x1e   : > { %8046 = vmatprep.subr.bf16.mxu0 %v12068_v1  ;;  %8108 = vmatprep.subr.bf16.mxu1 %v12068_v1  ;;  %s9475_s16 = scalar_lea.vmem %s12014_s29, 16 }
  0x1f   : > { %p9476_p11 = scmp.ne.s32.totalorder %s12014_s29, %s9475_s16 }
  0x20   : > { %s9684_s14 = scalar_lea.vmem %s12077_s0, %s9374_s22  ;;  %s9479_s22 = sshll.u32 %s9543_s21, 4  ;;  %s9480_s22 = int_to_ptr.vmem [resolvable:$false] %s9479_s22 }
  0x21   : > { %8047 = vmatpush3.bf16.msra.mxu0 %v9420_v3  ;;  %8109 = vmatpush3.bf16.msra.mxu1 %v9420_v3  ;;  %v9423_v10 = vld [vmem:[%s9684_s14] sm:$0xff]   ;;  %v9424_v11 = vld [vmem:[%s9684_s14 + $0x68] sm:$0xff]   ;;  %v9426_v13 = vld [vmem:[%s9684_s14 + $0x70] sm:$0xff]   ;;  %p9477_p12 = pnand %p9476_p11, %p9642_p5  ;;  %s9481_s0 = scalar_lea.vmem %s9480_s22, 32 }
  0x22   : > { %8048 = vmatprep.subr.bf16.mxu0 %v12068_v1  ;;  %8110 = vmatprep.subr.bf16.mxu1 %v12068_v1  ;;  %v9425_v12 = vld [vmem:[%s9684_s14 + $0x8] sm:$0xff]   ;;  %v9427_v14 = vld [vmem:[%s9684_s14 + $0x10] sm:$0xff]   ;;  %v9428_v15 = vld [vmem:[%s9684_s14 + $0x78] sm:$0xff]   ;;  %p9482_p0 = scmp.lt.s32.totalorder %s12014_s29, %s9480_s22  ;;  %p9483_p1 = scmp.lt.s32.totalorder %s9481_s0, %s9475_s16 }
  0x23   : > { %v9429_v16 = vld [vmem:[%s9684_s14 + $0x18] sm:$0xff]   ;;  %v9430_v17 = vld [vmem:[%s9684_s14 + $0x80] sm:$0xff]   ;;  %v9432_v19 = vld [vmem:[%s9684_s14 + $0x88] sm:$0xff]   ;;  %p9478_p13 = pneg %p9477_p12 }
  0x24   : > { %v9431_v18 = vld [vmem:[%s9684_s14 + $0x20] sm:$0xff]   ;;  %v9433_v20 = vld [vmem:[%s9684_s14 + $0x28] sm:$0xff]   ;;  %v9434_v21 = vld [vmem:[%s9684_s14 + $0x90] sm:$0xff]   ;;  %p9484_p2 = por %p9483_p1, %p9482_p0 }
  0x25   : > { %8049 = vmatpush3.bf16.msra.mxu0 %v9421_v6  ;;  %8111 = vmatpush3.bf16.msra.mxu1 %v9421_v6  ;;  %v9435_v22 = vld [vmem:[%s9684_s14 + $0x30] sm:$0xff]   ;;  %v9436_v23 = vld [vmem:[%s9684_s14 + $0x98] sm:$0xff]   ;;  %v9438_v25 = vld [vmem:[%s9684_s14 + $0xa0] sm:$0xff]  }
  0x26   : > { %8050 = vmatprep.subr.bf16.mxu0 %v12068_v1  ;;  %8112 = vmatprep.subr.bf16.mxu1 %v12068_v1  ;;  %v9437_v24 = vld [vmem:[%s9684_s14 + $0x38] sm:$0xff]   ;;  %v9439_v26 = vld [vmem:[%s9684_s14 + $0x40] sm:$0xff]   ;;  %v9440_v27 = vld [vmem:[%s9684_s14 + $0xa8] sm:$0xff]   ;;  %p9485_p3 = pnand %p9484_p2, %p9478_p13 }
  0x27   : > { %v9441_v28 = vld [vmem:[%s9684_s14 + $0x48] sm:$0xff]   ;;  %v9442_v29 = vld [vmem:[%s9684_s14 + $0xb0] sm:$0xff]   ;;  %v9444_v31 = vld [vmem:[%s9684_s14 + $0xb8] sm:$0xff]  }
  0x28   : > { %v9443_v30 = vld [vmem:[%s9684_s14 + $0x50] sm:$0xff]   ;;  %v9445_v32 = vld [vmem:[%s9684_s14 + $0x58] sm:$0xff]   ;;  %v9446_v33 = vld [vmem:[%s9684_s14 + $0xc0] sm:$0xff]  }
  0x29   : > { %8051 = vmatpush3.bf16.msra.mxu0 %v560_v9  ;;  %8113 = vmatpush3.bf16.msra.mxu1 %v560_v9  ;;  %v9447_v34 = vld [vmem:[%s9684_s14 + $0x60] sm:$0xff]   ;;  %v9448_v35 = vld [vmem:[%s9684_s14 + $0xc8] sm:$0xff]   ;;  %v9449_v36 = vld [vmem:[%s9684_s14 + $0xd0] sm:$0xff]  }
  0x2a   : > { %8166 = vmatprep.subr.bf16.mxu0 %v12068_v1  ;;  %8228 = vmatprep.subr.bf16.mxu1 %v12068_v1  ;;  %v9450_v37 = vld [vmem:[%s9684_s14 + $0x138] sm:$0xff]   ;;  %v9452_v43 = vld [vmem:[%s9684_s14 + $0x140] sm:$0xff]   ;;  %v9454_v45 = vld [vmem:[%s9684_s14 + $0x148] sm:$0xff]  }
  0x2b   : > { %v9451_v42 = vld [vmem:[%s9684_s14 + $0xd8] sm:$0xff]   ;;  %v9453_v44 = vld [vmem:[%s9684_s14 + $0xe0] sm:$0xff]   ;;  %v9455_v46 = vld [vmem:[%s9684_s14 + $0xe8] sm:$0xff]  }
  0x2c   : > { %8053 = vmatmul.mubr.msk.bf16.vlgmr.msra.gmra.mrb[0].mxu0 %vm515_vm3, %v9423_v10  ;;  %8115 = vmatmul.mubr.msk.bf16.vlgmr.msra.gmra.mrb[0].mxu1 %vm515_vm3, %v9424_v11  ;;  %v9456_v47 = vld [vmem:[%s9684_s14 + $0x150] sm:$0xff]   ;;  %v9458_v49 = vld [vmem:[%s9684_s14 + $0x158] sm:$0xff]   ;;  %v9460_v51 = vld [vmem:[%s9684_s14 + $0x160] sm:$0xff]  }
  0x2d   : > { %8167 = vmatpush3.bf16.msra.mxu0 %v9418_v0  ;;  %8229 = vmatpush3.bf16.msra.mxu1 %v9418_v0  ;;  %v9457_v48 = vld [vmem:[%s9684_s14 + $0xf0] sm:$0xff]   ;;  %v9459_v50 = vld [vmem:[%s9684_s14 + $0xf8] sm:$0xff]   ;;  %v9461_v52 = vld [vmem:[%s9684_s14 + $0x100] sm:$0xff]  }
  0x2e   : > { %8056 = vmatprep.mubr.msk.bf16.mxu0 %vm9541_vm2, %v12068_v1  ;;  %8118 = vmatprep.mubr.msk.bf16.mxu1 %vm9541_vm2, %v12068_v1  ;;  %v9462_v53 = vld [vmem:[%s9684_s14 + $0x168] sm:$0xff]   ;;  %v9464_v55 = vld [vmem:[%s9684_s14 + $0x170] sm:$0xff]   ;;  %v9466_v57 = vld [vmem:[%s9684_s14 + $0x178] sm:$0xff]  }
  0x2f   : > { %8168 = vmatprep.subr.bf16.mxu0 %v12068_v1  ;;  %8230 = vmatprep.subr.bf16.mxu1 %v12068_v1  ;;  %v9463_v54 = vld [vmem:[%s9684_s14 + $0x108] sm:$0xff]   ;;  %v9465_v56 = vld [vmem:[%s9684_s14 + $0x110] sm:$0xff]   ;;  %v9467_v58 = vld [vmem:[%s9684_s14 + $0x118] sm:$0xff]  }
  0x30   : > { %v9468_v59 = vld [vmem:[%s9684_s14 + $0x180] sm:$0xff]   ;;  %v9470_v61 = vld [vmem:[%s9684_s14 + $0x188] sm:$0xff]   ;;  %v9472_v63 = vld [vmem:[%s9684_s14 + $0x190] sm:$0xff]  }
  0x31   : > { %8169 = vmatpush3.bf16.msra.mxu0 %v9419_v2  ;;  %8231 = vmatpush3.bf16.msra.mxu1 %v9419_v2  ;;  %v9469_v60 = vld [vmem:[%s9684_s14 + $0x120] sm:$0xff]   ;;  %v9471_v62 = vld [vmem:[%s9684_s14 + $0x128] sm:$0xff]   ;;  %v9473_v0 = vld [vmem:[%s9684_s14 + $0x130] sm:$0xff]  }
  0x32   : > { %8170 = vmatprep.subr.bf16.mxu0 %v12068_v1  ;;  %8232 = vmatprep.subr.bf16.mxu1 %v12068_v1  ;;  %v9474_v2 = vld [vmem:[%s9684_s14 + $0x198] sm:$0xff]   ;;  %s7213_s14 = scalar_lea.sflag [#allocation6], %s377_s15 }
  0x34   : > { %8057 = vmatmul.mubr.msk.bf16.gmra.mrb[4].mxu0 %vm515_vm3, %v9425_v12  ;;  %8119 = vmatmul.mubr.msk.bf16.gmra.mrb[4].mxu1 %vm515_vm3, %v9426_v13 }
  0x35   : > { %8060 = vmatprep.mubr.msk.bf16.mxu0 %vm9541_vm2, %v12068_v1  ;;  %8122 = vmatprep.mubr.msk.bf16.mxu1 %vm9541_vm2, %v12068_v1 }
  0x36   : > { %8171 = vmatpush3.bf16.msra.mxu0 %v9420_v3  ;;  %8233 = vmatpush3.bf16.msra.mxu1 %v9420_v3  ;;  %v1987_v3 = vld [vmem:[%s12057_s3 + $0x30] sm:$0xff] }
  0x37   : > { %8172 = vmatprep.subr.bf16.mxu0 %v12068_v1  ;;  %8234 = vmatprep.subr.bf16.mxu1 %v12068_v1  ;;  %v9207_v5 = vpack.c.bf16 %v1988_v4, %v1987_v3 }
  0x3a   : > { %8173 = vmatpush3.bf16.msra.mxu0 %v9421_v6  ;;  %8235 = vmatpush3.bf16.msra.mxu1 %v9421_v6 }
  0x3b   : > { %8174 = vmatprep.subr.bf16.mxu0 %v12068_v1  ;;  %8236 = vmatprep.subr.bf16.mxu1 %v12068_v1 }
  0x3c   : > { %8061 = vmatmul.mubr.msk.bf16.gmra.mrb[8].mxu0 %vm515_vm3, %v9427_v14  ;;  %8123 = vmatmul.mubr.msk.bf16.gmra.mrb[8].mxu1 %vm515_vm3, %v9428_v15 }
  0x3d   : > { %8064 = vmatprep.mubr.msk.bf16.mxu0 %vm9541_vm2, %v12068_v1  ;;  %8126 = vmatprep.mubr.msk.bf16.mxu1 %vm9541_vm2, %v12068_v1 }
  0x3e   : > { %8175 = vmatpush3.bf16.msra.mxu0 %v560_v9  ;;  %8237 = vmatpush3.bf16.msra.mxu1 %v560_v9 }
  0x3f   : > { %9203 = vmatprep.subr.bf16.mxu0 %v12066_v40  ;;  %9206 = vmatprep.subr.bf16.mxu1 %v12066_v40 }
  0x44   : > { %8065 = vmatmul.mubr.msk.bf16.gmra.mrb[12].mxu0 %vm515_vm3, %v9429_v16  ;;  %8127 = vmatmul.mubr.msk.bf16.gmra.mrb[12].mxu1 %vm515_vm3, %v9430_v17 }
  0x45   : > { %8068 = vmatprep.mubr.msk.bf16.mxu0 %vm9541_vm2, %v12068_v1  ;;  %8130 = vmatprep.mubr.msk.bf16.mxu1 %vm9541_vm2, %v12068_v1 }
  0x4c   : > { %8069 = vmatmul.mubr.msk.bf16.gmra.mrb[16].mxu0 %vm515_vm3, %v9431_v18  ;;  %8131 = vmatmul.mubr.msk.bf16.gmra.mrb[16].mxu1 %vm515_vm3, %v9432_v19 }
  0x4d   : > { %8072 = vmatprep.mubr.msk.bf16.mxu0 %vm9541_vm2, %v12068_v1  ;;  %8134 = vmatprep.mubr.msk.bf16.mxu1 %vm9541_vm2, %v12068_v1 }
  0x54   : > { %8073 = vmatmul.mubr.msk.bf16.gmra.mrb[20].mxu0 %vm515_vm3, %v9433_v20  ;;  %8135 = vmatmul.mubr.msk.bf16.gmra.mrb[20].mxu1 %vm515_vm3, %v9434_v21 }
  0x55   : > { %8076 = vmatprep.mubr.msk.bf16.mxu0 %vm9541_vm2, %v12068_v1  ;;  %8138 = vmatprep.mubr.msk.bf16.mxu1 %vm9541_vm2, %v12068_v1 }
  0x5c   : > { %8077 = vmatmul.mubr.msk.bf16.gmra.mrb[24].mxu0 %vm515_vm3, %v9435_v22  ;;  %8139 = vmatmul.mubr.msk.bf16.gmra.mrb[24].mxu1 %vm515_vm3, %v9436_v23 }
  0x5d   : > { %8080 = vmatprep.mubr.msk.bf16.mxu0 %vm9541_vm2, %v12068_v1  ;;  %8142 = vmatprep.mubr.msk.bf16.mxu1 %vm9541_vm2, %v12068_v1 }
  0x64   : > { %8081 = vmatmul.mubr.msk.bf16.gmra.mrb[28].mxu0 %vm515_vm3, %v9437_v24  ;;  %8143 = vmatmul.mubr.msk.bf16.gmra.mrb[28].mxu1 %vm515_vm3, %v9438_v25 }
  0x65   : > { %8084 = vmatprep.mubr.msk.bf16.mxu0 %vm9541_vm2, %v12068_v1  ;;  %8146 = vmatprep.mubr.msk.bf16.mxu1 %vm9541_vm2, %v12068_v1 }
  0x6c   : > { %8085 = vmatmul.mubr.msk.bf16.gmra.mrb[32].mxu0 %vm515_vm3, %v9439_v26  ;;  %8147 = vmatmul.mubr.msk.bf16.gmra.mrb[32].mxu1 %vm515_vm3, %v9440_v27 }
  0x6d   : > { %8088 = vmatprep.mubr.msk.bf16.mxu0 %vm9541_vm2, %v12068_v1  ;;  %8150 = vmatprep.mubr.msk.bf16.mxu1 %vm9541_vm2, %v12068_v1 }
  0x74   : > { %8089 = vmatmul.mubr.msk.bf16.gmra.mrb[36].mxu0 %vm515_vm3, %v9441_v28  ;;  %8151 = vmatmul.mubr.msk.bf16.gmra.mrb[36].mxu1 %vm515_vm3, %v9442_v29 }
  0x75   : > { %8092 = vmatprep.mubr.msk.bf16.mxu0 %vm9541_vm2, %v12068_v1  ;;  %8154 = vmatprep.mubr.msk.bf16.mxu1 %vm9541_vm2, %v12068_v1 }
  0x7c   : > { %8093 = vmatmul.mubr.msk.bf16.gmra.mrb[40].mxu0 %vm515_vm3, %v9443_v30  ;;  %8155 = vmatmul.mubr.msk.bf16.gmra.mrb[40].mxu1 %vm515_vm3, %v9444_v31 }
  0x7d   : > { %8096 = vmatprep.mubr.msk.bf16.mxu0 %vm9541_vm2, %v12068_v1  ;;  %8158 = vmatprep.mubr.msk.bf16.mxu1 %vm9541_vm2, %v12068_v1 }
  0x84   : > { %8097 = vmatmul.mubr.msk.bf16.gmra.mrb[44].mxu0 %vm515_vm3, %v9445_v32  ;;  %8159 = vmatmul.mubr.msk.bf16.gmra.mrb[44].mxu1 %vm515_vm3, %v9446_v33 }
  0x85   : > { %8100 = vmatprep.mubr.msk.bf16.mxu0 %vm9541_vm2, %v12068_v1  ;;  %8162 = vmatprep.mubr.msk.bf16.mxu1 %vm9541_vm2, %v12068_v1 }
  0x8c   : > { %8101 = vmatmul.mubr.msk.bf16.gmra.mrb[48].mxu0 %vm515_vm3, %v9447_v34  ;;  %8163 = vmatmul.mubr.msk.bf16.gmra.mrb[48].mxu1 %vm515_vm3, %v9448_v35 }
  0x8d   : > { %8176 = vmatprep.mubr.msk.bf16.mxu0 %vm9541_vm2, %v12068_v1  ;;  %8238 = vmatprep.mubr.msk.bf16.mxu1 %vm9541_vm2, %v12068_v1 }
  0x94   : > { %8177 = vmatmul.mubr.msk.bf16.vlgmr.msra.gmra.mrb[52].mxu0 %vm515_vm3, %v9449_v36  ;;  %8239 = vmatmul.mubr.msk.bf16.vlgmr.msra.gmra.mrb[52].mxu1 %vm515_vm3, %v9450_v37 }
  0x95   : > { %8180 = vmatprep.mubr.msk.bf16.mxu0 %vm9541_vm2, %v12068_v1  ;;  %8242 = vmatprep.mubr.msk.bf16.mxu1 %vm9541_vm2, %v12068_v1 }
  0x96   : > { %9205 = vmatpush3.bf16.msra.mxu0 %v9204_v41  ;;  %9208 = vmatpush3.bf16.msra.mxu1 %v9207_v5 }
  0x97   : > { %9209 = vmatprep.subr.bf16.mxu0 %v12066_v40  ;;  %9212 = vmatprep.subr.bf16.mxu1 %v12066_v40 }
  0x9c   : > { %8181 = vmatmul.mubr.msk.bf16.gmra.mrb[56].mxu0 %vm515_vm3, %v9451_v42  ;;  %8243 = vmatmul.mubr.msk.bf16.gmra.mrb[56].mxu1 %vm515_vm3, %v9452_v43 }
  0x9d   : > { %8184 = vmatprep.mubr.msk.bf16.mxu0 %vm9541_vm2, %v12068_v1  ;;  %8246 = vmatprep.mubr.msk.bf16.mxu1 %vm9541_vm2, %v12068_v1 }
  0xa4   : > { %8185 = vmatmul.mubr.msk.bf16.gmra.mrb[60].mxu0 %vm515_vm3, %v9453_v44  ;;  %8247 = vmatmul.mubr.msk.bf16.gmra.mrb[60].mxu1 %vm515_vm3, %v9454_v45 }
  0xa5   : > { %8188 = vmatprep.mubr.msk.bf16.mxu0 %vm9541_vm2, %v12068_v1  ;;  %8250 = vmatprep.mubr.msk.bf16.mxu1 %vm9541_vm2, %v12068_v1 }
  0xac   : > { %8189 = vmatmul.mubr.msk.bf16.gmra.mrb[64].mxu0 %vm515_vm3, %v9455_v46  ;;  %8251 = vmatmul.mubr.msk.bf16.gmra.mrb[64].mxu1 %vm515_vm3, %v9456_v47 }
  0xad   : > { %8192 = vmatprep.mubr.msk.bf16.mxu0 %vm9541_vm2, %v12068_v1  ;;  %8254 = vmatprep.mubr.msk.bf16.mxu1 %vm9541_vm2, %v12068_v1 }
  0xb4   : > { %8193 = vmatmul.mubr.msk.bf16.gmra.mrb[68].mxu0 %vm515_vm3, %v9457_v48  ;;  %8255 = vmatmul.mubr.msk.bf16.gmra.mrb[68].mxu1 %vm515_vm3, %v9458_v49 }
  0xb5   : > { %8196 = vmatprep.mubr.msk.bf16.mxu0 %vm9541_vm2, %v12068_v1  ;;  %8258 = vmatprep.mubr.msk.bf16.mxu1 %vm9541_vm2, %v12068_v1 }
  0xbc   : > { %8197 = vmatmul.mubr.msk.bf16.gmra.mrb[72].mxu0 %vm515_vm3, %v9459_v50  ;;  %8259 = vmatmul.mubr.msk.bf16.gmra.mrb[72].mxu1 %vm515_vm3, %v9460_v51 }
  0xbd   : > { %8200 = vmatprep.mubr.msk.bf16.mxu0 %vm9541_vm2, %v12068_v1  ;;  %8262 = vmatprep.mubr.msk.bf16.mxu1 %vm9541_vm2, %v12068_v1 }
  0xc4   : > { %8201 = vmatmul.mubr.msk.bf16.gmra.mrb[76].mxu0 %vm515_vm3, %v9461_v52  ;;  %8263 = vmatmul.mubr.msk.bf16.gmra.mrb[76].mxu1 %vm515_vm3, %v9462_v53 }
  0xc5   : > { %8204 = vmatprep.mubr.msk.bf16.mxu0 %vm9541_vm2, %v12068_v1  ;;  %8266 = vmatprep.mubr.msk.bf16.mxu1 %vm9541_vm2, %v12068_v1 }
  0xcc   : > { %8205 = vmatmul.mubr.msk.bf16.gmra.mrb[80].mxu0 %vm515_vm3, %v9463_v54  ;;  %8267 = vmatmul.mubr.msk.bf16.gmra.mrb[80].mxu1 %vm515_vm3, %v9464_v55 }
  0xcd   : > { %8208 = vmatprep.mubr.msk.bf16.mxu0 %vm9541_vm2, %v12068_v1  ;;  %8270 = vmatprep.mubr.msk.bf16.mxu1 %vm9541_vm2, %v12068_v1 }
  0xd4   : > { %8209 = vmatmul.mubr.msk.bf16.gmra.mrb[84].mxu0 %vm515_vm3, %v9465_v56  ;;  %8271 = vmatmul.mubr.msk.bf16.gmra.mrb[84].mxu1 %vm515_vm3, %v9466_v57 }
  0xd5   : > { %8212 = vmatprep.mubr.msk.bf16.mxu0 %vm9541_vm2, %v12068_v1  ;;  %8274 = vmatprep.mubr.msk.bf16.mxu1 %vm9541_vm2, %v12068_v1 }
  0xdc   : > { %8213 = vmatmul.mubr.msk.bf16.gmra.mrb[88].mxu0 %vm515_vm3, %v9467_v58  ;;  %8275 = vmatmul.mubr.msk.bf16.gmra.mrb[88].mxu1 %vm515_vm3, %v9468_v59 }
  0xdd   : > { %8216 = vmatprep.mubr.msk.bf16.mxu0 %vm9541_vm2, %v12068_v1  ;;  %8278 = vmatprep.mubr.msk.bf16.mxu1 %vm9541_vm2, %v12068_v1 }
  0xe4   : > { %8217 = vmatmul.mubr.msk.bf16.gmra.mrb[92].mxu0 %vm515_vm3, %v9469_v60  ;;  %8279 = vmatmul.mubr.msk.bf16.gmra.mrb[92].mxu1 %vm515_vm3, %v9470_v61 }
  0xe5   : > { %8220 = vmatprep.mubr.msk.bf16.mxu0 %vm9541_vm2, %v12068_v1  ;;  %8282 = vmatprep.mubr.msk.bf16.mxu1 %vm9541_vm2, %v12068_v1 }
  0xec   : > { %8221 = vmatmul.mubr.msk.bf16.gmra.mrb[96].mxu0 %vm515_vm3, %v9471_v62  ;;  %8283 = vmatmul.mubr.msk.bf16.gmra.mrb[96].mxu1 %vm515_vm3, %v9472_v63 }
  0xed   : > { %8224 = vmatprep.mubr.msk.bf16.mxu0 %vm9541_vm2, %v12068_v1  ;;  %8286 = vmatprep.mubr.msk.bf16.mxu1 %vm9541_vm2, %v12068_v1 }
  0xf4   : > { %8225 = vmatmul.mubr.msk.bf16.gmra.mrb[100].mxu0 %vm515_vm3, %v9473_v0  ;;  %8287 = vmatmul.mubr.msk.bf16.gmra.mrb[100].mxu1 %vm515_vm3, %v9474_v2 }
  0xf5   : > { %8294 = vmatprep.mubr.msk.f32.mxu0 %vm9541_vm2, %v12068_v1  ;;  %8361 = vmatprep.mubr.msk.f32.mxu1 %vm9541_vm2, %v12068_v1 }
  0xff   : > { %v9922_v6 = vpop.f32.mrb[0].mxu0  ;;  %v9924_v7 = vpop.f32.mrb[0].mxu1 }
 0x100   : > { %v8054_v9 = vpop.f32.mrb[1].mxu0  ;;  %v8116_v10 = vpop.f32.mrb[1].mxu1 }
 0x101   : > { %v9928_v11 = vpop.f32.mrb[2].mxu0  ;;  %v9930_v12 = vpop.f32.mrb[2].mxu1 }
 0x102   : > { %v8055_v14 = vpop.f32.mrb[3].mxu0  ;;  %v8117_v15 = vpop.f32.mrb[3].mxu1 }
 0x107   : > { %v9934_v16 = vpop.f32.mrb[4].mxu0  ;;  %v9936_v17 = vpop.f32.mrb[4].mxu1 }
 0x108   : > { %v8058_v19 = vpop.f32.mrb[5].mxu0  ;;  %v8120_v20 = vpop.f32.mrb[5].mxu1 }
 0x109   : > { %v9940_v21 = vpop.f32.mrb[6].mxu0  ;;  %v9942_v22 = vpop.f32.mrb[6].mxu1 }
 0x10a   : > { %v8059_v24 = vpop.f32.mrb[7].mxu0  ;;  %v8121_v25 = vpop.f32.mrb[7].mxu1 }
 0x10f   : > { %v9946_v26 = vpop.f32.mrb[8].mxu0  ;;  %v9948_v27 = vpop.f32.mrb[8].mxu1 }
 0x110   : > { %v8062_v29 = vpop.f32.mrb[9].mxu0  ;;  %v8124_v30 = vpop.f32.mrb[9].mxu1 }
 0x111   : > { %v9952_v31 = vpop.f32.mrb[10].mxu0  ;;  %v9954_v32 = vpop.f32.mrb[10].mxu1 }
 0x112   : > { %v8063_v34 = vpop.f32.mrb[11].mxu0  ;;  %v8125_v35 = vpop.f32.mrb[11].mxu1 }
 0x117   : > { %v9958_v36 = vpop.f32.mrb[12].mxu0  ;;  %v9960_v37 = vpop.f32.mrb[12].mxu1 }
 0x118   : > { %v8066_v39 = vpop.f32.mrb[13].mxu0  ;;  %v8128_v41 = vpop.f32.mrb[13].mxu1 }
 0x119   : > { %v9964_v42 = vpop.f32.mrb[14].mxu0  ;;  %v9966_v43 = vpop.f32.mrb[14].mxu1 }
 0x11a   : > { %v8067_v45 = vpop.f32.mrb[15].mxu0  ;;  %v8129_v46 = vpop.f32.mrb[15].mxu1 }
 0x11f   : > { %v9970_v47 = vpop.f32.mrb[16].mxu0  ;;  %v9972_v48 = vpop.f32.mrb[16].mxu1 }
 0x120   : > { %v8070_v50 = vpop.f32.mrb[17].mxu0  ;;  %v8132_v51 = vpop.f32.mrb[17].mxu1 }
 0x121   : > { %v9976_v52 = vpop.f32.mrb[18].mxu0  ;;  %v9978_v53 = vpop.f32.mrb[18].mxu1 }
 0x122   : > { %v8071_v55 = vpop.f32.mrb[19].mxu0  ;;  %v8133_v56 = vpop.f32.mrb[19].mxu1 }
 0x127   : > { %v9982_v57 = vpop.f32.mrb[20].mxu0  ;;  %v9984_v58 = vpop.f32.mrb[20].mxu1 }
 0x128   : > { %v8074_v60 = vpop.f32.mrb[21].mxu0  ;;  %v8136_v61 = vpop.f32.mrb[21].mxu1 }
 0x129   : > { %v9988_v62 = vpop.f32.mrb[22].mxu0  ;;  %v9990_v63 = vpop.f32.mrb[22].mxu1 }
 0x12a   : > { %v8075_v2 = vpop.f32.mrb[23].mxu0  ;;  %v8137_v3 = vpop.f32.mrb[23].mxu1 }
 0x12f   : > { %v9994_v4 = vpop.f32.mrb[24].mxu0  ;;  %v9996_v5 = vpop.f32.mrb[24].mxu1 }
 0x130   : > { %v8078_v10 = vpop.f32.mrb[25].mxu0  ;;  %v8140_v14 = vpop.f32.mrb[25].mxu1 }
 0x131   : > { %v10000_v15 = vpop.f32.mrb[26].mxu0  ;;  %v10002_v19 = vpop.f32.mrb[26].mxu1 }
 0x132   : > { %v8079_v24 = vpop.f32.mrb[27].mxu0  ;;  %v8141_v25 = vpop.f32.mrb[27].mxu1 }
 0x137   : > { %v10006_v29 = vpop.f32.mrb[28].mxu0  ;;  %v10008_v30 = vpop.f32.mrb[28].mxu1 }
 0x138   : > { %v8082_v35 = vpop.f32.mrb[29].mxu0  ;;  %v8144_v39 = vpop.f32.mrb[29].mxu1 }
 0x139   : > { %v10012_v41 = vpop.f32.mrb[30].mxu0  ;;  %v10014_v45 = vpop.f32.mrb[30].mxu1 }
 0x13a   : > { %v8083_v50 = vpop.f32.mrb[31].mxu0  ;;  %v8145_v51 = vpop.f32.mrb[31].mxu1 }
 0x13f   : > { %v10018_v55 = vpop.f32.mrb[32].mxu0  ;;  %v10020_v56 = vpop.f32.mrb[32].mxu1 }
 0x140   : > { %v8086_v61 = vpop.f32.mrb[33].mxu0  ;;  %v8148_v2 = vpop.f32.mrb[33].mxu1 }
 0x141   : > { %v10024_v3 = vpop.f32.mrb[34].mxu0  ;;  %v10026_v10 = vpop.f32.mrb[34].mxu1 }
 0x142   : > { %v8087_v24 = vpop.f32.mrb[35].mxu0  ;;  %v8149_v25 = vpop.f32.mrb[35].mxu1 }
 0x147   : > { %v10030_v35 = vpop.f32.mrb[36].mxu0  ;;  %v10032_v39 = vpop.f32.mrb[36].mxu1 }
 0x148   : > { %v8090_v51 = vpop.f32.mrb[37].mxu0  ;;  %v8152_v60 = vpop.f32.mrb[37].mxu1 }
 0x149   : > { %v10036_v61 = vpop.f32.mrb[38].mxu0  ;;  %v10038_v2 = vpop.f32.mrb[38].mxu1 }
 0x14a   : > { %v8091_v34 = vpop.f32.mrb[39].mxu0  ;;  %v8153_v14 = vpop.f32.mrb[39].mxu1 }
 0x14f   : > { %v10042_v24 = vpop.f32.mrb[40].mxu0  ;;  %v10044_v25 = vpop.f32.mrb[40].mxu1 }
 0x150   : > { %v8094_v9 = vpop.f32.mrb[41].mxu0  ;;  %v8156_v50 = vpop.f32.mrb[41].mxu1 }
 0x151   : > { %v10048_v51 = vpop.f32.mrb[42].mxu0  ;;  %v10050_v60 = vpop.f32.mrb[42].mxu1 }
 0x152   : > { %v8095_v59 = vpop.f32.mrb[43].mxu0  ;;  %v8157_v46 = vpop.f32.mrb[43].mxu1 }
 0x157   : > { %v10054_v34 = vpop.f32.mrb[44].mxu0  ;;  %v10056_v14 = vpop.f32.mrb[44].mxu1 }
 0x158   : > { %v8098_v49 = vpop.f32.mrb[45].mxu0  ;;  %v8160_v20 = vpop.f32.mrb[45].mxu1 }
 0x159   : > { %v10060_v9 = vpop.f32.mrb[46].mxu0  ;;  %v10062_v50 = vpop.f32.mrb[46].mxu1 }
 0x15a   : > { %12078 = vst [vmem:[#allocation8_spill] sm:$0xff] %v10062_v50  ;;  %v8099_v38 = vpop.f32.mrb[47].mxu0  ;;  %v8161_v0 = vpop.f32.mrb[47].mxu1 }
 0x15b   : > { %v10075_v38 = vld [vmem:[%s12056_s2] ss:$0 sm:$0xff] }
 0x15f   : > { %v10066_v59 = vpop.f32.mrb[48].mxu0  ;;  %v10068_v46 = vpop.f32.mrb[48].mxu1 }
 0x160   : > { %12079 = vst [vmem:[#allocation9_spill] sm:$0xff] %v10066_v59  ;;  %12080 = vst [vmem:[#allocation10_spill] sm:$0xff] %v10068_v46  ;;  %v8102_v33 = vpop.f32.mrb[49].mxu0  ;;  %v8164_v54 = vpop.f32.mrb[49].mxu1 }
 0x161   : > { %v695_v49 = vpop.f32.mrb[50].mxu0  ;;  %v962_v20 = vpop.f32.mrb[50].mxu1  ;;  %v12081_v33 = vmax.f32 %v9922_v6, %v9924_v7 }
 0x162   : > { %v8103_v1 = vpop.f32.mrb[51].mxu0  ;;  %v8165_v28 = vpop.f32.mrb[51].mxu1 }
 0x167   : > { %v1130_v23 = vpop.f32.mrb[52].mxu0  ;;  %v1397_v18 = vpop.f32.mrb[52].mxu1 }
 0x168   : > { %v1526_v13 = vmax.f32 %v1130_v23, %v1397_v18  ;;  %v8178_v8 = vpop.f32.mrb[53].mxu0  ;;  %v8240_v44 = vpop.f32.mrb[53].mxu1 }
 0x169   : > { %v1133_v0 = vpop.f32.mrb[54].mxu0  ;;  %v1400_v50 = vpop.f32.mrb[54].mxu1  ;;  %v12082_v8 = vmax.f32 %v9928_v11, %v9930_v12  ;;  %v12083_v11 = vmax.f32 %v9934_v16, %v9936_v17 }
 0x16a   : > { %v1552_v54 = vmax.f32 %v12081_v33, %v1526_v13  ;;  %v1527_v49 = vmax.f32 %v1133_v0, %v1400_v50  ;;  %v8179_v20 = vpop.f32.mrb[55].mxu0  ;;  %v8241_v1 = vpop.f32.mrb[55].mxu1 }
 0x16b   : > { %v12084_v1 = vmax.f32 %v9940_v21, %v9942_v22 }
 0x16c   : > { %v1585_v28 = vadd.f32 %v10075_v38, %v1552_v54  ;;  %v1553_v18 = vmax.f32 %v12082_v8, %v1527_v49 }
 0x16e   : > { %v1611_v23 = vmax.f32 %v1585_v28, 0.0  ;;  %v1586_v44 = vadd.f32 %v10075_v38, %v1553_v18 }
 0x16f   : > { %v1138_v40 = vpop.f32.mrb[56].mxu0  ;;  %v1405_v46 = vpop.f32.mrb[56].mxu1 }
 0x170   : > { %1638 = vst.msk [vmem:[#allocation2] sm:$0xff] %vm1637_vm4, %v1611_v23  ;;  %v1612_v59 = vmax.f32 %v1586_v44, 0.0  ;;  %v1528_v6 = vmax.f32 %v1138_v40, %v1405_v46  ;;  %v8182_v7 = vpop.f32.mrb[57].mxu0  ;;  %v8244_v13 = vpop.f32.mrb[57].mxu1  ;;  %v2266_v40 = vld [vmem:[%s12057_s3 + $0x50] sm:$0xff] }
 0x171   : > { %v1141_v50 = vpop.f32.mrb[58].mxu0  ;;  %v1408_v0 = vpop.f32.mrb[58].mxu1 }
 0x172   : > { %1639 = vst.msk [vmem:[#allocation2 + $0x8] sm:$0xff] %vm1637_vm4, %v1612_v59  ;;  %v1554_v12 = vmax.f32 %v12083_v11, %v1528_v6  ;;  %v1529_v33 = vmax.f32 %v1141_v50, %v1408_v0  ;;  %v8183_v54 = vpop.f32.mrb[59].mxu0  ;;  %v8245_v49 = vpop.f32.mrb[59].mxu1  ;;  %v2267_v59 = vld [vmem:[%s12057_s3 + $0x58] sm:$0xff]  ;;  %v12085_v50 = vmax.f32 %v9946_v26, %v9948_v27  ;;  %v12087_v27 = vmax.f32 %v9952_v31, %v9954_v32 }
 0x173   : > { %v9210_v18 = vpack.c.bf16 %v2267_v59, %v2266_v40  ;;  %v12086_v54 = vmov 0.0   ;;  %v2545_v49 = vld [vmem:[%s12057_s3 + $0x70] sm:$0xff] }
 0x174   : > { %v1587_v20 = vadd.f32 %v10075_v38, %v1554_v12  ;;  %v1555_v28 = vmax.f32 %v12084_v1, %v1529_v33 }
 0x176   : > { %v1613_v46 = vmax.f32 %v1587_v20, 0.0  ;;  %v1588_v16 = vadd.f32 %v10075_v38, %v1555_v28  ;;  %v2546_v20 = vld [vmem:[%s12057_s3 + $0x78] sm:$0xff]  ;;  %v12088_v28 = vmov 0.0|0.0  }
 0x177   : > { %v1146_v17 = vpop.f32.mrb[60].mxu0  ;;  %v1413_v8 = vpop.f32.mrb[60].mxu1 }
 0x178   : > { %1640 = vst.msk [vmem:[#allocation2 + $0x10] sm:$0xff] %vm1637_vm4, %v1613_v46  ;;  %v1614_v23 = vmax.f32 %v1588_v16, 0.0  ;;  %v1530_v44 = vmax.f32 %v1146_v17, %v1413_v8  ;;  %v8186_v21 = vpop.f32.mrb[61].mxu0  ;;  %v8248_v22 = vpop.f32.mrb[61].mxu1  ;;  %v9213_v46 = vpack.c.bf16 %v2546_v20, %v2545_v49  ;;  %v12090_v49 = vmax.f32 %v9964_v42, %v9966_v43 }
 0x179   : > { %v1149_v6 = vpop.f32.mrb[62].mxu0  ;;  %v1416_v7 = vpop.f32.mrb[62].mxu1  ;;  %v1687_v13 = vld [vmem:[#allocation2 + $0x1] sm:$0xff] }
 0x17a   : > { %1641 = vst.msk [vmem:[#allocation2 + $0x18] sm:$0xff] %vm1637_vm4, %v1614_v23  ;;  %v1556_v0 = vmax.f32 %v12085_v50, %v1530_v44  ;;  %v1531_v11 = vmax.f32 %v1149_v6, %v1416_v7  ;;  %v8187_v12 = vpop.f32.mrb[63].mxu0  ;;  %v8249_v33 = vpop.f32.mrb[63].mxu1  ;;  %8295 = vmatmul.mubr.msk.f32.vlgmr.msra.gmra.mrb[104].mxu0 %vm1637_vm4, %v1687_v13  ;;  %v12089_v6 = vmax.f32 %v9958_v36, %v9960_v37 }
 0x17b   : > { %9211 = vmatpush3.bf16.msra.mxu0 %v9210_v18  ;;  %8297 = vmatprep.mubr.msk.f32.mxu0 %vm9541_vm2, %v12086_v54 }
 0x17c   : > { %v1589_v26 = vadd.f32 %v10075_v38, %v1556_v0  ;;  %v1557_v1 = vmax.f32 %v12087_v27, %v1531_v11  ;;  %9215 = vmatprep.subr.bf16.mxu0 %v12088_v28 }
 0x17e   : > { %v1615_v40 = vmax.f32 %v1589_v26, 0.0  ;;  %v1590_v59 = vadd.f32 %v10075_v38, %v1557_v1 }
 0x17f   : > { %v1154_v16 = vpop.f32.mrb[64].mxu0  ;;  %v1421_v17 = vpop.f32.mrb[64].mxu1  ;;  %v1688_v8 = vld [vmem:[#allocation2 + $0x9] sm:$0xff] }
 0x180   : > { %v1966_v18 = vld [vmem:[#allocation2 + $0xe] sm:$0xff]  ;;  %1642 = vst.msk [vmem:[#allocation2 + $0x20] sm:$0xff] %vm1637_vm4, %v1615_v40  ;;  %v1616_v23 = vmax.f32 %v1590_v59, 0.0  ;;  %v1532_v44 = vmax.f32 %v1154_v16, %v1421_v17  ;;  %v8190_v21 = vpop.f32.mrb[65].mxu0  ;;  %v8252_v22 = vpop.f32.mrb[65].mxu1  ;;  %8298 = vmatmul.mubr.msk.f32.gmra.mrb[106].mxu0 %vm1637_vm4, %v1688_v8  ;;  %v12091_v8 = vmax.f32 %v9970_v47, %v9972_v48 }
 0x181   : > { %8362 = vmatmul.mubr.msk.f32.vlgmr.msra.gmra.mrb[104].mxu1 %vm1637_vm4, %v1966_v18  ;;  %v1157_v31 = vpop.f32.mrb[66].mxu0  ;;  %v1424_v32 = vpop.f32.mrb[66].mxu1  ;;  %8300 = vmatprep.mubr.msk.f32.mxu0 %vm9541_vm2, %v12086_v54  ;;  %v1689_v11 = vld [vmem:[#allocation2 + $0x11] sm:$0xff] }
 0x182   : > { %8364 = vmatprep.mubr.msk.f32.mxu1 %vm9541_vm2, %v12086_v54  ;;  %1643 = vst.msk [vmem:[#allocation2 + $0x28] sm:$0xff] %vm1637_vm4, %v1616_v23  ;;  %v1558_v7 = vmax.f32 %v12089_v6, %v1532_v44  ;;  %v1533_v13 = vmax.f32 %v1157_v31, %v1424_v32  ;;  %v8191_v50 = vpop.f32.mrb[67].mxu0  ;;  %v8253_v0 = vpop.f32.mrb[67].mxu1  ;;  %9214 = vmatpush3.bf16.msra.mxu1 %v9213_v46  ;;  %v1967_v12 = vld [vmem:[#allocation2 + $0x16] sm:$0xff] }
 0x183   : > { %9218 = vmatprep.subr.bf16.mxu1 %v12088_v28  ;;  %v12092_v6 = vmax.f32 %v9976_v52, %v9978_v53 }
 0x184   : > { %v1591_v33 = vadd.f32 %v10075_v38, %v1558_v7  ;;  %v1559_v20 = vmax.f32 %v12090_v49, %v1533_v13  ;;  %8301 = vmatmul.mubr.msk.f32.gmra.mrb[108].mxu0 %vm1637_vm4, %v1689_v11 }
 0x185   : > { %8365 = vmatmul.mubr.msk.f32.gmra.mrb[106].mxu1 %vm1637_vm4, %v1967_v12  ;;  %8303 = vmatprep.mubr.msk.f32.mxu0 %vm9541_vm2, %v12086_v54 }
 0x186   : > { %8367 = vmatprep.mubr.msk.f32.mxu1 %vm9541_vm2, %v12086_v54  ;;  %v1617_v36 = vmax.f32 %v1591_v33, 0.0  ;;  %v1592_v37 = vadd.f32 %v10075_v38, %v1559_v20 }
 0x187   : > { %v1162_v26 = vpop.f32.mrb[68].mxu0  ;;  %v1429_v27 = vpop.f32.mrb[68].mxu1  ;;  %v1690_v1 = vld [vmem:[#allocation2 + $0x19] sm:$0xff] }
 0x188   : > { %v10144_v40 = vld [vmem:[#allocation2 + $0x1e] sm:$0xff]  ;;  %1644 = vst.msk [vmem:[#allocation2 + $0x30] sm:$0xff] %vm1637_vm4, %v1617_v36  ;;  %v1618_v42 = vmax.f32 %v1592_v37, 0.0  ;;  %v1534_v43 = vmax.f32 %v1162_v26, %v1429_v27  ;;  %v8194_v59 = vpop.f32.mrb[69].mxu0  ;;  %v8256_v46 = vpop.f32.mrb[69].mxu1  ;;  %8304 = vmatmul.mubr.msk.f32.gmra.mrb[110].mxu0 %vm1637_vm4, %v1690_v1  ;;  %v12093_v36 = vmax.f32 %v9982_v57, %v9984_v58 }
 0x189   : > { %8368 = vmatmul.mubr.msk.f32.gmra.mrb[108].mxu1 %vm1637_vm4, %v10144_v40  ;;  %v1165_v16 = vpop.f32.mrb[70].mxu0  ;;  %v1432_v17 = vpop.f32.mrb[70].mxu1  ;;  %8306 = vmatprep.mubr.msk.f32.mxu0 %vm9541_vm2, %v12086_v54  ;;  %v1691_v22 = vld [vmem:[#allocation2 + $0x21] sm:$0xff]  ;;  %v12094_v46 = vmax.f32 %v9988_v62, %v9990_v63 }
 0x18a   : > { %8370 = vmatprep.mubr.msk.f32.mxu1 %vm9541_vm2, %v12086_v54  ;;  %1645 = vst.msk [vmem:[#allocation2 + $0x38] sm:$0xff] %vm1637_vm4, %v1618_v42  ;;  %v1560_v18 = vmax.f32 %v12091_v8, %v1534_v43  ;;  %v1535_v23 = vmax.f32 %v1165_v16, %v1432_v17  ;;  %v8195_v44 = vpop.f32.mrb[71].mxu0  ;;  %v8257_v21 = vpop.f32.mrb[71].mxu1  ;;  %v10158_v31 = vld [vmem:[#allocation2 + $0x26] sm:$0xff] }
 0x18c   : > { %v1593_v32 = vadd.f32 %v10075_v38, %v1560_v18  ;;  %v1561_v7 = vmax.f32 %v12092_v6, %v1535_v23  ;;  %8307 = vmatmul.mubr.msk.f32.gmra.mrb[112].mxu0 %vm1637_vm4, %v1691_v22  ;;  %v12095_v6 = vmax.f32 %v9994_v4, %v9996_v5 }
 0x18d   : > { %8371 = vmatmul.mubr.msk.f32.gmra.mrb[110].mxu1 %vm1637_vm4, %v10158_v31  ;;  %8309 = vmatprep.mubr.msk.f32.mxu0 %vm9541_vm2, %v12086_v54 }
 0x18e   : > { %8373 = vmatprep.mubr.msk.f32.mxu1 %vm9541_vm2, %v12086_v54  ;;  %v1619_v47 = vmax.f32 %v1593_v32, 0.0  ;;  %v1594_v48 = vadd.f32 %v10075_v38, %v1561_v7 }
 0x18f   : > { %v1170_v13 = vpop.f32.mrb[72].mxu0  ;;  %v1437_v50 = vpop.f32.mrb[72].mxu1  ;;  %v1692_v0 = vld [vmem:[#allocation2 + $0x29] sm:$0xff] }
 0x190   : > { %v10172_v11 = vld [vmem:[#allocation2 + $0x2e] sm:$0xff]  ;;  %1646 = vst.msk [vmem:[#allocation2 + $0x40] sm:$0xff] %vm1637_vm4, %v1619_v47  ;;  %v1620_v52 = vmax.f32 %v1594_v48, 0.0  ;;  %v1536_v53 = vmax.f32 %v1170_v13, %v1437_v50  ;;  %v8198_v12 = vpop.f32.mrb[73].mxu0  ;;  %v8260_v33 = vpop.f32.mrb[73].mxu1  ;;  %8310 = vmatmul.mubr.msk.f32.gmra.mrb[114].mxu0 %vm1637_vm4, %v1692_v0 }
 0x191   : > { %8374 = vmatmul.mubr.msk.f32.gmra.mrb[112].mxu1 %vm1637_vm4, %v10172_v11  ;;  %v1173_v49 = vpop.f32.mrb[74].mxu0  ;;  %v1440_v20 = vpop.f32.mrb[74].mxu1  ;;  %8312 = vmatprep.mubr.msk.f32.mxu0 %vm9541_vm2, %v12086_v54  ;;  %v1693_v42 = vld [vmem:[#allocation2 + $0x31] sm:$0xff] }
 0x192   : > { %8376 = vmatprep.mubr.msk.f32.mxu1 %vm9541_vm2, %v12086_v54  ;;  %1647 = vst.msk [vmem:[#allocation2 + $0x48] sm:$0xff] %vm1637_vm4, %v1620_v52  ;;  %v1562_v37 = vmax.f32 %v12093_v36, %v1536_v53  ;;  %v1537_v26 = vmax.f32 %v1173_v49, %v1440_v20  ;;  %v8199_v27 = vpop.f32.mrb[75].mxu0  ;;  %v8261_v1 = vpop.f32.mrb[75].mxu1  ;;  %v10186_v43 = vld [vmem:[#allocation2 + $0x36] sm:$0xff]  ;;  %v12096_v53 = vmax.f32 %v10000_v15, %v10002_v19 }
 0x194   : > { %v1595_v59 = vadd.f32 %v10075_v38, %v1562_v37  ;;  %v1563_v16 = vmax.f32 %v12094_v46, %v1537_v26  ;;  %8313 = vmatmul.mubr.msk.f32.gmra.mrb[116].mxu0 %vm1637_vm4, %v1693_v42  ;;  %v12097_v42 = vmax.f32 %v10006_v29, %v10008_v30 }
 0x195   : > { %8377 = vmatmul.mubr.msk.f32.gmra.mrb[114].mxu1 %vm1637_vm4, %v10186_v43  ;;  %8315 = vmatprep.mubr.msk.f32.mxu0 %vm9541_vm2, %v12086_v54 }
 0x196   : > { %8379 = vmatprep.mubr.msk.f32.mxu1 %vm9541_vm2, %v12086_v54  ;;  %v1621_v57 = vmax.f32 %v1595_v59, 0.0  ;;  %v1596_v58 = vadd.f32 %v10075_v38, %v1563_v16 }
 0x197   : > { %v1178_v17 = vpop.f32.mrb[76].mxu0  ;;  %v1445_v8 = vpop.f32.mrb[76].mxu1  ;;  %v1694_v18 = vld [vmem:[#allocation2 + $0x39] sm:$0xff] }
 0x198   : > { %v10200_v23 = vld [vmem:[#allocation2 + $0x3e] sm:$0xff]  ;;  %1648 = vst.msk [vmem:[#allocation2 + $0x50] sm:$0xff] %vm1637_vm4, %v1621_v57  ;;  %v1622_v62 = vmax.f32 %v1596_v58, 0.0  ;;  %v1538_v63 = vmax.f32 %v1178_v17, %v1445_v8  ;;  %v8202_v44 = vpop.f32.mrb[77].mxu0  ;;  %v8264_v21 = vpop.f32.mrb[77].mxu1  ;;  %8316 = vmatmul.mubr.msk.f32.gmra.mrb[118].mxu0 %vm1637_vm4, %v1694_v18  ;;  %v12098_v18 = vmax.f32 %v10012_v41, %v10014_v45 }
 0x199   : > { %8380 = vmatmul.mubr.msk.f32.gmra.mrb[116].mxu1 %vm1637_vm4, %v10200_v23  ;;  %v1181_v22 = vpop.f32.mrb[78].mxu0  ;;  %v1448_v32 = vpop.f32.mrb[78].mxu1  ;;  %8318 = vmatprep.mubr.msk.f32.mxu0 %vm9541_vm2, %v12086_v54  ;;  %v1695_v50 = vld [vmem:[#allocation2 + $0x41] sm:$0xff] }
 0x19a   : > { %8382 = vmatprep.mubr.msk.f32.mxu1 %vm9541_vm2, %v12086_v54  ;;  %1649 = vst.msk [vmem:[#allocation2 + $0x58] sm:$0xff] %vm1637_vm4, %v1622_v62  ;;  %v1564_v7 = vmax.f32 %v12095_v6, %v1538_v63  ;;  %v1539_v47 = vmax.f32 %v1181_v22, %v1448_v32  ;;  %v8203_v48 = vpop.f32.mrb[79].mxu0  ;;  %v8265_v13 = vpop.f32.mrb[79].mxu1  ;;  %v10214_v0 = vld [vmem:[#allocation2 + $0x46] sm:$0xff] }
 0x19b   : > { %v12099_v48 = vmax.f32 %v10018_v55, %v10020_v56 }
 0x19c   : > { %v1597_v52 = vadd.f32 %v10075_v38, %v1564_v7  ;;  %v1565_v12 = vmax.f32 %v12096_v53, %v1539_v47  ;;  %8319 = vmatmul.mubr.msk.f32.gmra.mrb[120].mxu0 %vm1637_vm4, %v1695_v50 }
 0x19d   : > { %8383 = vmatmul.mubr.msk.f32.gmra.mrb[118].mxu1 %vm1637_vm4, %v10214_v0  ;;  %8321 = vmatprep.mubr.msk.f32.mxu0 %vm9541_vm2, %v12086_v54 }
 0x19e   : > { %8385 = vmatprep.mubr.msk.f32.mxu1 %vm9541_vm2, %v12086_v54  ;;  %v1623_v4 = vmax.f32 %v1597_v52, 0.0  ;;  %v1598_v5 = vadd.f32 %v10075_v38, %v1565_v12 }
 0x19f   : > { %v1186_v33 = vpop.f32.mrb[80].mxu0  ;;  %v1453_v49 = vpop.f32.mrb[80].mxu1  ;;  %v1696_v20 = vld [vmem:[#allocation2 + $0x49] sm:$0xff] }
 0x1a0   : > { %v10228_v36 = vld [vmem:[#allocation2 + $0x4e] sm:$0xff]  ;;  %1650 = vst.msk [vmem:[#allocation2 + $0x60] sm:$0xff] %vm1637_vm4, %v1623_v4  ;;  %v1624_v15 = vmax.f32 %v1598_v5, 0.0  ;;  %v1540_v19 = vmax.f32 %v1186_v33, %v1453_v49  ;;  %v8206_v37 = vpop.f32.mrb[81].mxu0  ;;  %v8268_v26 = vpop.f32.mrb[81].mxu1  ;;  %8322 = vmatmul.mubr.msk.f32.gmra.mrb[122].mxu0 %vm1637_vm4, %v1696_v20  ;;  %v12100_v33 = vmax.f32 %v10024_v3, %v10026_v10 }
 0x1a1   : > { %8386 = vmatmul.mubr.msk.f32.gmra.mrb[120].mxu1 %vm1637_vm4, %v10228_v36  ;;  %v1189_v27 = vpop.f32.mrb[82].mxu0  ;;  %v1456_v1 = vpop.f32.mrb[82].mxu1  ;;  %8324 = vmatprep.mubr.msk.f32.mxu0 %vm9541_vm2, %v12086_v54  ;;  %v1697_v58 = vld [vmem:[#allocation2 + $0x51] sm:$0xff] }
 0x1a2   : > { %8388 = vmatprep.mubr.msk.f32.mxu1 %vm9541_vm2, %v12086_v54  ;;  %1651 = vst.msk [vmem:[#allocation2 + $0x68] sm:$0xff] %vm1637_vm4, %v1624_v15  ;;  %v1566_v59 = vmax.f32 %v12097_v42, %v1540_v19  ;;  %v1541_v46 = vmax.f32 %v1189_v27, %v1456_v1  ;;  %v8207_v16 = vpop.f32.mrb[83].mxu0  ;;  %v8269_v57 = vpop.f32.mrb[83].mxu1  ;;  %v10242_v17 = vld [vmem:[#allocation2 + $0x56] sm:$0xff] }
 0x1a4   : > { %v1599_v8 = vadd.f32 %v10075_v38, %v1566_v59  ;;  %v1567_v62 = vmax.f32 %v12098_v18, %v1541_v46  ;;  %8325 = vmatmul.mubr.msk.f32.gmra.mrb[124].mxu0 %vm1637_vm4, %v1697_v58  ;;  %v12101_v59 = vmax.f32 %v10030_v35, %v10032_v39 }
 0x1a5   : > { %8389 = vmatmul.mubr.msk.f32.gmra.mrb[122].mxu1 %vm1637_vm4, %v10242_v17  ;;  %8327 = vmatprep.mubr.msk.f32.mxu0 %vm9541_vm2, %v12086_v54 }
 0x1a6   : > { %8391 = vmatprep.mubr.msk.f32.mxu1 %vm9541_vm2, %v12086_v54  ;;  %v1625_v29 = vmax.f32 %v1599_v8, 0.0  ;;  %v1600_v30 = vadd.f32 %v10075_v38, %v1567_v62 }
 0x1a7   : > { %v1194_v63 = vpop.f32.mrb[84].mxu0  ;;  %v1461_v44 = vpop.f32.mrb[84].mxu1  ;;  %v1698_v21 = vld [vmem:[#allocation2 + $0x59] sm:$0xff] }
 0x1a8   : > { %v10256_v22 = vld [vmem:[#allocation2 + $0x5e] sm:$0xff]  ;;  %1652 = vst.msk [vmem:[#allocation2 + $0x70] sm:$0xff] %vm1637_vm4, %v1625_v29  ;;  %v1626_v41 = vmax.f32 %v1600_v30, 0.0  ;;  %v1542_v45 = vmax.f32 %v1194_v63, %v1461_v44  ;;  %v8210_v32 = vpop.f32.mrb[85].mxu0  ;;  %v8272_v6 = vpop.f32.mrb[85].mxu1  ;;  %8328 = vmatmul.mubr.msk.f32.gmra.mrb[126].mxu0 %vm1637_vm4, %v1698_v21  ;;  %v12102_v29 = vmax.f32 %v10036_v61, %v10038_v2 }
 0x1a9   : > { %8392 = vmatmul.mubr.msk.f32.gmra.mrb[124].mxu1 %vm1637_vm4, %v10256_v22  ;;  %v1197_v7 = vpop.f32.mrb[86].mxu0  ;;  %v1464_v47 = vpop.f32.mrb[86].mxu1  ;;  %8330 = vmatprep.mubr.msk.f32.mxu0 %vm9541_vm2, %v12086_v54  ;;  %v1699_v12 = vld [vmem:[#allocation2 + $0x61] sm:$0xff] }
 0x1aa   : > { %8394 = vmatprep.mubr.msk.f32.mxu1 %vm9541_vm2, %v12086_v54  ;;  %1653 = vst.msk [vmem:[#allocation2 + $0x78] sm:$0xff] %vm1637_vm4, %v1626_v41  ;;  %v1568_v13 = vmax.f32 %v12099_v48, %v1542_v45  ;;  %v1543_v50 = vmax.f32 %v1197_v7, %v1464_v47  ;;  %v8211_v52 = vpop.f32.mrb[87].mxu0  ;;  %v8273_v53 = vpop.f32.mrb[87].mxu1  ;;  %v10270_v4 = vld [vmem:[#allocation2 + $0x66] sm:$0xff]  ;;  %v12103_v47 = vmax.f32 %v10042_v24, %v10044_v25 }
 0x1ac   : > { %v1601_v5 = vadd.f32 %v10075_v38, %v1568_v13  ;;  %v1569_v49 = vmax.f32 %v12100_v33, %v1543_v50  ;;  %8331 = vmatmul.mubr.msk.f32.gmra.mrb[128].mxu0 %vm1637_vm4, %v1699_v12  ;;  %v12104_v33 = vmax.f32 %v10048_v51, %v10050_v60 }
 0x1ad   : > { %8395 = vmatmul.mubr.msk.f32.gmra.mrb[126].mxu1 %vm1637_vm4, %v10270_v4  ;;  %8333 = vmatprep.mubr.msk.f32.mxu0 %vm9541_vm2, %v12086_v54 }
 0x1ae   : > { %8397 = vmatprep.mubr.msk.f32.mxu1 %vm9541_vm2, %v12086_v54  ;;  %v1627_v55 = vmax.f32 %v1601_v5, 0.0  ;;  %v1602_v56 = vadd.f32 %v10075_v38, %v1569_v49 }
 0x1af   : > { %v1202_v20 = vpop.f32.mrb[88].mxu0  ;;  %v1469_v15 = vpop.f32.mrb[88].mxu1  ;;  %v1700_v19 = vld [vmem:[#allocation2 + $0x69] sm:$0xff] }
 0x1b0   : > { %v10284_v37 = vld [vmem:[#allocation2 + $0x6e] sm:$0xff]  ;;  %1654 = vst.msk [vmem:[#allocation2 + $0x80] sm:$0xff] %vm1637_vm4, %v1627_v55  ;;  %v1628_v3 = vmax.f32 %v1602_v56, 0.0  ;;  %v1544_v10 = vmax.f32 %v1202_v20, %v1469_v15  ;;  %v8214_v26 = vpop.f32.mrb[89].mxu0  ;;  %v8276_v27 = vpop.f32.mrb[89].mxu1  ;;  %8334 = vmatmul.mubr.msk.f32.gmra.mrb[130].mxu0 %vm1637_vm4, %v1700_v19 }
 0x1b1   : > { %8398 = vmatmul.mubr.msk.f32.gmra.mrb[128].mxu1 %vm1637_vm4, %v10284_v37  ;;  %v1205_v1 = vpop.f32.mrb[90].mxu0  ;;  %v1472_v42 = vpop.f32.mrb[90].mxu1  ;;  %8336 = vmatprep.mubr.msk.f32.mxu0 %vm9541_vm2, %v12086_v54  ;;  %v1701_v8 = vld [vmem:[#allocation2 + $0x71] sm:$0xff]  ;;  %v12105_v27 = vmax.f32 %v10054_v34, %v10056_v14 }
 0x1b2   : > { %8400 = vmatprep.mubr.msk.f32.mxu1 %vm9541_vm2, %v12086_v54  ;;  %1655 = vst.msk [vmem:[#allocation2 + $0x88] sm:$0xff] %vm1637_vm4, %v1628_v3  ;;  %v1570_v46 = vmax.f32 %v12101_v59, %v1544_v10  ;;  %v1545_v16 = vmax.f32 %v1205_v1, %v1472_v42  ;;  %v8215_v57 = vpop.f32.mrb[91].mxu0  ;;  %v8277_v58 = vpop.f32.mrb[91].mxu1  ;;  %v10298_v18 = vld [vmem:[#allocation2 + $0x76] sm:$0xff] }
 0x1b4   : > { %v1603_v62 = vadd.f32 %v10075_v38, %v1570_v46  ;;  %v1571_v30 = vmax.f32 %v12102_v29, %v1545_v16  ;;  %8337 = vmatmul.mubr.msk.f32.gmra.mrb[132].mxu0 %vm1637_vm4, %v1701_v8  ;;  %v12106_v8 = vld [vmem:[#allocation8_spill] sm:$0xff] }
 0x1b5   : > { %8401 = vmatmul.mubr.msk.f32.gmra.mrb[130].mxu1 %vm1637_vm4, %v10298_v18  ;;  %8339 = vmatprep.mubr.msk.f32.mxu0 %vm9541_vm2, %v12086_v54 }
 0x1b6   : > { %8403 = vmatprep.mubr.msk.f32.mxu1 %vm9541_vm2, %v12086_v54  ;;  %v1629_v35 = vmax.f32 %v1603_v62, 0.0  ;;  %v1604_v39 = vadd.f32 %v10075_v38, %v1571_v30  ;;  %v12107_v62 = vmax.f32 %v10060_v9, %v12106_v8  ;;  %v2530_v8 = vld [vmem:[#allocation2 + $0x4d] sm:$0xff] }
 0x1b7   : > { %v1210_v63 = vpop.f32.mrb[92].mxu0  ;;  %v1477_v44 = vpop.f32.mrb[92].mxu1  ;;  %v1702_v21 = vld [vmem:[#allocation2 + $0x79] sm:$0xff] }
 0x1b8   : > { %v10312_v41 = vld [vmem:[#allocation2 + $0x7e] sm:$0xff]  ;;  %1656 = vst.msk [vmem:[#allocation2 + $0x90] sm:$0xff] %vm1637_vm4, %v1629_v35  ;;  %v1630_v61 = vmax.f32 %v1604_v39, 0.0  ;;  %v1546_v2 = vmax.f32 %v1210_v63, %v1477_v44  ;;  %v8218_v45 = vpop.f32.mrb[93].mxu0  ;;  %v8280_v32 = vpop.f32.mrb[93].mxu1  ;;  %8340 = vmatmul.mubr.msk.f32.gmra.mrb[134].mxu0 %vm1637_vm4, %v1702_v21 }
 0x1b9   : > { %8404 = vmatmul.mubr.msk.f32.gmra.mrb[132].mxu1 %vm1637_vm4, %v10312_v41  ;;  %v1213_v6 = vpop.f32.mrb[94].mxu0  ;;  %v1480_v7 = vpop.f32.mrb[94].mxu1  ;;  %8342 = vmatprep.mubr.msk.f32.mxu0 %vm9541_vm2, %v12086_v54  ;;  %v1703_v53 = vld [vmem:[#allocation2 + $0x81] sm:$0xff] }
 0x1ba   : > { %8406 = vmatprep.mubr.msk.f32.mxu1 %vm9541_vm2, %v12086_v54  ;;  %1657 = vst.msk [vmem:[#allocation2 + $0x98] sm:$0xff] %vm1637_vm4, %v1630_v61  ;;  %v1572_v48 = vmax.f32 %v12103_v47, %v1546_v2  ;;  %v1547_v13 = vmax.f32 %v1213_v6, %v1480_v7  ;;  %v8219_v50 = vpop.f32.mrb[95].mxu0  ;;  %v8281_v52 = vpop.f32.mrb[95].mxu1  ;;  %v10326_v12 = vld [vmem:[#allocation2 + $0x86] sm:$0xff]  ;;  %v12108_v32 = vld [vmem:[#allocation9_spill] sm:$0xff] }
 0x1bb   : > { %v12109_v6 = vld [vmem:[#allocation10_spill] sm:$0xff] }
 0x1bc   : > { %v1605_v5 = vadd.f32 %v10075_v38, %v1572_v48  ;;  %v1573_v49 = vmax.f32 %v12104_v33, %v1547_v13  ;;  %8343 = vmatmul.mubr.msk.f32.gmra.mrb[136].mxu0 %vm1637_vm4, %v1703_v53  ;;  %v12110_v7 = vmax.f32 %v12108_v32, %v12109_v6  ;;  %v2801_v48 = vld [vmem:[%s12057_s3 + $0x80] sm:$0xff]  ;;  %v2802_v13 = vld [vmem:[%s12057_s3 + $0x88] sm:$0xff] }
 0x1bd   : > { %8407 = vmatmul.mubr.msk.f32.gmra.mrb[134].mxu1 %vm1637_vm4, %v10326_v12  ;;  %8345 = vmatprep.mubr.msk.f32.mxu0 %vm9541_vm2, %v12086_v54  ;;  %v2537_v32 = vld [vmem:[#allocation2 + $0x85] sm:$0xff] }
 0x1be   : > { %8409 = vmatprep.mubr.msk.f32.mxu1 %vm9541_vm2, %v12086_v54  ;;  %v1631_v24 = vmax.f32 %v1605_v5, 0.0  ;;  %v1606_v25 = vadd.f32 %v10075_v38, %v1573_v49  ;;  %v9216_v49 = vpack.c.bf16 %v2802_v13, %v2801_v48  ;;  %v10545_v6 = vld [vmem:[#allocation2 + $0x88] sm:$0xff] }
 0x1bf   : > { %v1218_v55 = vpop.f32.mrb[96].mxu0  ;;  %v1485_v56 = vpop.f32.mrb[96].mxu1  ;;  %v1704_v20 = vld [vmem:[#allocation2 + $0x89] sm:$0xff] }
 0x1c0   : > { %v10340_v15 = vld [vmem:[#allocation2 + $0x8e] sm:$0xff]  ;;  %1658 = vst.msk [vmem:[#allocation2 + $0xa0] sm:$0xff] %vm1637_vm4, %v1631_v24  ;;  %v1632_v51 = vmax.f32 %v1606_v25, 0.0  ;;  %v1548_v60 = vmax.f32 %v1218_v55, %v1485_v56  ;;  %v8222_v19 = vpop.f32.mrb[97].mxu0  ;;  %v8284_v3 = vpop.f32.mrb[97].mxu1  ;;  %8346 = vmatmul.mubr.msk.f32.gmra.mrb[138].mxu0 %vm1637_vm4, %v1704_v20 }
 0x1c1   : > { %8410 = vmatmul.mubr.msk.f32.gmra.mrb[136].mxu1 %vm1637_vm4, %v10340_v15  ;;  %v1221_v10 = vpop.f32.mrb[98].mxu0  ;;  %v1488_v26 = vpop.f32.mrb[98].mxu1  ;;  %8348 = vmatprep.mubr.msk.f32.mxu0 %vm9541_vm2, %v12086_v54  ;;  %v1705_v16 = vld [vmem:[#allocation2 + $0x91] sm:$0xff]  ;;  %v1686_v56 = vld [vmem:[%s12057_s3 + $0x8] sm:$0xff]  ;;  %v10427_v19 = vld [vmem:[#allocation2 + $0x20] sm:$0xff] }
 0x1c2   : > { %8412 = vmatprep.mubr.msk.f32.mxu1 %vm9541_vm2, %v12086_v54  ;;  %1659 = vst.msk [vmem:[#allocation2 + $0xa8] sm:$0xff] %vm1637_vm4, %v1632_v51  ;;  %v1574_v1 = vmax.f32 %v12105_v27, %v1548_v60  ;;  %v1549_v42 = vmax.f32 %v1221_v10, %v1488_v26  ;;  %v8223_v59 = vpop.f32.mrb[99].mxu0  ;;  %v8285_v46 = vpop.f32.mrb[99].mxu1  ;;  %v10354_v57 = vld [vmem:[#allocation2 + $0x96] sm:$0xff]  ;;  %v2525_v3 = vld [vmem:[#allocation2 + $0x25] sm:$0xff]  ;;  %v2526_v26 = vld [vmem:[#allocation2 + $0x2d] sm:$0xff] }
 0x1c3   : > { %v10398_v25 = vld [vmem:[#allocation2 + $0x10] sm:$0xff]  ;;  %v10418_v51 = vld [vmem:[#allocation2 + $0x18] sm:$0xff]  ;;  %v10437_v10 = vld [vmem:[#allocation2 + $0x28] sm:$0xff] }
 0x1c4   : > { %v1607_v58 = vadd.f32 %v10075_v38, %v1574_v1  ;;  %v1575_v29 = vmax.f32 %v12107_v62, %v1549_v42  ;;  %8349 = vmatmul.mubr.msk.f32.gmra.mrb[140].mxu0 %vm1637_vm4, %v1705_v16  ;;  %v2524_v60 = vld [vmem:[#allocation2 + $0x1d] sm:$0xff]  ;;  %v10446_v27 = vld [vmem:[#allocation2 + $0x30] sm:$0xff]  ;;  %v2529_v16 = vld [vmem:[#allocation2 + $0x45] sm:$0xff] }
 0x1c5   : > { %8413 = vmatmul.mubr.msk.f32.gmra.mrb[138].mxu1 %vm1637_vm4, %v10354_v57  ;;  %8351 = vmatprep.mubr.msk.f32.mxu0 %vm9541_vm2, %v12086_v54  ;;  %v2527_v1 = vld [vmem:[#allocation2 + $0x35] sm:$0xff]  ;;  %v2528_v59 = vld [vmem:[#allocation2 + $0x3d] sm:$0xff] }
 0x1c6   : > { %8415 = vmatprep.mubr.msk.f32.mxu1 %vm9541_vm2, %v12086_v54  ;;  %v1633_v34 = vmax.f32 %v1607_v58, 0.0  ;;  %v1608_v14 = vadd.f32 %v10075_v38, %v1575_v29  ;;  %v10455_v42 = vld [vmem:[#allocation2 + $0x38] sm:$0xff]  ;;  %v10464_v46 = vld [vmem:[#allocation2 + $0x40] sm:$0xff]  ;;  %v10473_v58 = vld [vmem:[#allocation2 + $0x48] sm:$0xff] }
 0x1c7   : > { %v1226_v30 = vpop.f32.mrb[100].mxu0  ;;  %v1493_v35 = vpop.f32.mrb[100].mxu1  ;;  %v1706_v39 = vld [vmem:[#allocation2 + $0x99] sm:$0xff]  ;;  %v10482_v62 = vld [vmem:[#allocation2 + $0x50] sm:$0xff] }
 0x1c8   : > { %v10368_v63 = vld [vmem:[#allocation2 + $0x9e] sm:$0xff]  ;;  %1660 = vst.msk [vmem:[#allocation2 + $0xb0] sm:$0xff] %vm1637_vm4, %v1633_v34  ;;  %v1634_v9 = vmax.f32 %v1608_v14, 0.0  ;;  %v1550_v44 = vmax.f32 %v1226_v30, %v1493_v35  ;;  %v8226_v21 = vpop.f32.mrb[101].mxu0  ;;  %v8288_v61 = vpop.f32.mrb[101].mxu1  ;;  %8352 = vmatmul.mubr.msk.f32.gmra.mrb[142].mxu0 %vm1637_vm4, %v1706_v39  ;;  %v2531_v29 = vld [vmem:[#allocation2 + $0x55] sm:$0xff] }
 0x1c9   : > { %8416 = vmatmul.mubr.msk.f32.gmra.mrb[140].mxu1 %vm1637_vm4, %v10368_v63  ;;  %v1229_v2 = vpop.f32.mrb[102].mxu0  ;;  %v1496_v45 = vpop.f32.mrb[102].mxu1  ;;  %8354 = vmatprep.mubr.msk.f32.mxu0 %vm9541_vm2, %v12086_v54  ;;  %v1707_v53 = vld [vmem:[#allocation2 + $0xa1] sm:$0xff]  ;;  %v10491_v34 = vld [vmem:[#allocation2 + $0x58] sm:$0xff] }
 0x1ca   : > { %8418 = vmatprep.mubr.msk.f32.mxu1 %vm9541_vm2, %v12086_v54  ;;  %1661 = vst.msk [vmem:[#allocation2 + $0xb8] sm:$0xff] %vm1637_vm4, %v1634_v9  ;;  %v1576_v47 = vmax.f32 %v12110_v7, %v1550_v44  ;;  %v8227_v50 = vpop.f32.mrb[103].mxu0  ;;  %v8289_v52 = vpop.f32.mrb[103].mxu1  ;;  %v10388_v5 = vld [vmem:[#allocation2 + $0xa6] sm:$0xff]  ;;  %v2532_v14 = vld [vmem:[#allocation2 + $0x5d] sm:$0xff]  ;;  %v10518_v44 = vld [vmem:[#allocation2 + $0x70] sm:$0xff] }
 0x1cb   : > { %v10500_v30 = vld [vmem:[#allocation2 + $0x60] sm:$0xff]  ;;  %v10509_v39 = vld [vmem:[#allocation2 + $0x68] sm:$0xff]  ;;  %v2535_v21 = vld [vmem:[#allocation2 + $0x75] sm:$0xff] }
 0x1cc   : > { %v1609_v33 = vadd.f32 %v10075_v38, %v1576_v47  ;;  %8355 = vmatmul.mubr.msk.f32.gmra.mrb[144].mxu0 %vm1637_vm4, %v1707_v53  ;;  %v1685_v38 = vld [vmem:[%s12057_s3] sm:$0xff]  ;;  %v2534_v9 = vld [vmem:[#allocation2 + $0x6d] sm:$0xff]  ;;  %v10527_v61 = vld [vmem:[#allocation2 + $0x78] sm:$0xff] }
 0x1cd   : > { %8419 = vmatmul.mubr.msk.f32.gmra.mrb[142].mxu1 %vm1637_vm4, %v10388_v5  ;;  %8428 = vmatprep.mubr.msk.f32.mxu0 %vm9541_vm2, %v12086_v54  ;;  %v9219_v20 = vpack.c.bf16 %v1686_v56, %v1685_v38  ;;  %v2533_v35 = vld [vmem:[#allocation2 + $0x65] sm:$0xff]  ;;  %v2536_v2 = vld [vmem:[#allocation2 + $0x7d] sm:$0xff]  ;;  %v2538_v7 = vld [vmem:[#allocation2 + $0x8d] sm:$0xff] }
 0x1ce   : > { %8421 = vmatprep.mubr.msk.f32.mxu1 %vm9541_vm2, %v12086_v54  ;;  %v1635_v24 = vmax.f32 %v1609_v33, 0.0  ;;  %v10536_v45 = vld [vmem:[#allocation2 + $0x80] sm:$0xff]  ;;  %v10554_v47 = vld [vmem:[#allocation2 + $0x90] sm:$0xff]  ;;  %v10563_v13 = vld [vmem:[#allocation2 + $0x98] sm:$0xff] }
 0x1cf   : > { %v10400_v55 = vld [vmem:[#allocation2 + $0xae] sm:$0xff]  ;;  %v2540_v50 = vld [vmem:[#allocation2 + $0x9d] sm:$0xff]  ;;  %v2541_v53 = vld [vmem:[#allocation2 + $0xa5] sm:$0xff] }
 0x1d0   : > { %1662 = vst.msk [vmem:[#allocation2 + $0xc0] sm:$0xff] %vm1637_vm4, %v1635_v24  ;;  %8429 = vmatmul.mubr.msk.f32.vlgmr.msra.gmra.mrb[146].mxu0 %vm1637_vm4, %v10398_v25  ;;  %v2539_v48 = vld [vmem:[#allocation2 + $0x95] sm:$0xff]  ;;  %v10572_v52 = vld [vmem:[#allocation2 + $0xa0] sm:$0xff]  ;;  %v2264_v33 = vld [vmem:[#allocation2 + $0xa8] sm:$0xff] }
 0x1d1   : > { %8422 = vmatmul.mubr.msk.f32.gmra.mrb[144].mxu1 %vm1637_vm4, %v10400_v55  ;;  %9217 = vmatpush3.bf16.msra.mxu0 %v9216_v49  ;;  %v2542_v49 = vld [vmem:[#allocation2 + $0xad] sm:$0xff]  ;;  %v1964_v24 = vld [vmem:[%s12057_s3 + $0x20] sm:$0xff] }
 0x1d2   : > { %8431 = vmatprep.mubr.msk.f32.mxu0 %vm9541_vm2, %v12086_v54  ;;  %8495 = vmatprep.mubr.msk.f32.mxu1 %vm9541_vm2, %v12086_v54  ;;  %v1965_v38 = vld [vmem:[%s12057_s3 + $0x28] sm:$0xff]  ;;  %v2265_v56 = vld [vmem:[#allocation2 + $0xb0] sm:$0xff] }
 0x1d3   : > { %9221 = vmatprep.subr.bf16.mxu0 %v12088_v28 }
 0x1d4   : > { %8432 = vmatmul.mubr.msk.f32.gmra.mrb[148].mxu0 %vm1637_vm4, %v10418_v51 }
 0x1d5   : > { %8496 = vmatmul.mubr.msk.f32.vlgmr.msra.gmra.mrb[146].mxu1 %vm1637_vm4, %v2524_v60  ;;  %8434 = vmatprep.mubr.msk.f32.mxu0 %vm9541_vm2, %v12086_v54  ;;  %v9222_v60 = vpack.c.bf16 %v1965_v38, %v1964_v24  ;;  %v1944_v24 = vld [vmem:[#allocation2 + $0xa] sm:$0xff] }
 0x1d6   : > { %8498 = vmatprep.mubr.msk.f32.mxu1 %vm9541_vm2, %v12086_v54  ;;  %9220 = vmatpush3.bf16.msra.mxu1 %v9219_v20  ;;  %v2543_v20 = vld [vmem:[#allocation2 + $0xb5] sm:$0xff] }
 0x1d7   : > { %9224 = vmatprep.subr.bf16.mxu1 %v12088_v28  ;;  %v2222_v38 = vld [vmem:[#allocation2 + $0xf] sm:$0xff] }
 0x1d8   : > { %8435 = vmatmul.mubr.msk.f32.gmra.mrb[150].mxu0 %vm1637_vm4, %v10427_v19 }
 0x1d9   : > { %8499 = vmatmul.mubr.msk.f32.gmra.mrb[148].mxu1 %vm1637_vm4, %v2525_v3  ;;  %8437 = vmatprep.mubr.msk.f32.mxu0 %vm9541_vm2, %v12086_v54  ;;  %v2544_v3 = vld [vmem:[#allocation2 + $0xbd] sm:$0xff] }
 0x1da   : > { %8501 = vmatprep.mubr.msk.f32.mxu1 %vm9541_vm2, %v12086_v54 }
 0x1dc   : > { %8438 = vmatmul.mubr.msk.f32.gmra.mrb[152].mxu0 %vm1637_vm4, %v10437_v10 }
 0x1dd   : > { %8502 = vmatmul.mubr.msk.f32.gmra.mrb[150].mxu1 %vm1637_vm4, %v2526_v26  ;;  %8440 = vmatprep.mubr.msk.f32.mxu0 %vm9541_vm2, %v12086_v54  ;;  %v2243_v26 = vld [vmem:[%s12057_s3 + $0x40] sm:$0xff] }
 0x1de   : > { %8504 = vmatprep.mubr.msk.f32.mxu1 %vm9541_vm2, %v12086_v54 }
 0x1e0   : > { %8441 = vmatmul.mubr.msk.f32.gmra.mrb[154].mxu0 %vm1637_vm4, %v10446_v27 }
 0x1e1   : > { %8505 = vmatmul.mubr.msk.f32.gmra.mrb[152].mxu1 %vm1637_vm4, %v2527_v1  ;;  %8443 = vmatprep.mubr.msk.f32.mxu0 %vm9541_vm2, %v12086_v54  ;;  %v2244_v1 = vld [vmem:[%s12057_s3 + $0x48] sm:$0xff] }
 0x1e2   : > { %8507 = vmatprep.mubr.msk.f32.mxu1 %vm9541_vm2, %v12086_v54 }
 0x1e4   : > { %8444 = vmatmul.mubr.msk.f32.gmra.mrb[156].mxu0 %vm1637_vm4, %v10455_v42 }
 0x1e5   : > { %8508 = vmatmul.mubr.msk.f32.gmra.mrb[154].mxu1 %vm1637_vm4, %v2528_v59  ;;  %8446 = vmatprep.mubr.msk.f32.mxu0 %vm9541_vm2, %v12086_v54  ;;  %v9225_v59 = vpack.c.bf16 %v2244_v1, %v2243_v26  ;;  %v2223_v26 = vld [vmem:[#allocation2 + $0x17] sm:$0xff] }
 0x1e6   : > { %8510 = vmatprep.mubr.msk.f32.mxu1 %vm9541_vm2, %v12086_v54 }
 0x1e8   : > { %8447 = vmatmul.mubr.msk.f32.gmra.mrb[158].mxu0 %vm1637_vm4, %v10464_v46 }
 0x1e9   : > { %8511 = vmatmul.mubr.msk.f32.gmra.mrb[156].mxu1 %vm1637_vm4, %v2529_v16  ;;  %8449 = vmatprep.mubr.msk.f32.mxu0 %vm9541_vm2, %v12086_v54  ;;  %v1664_v16 = vld [vmem:[#allocation2] sm:$0xff] }
 0x1ea   : > { %8513 = vmatprep.mubr.msk.f32.mxu1 %vm9541_vm2, %v12086_v54 }
 0x1ec   : > { %8450 = vmatmul.mubr.msk.f32.gmra.mrb[160].mxu0 %vm1637_vm4, %v10473_v58 }
 0x1ed   : > { %8514 = vmatmul.mubr.msk.f32.gmra.mrb[158].mxu1 %vm1637_vm4, %v2530_v8  ;;  %8452 = vmatprep.mubr.msk.f32.mxu0 %vm9541_vm2, %v12086_v54 }
 0x1ee   : > { %8516 = vmatprep.mubr.msk.f32.mxu1 %vm9541_vm2, %v12086_v54 }
 0x1f0   : > { %8453 = vmatmul.mubr.msk.f32.gmra.mrb[162].mxu0 %vm1637_vm4, %v10482_v62 }
 0x1f1   : > { %8517 = vmatmul.mubr.msk.f32.gmra.mrb[160].mxu1 %vm1637_vm4, %v2531_v29  ;;  %8455 = vmatprep.mubr.msk.f32.mxu0 %vm9541_vm2, %v12086_v54 }
 0x1f2   : > { %8519 = vmatprep.mubr.msk.f32.mxu1 %vm9541_vm2, %v12086_v54 }
 0x1f4   : > { %8456 = vmatmul.mubr.msk.f32.gmra.mrb[164].mxu0 %vm1637_vm4, %v10491_v34 }
 0x1f5   : > { %8520 = vmatmul.mubr.msk.f32.gmra.mrb[162].mxu1 %vm1637_vm4, %v2532_v14  ;;  %8458 = vmatprep.mubr.msk.f32.mxu0 %vm9541_vm2, %v12086_v54 }
 0x1f6   : > { %8522 = vmatprep.mubr.msk.f32.mxu1 %vm9541_vm2, %v12086_v54 }
 0x1f8   : > { %8459 = vmatmul.mubr.msk.f32.gmra.mrb[166].mxu0 %vm1637_vm4, %v10500_v30 }
 0x1f9   : > { %8523 = vmatmul.mubr.msk.f32.gmra.mrb[164].mxu1 %vm1637_vm4, %v2533_v35  ;;  %8461 = vmatprep.mubr.msk.f32.mxu0 %vm9541_vm2, %v12086_v54 }
 0x1fa   : > { %8525 = vmatprep.mubr.msk.f32.mxu1 %vm9541_vm2, %v12086_v54 }
 0x1fc   : > { %8462 = vmatmul.mubr.msk.f32.gmra.mrb[168].mxu0 %vm1637_vm4, %v10509_v39 }
 0x1fd   : > { %8526 = vmatmul.mubr.msk.f32.gmra.mrb[166].mxu1 %vm1637_vm4, %v2534_v9  ;;  %8464 = vmatprep.mubr.msk.f32.mxu0 %vm9541_vm2, %v12086_v54 }
 0x1fe   : > { %8528 = vmatprep.mubr.msk.f32.mxu1 %vm9541_vm2, %v12086_v54 }
 0x200   : > { %8465 = vmatmul.mubr.msk.f32.gmra.mrb[170].mxu0 %vm1637_vm4, %v10518_v44 }
 0x201   : > { %8529 = vmatmul.mubr.msk.f32.gmra.mrb[168].mxu1 %vm1637_vm4, %v2535_v21  ;;  %8467 = vmatprep.mubr.msk.f32.mxu0 %vm9541_vm2, %v12086_v54  ;;  %v2523_v21 = vld [vmem:[%s12057_s3 + $0x68] sm:$0xff] }
 0x202   : > { %8531 = vmatprep.mubr.msk.f32.mxu1 %vm9541_vm2, %v12086_v54 }
 0x204   : > { %8468 = vmatmul.mubr.msk.f32.gmra.mrb[172].mxu0 %vm1637_vm4, %v10527_v61 }
 0x205   : > { %8532 = vmatmul.mubr.msk.f32.gmra.mrb[170].mxu1 %vm1637_vm4, %v2536_v2  ;;  %8470 = vmatprep.mubr.msk.f32.mxu0 %vm9541_vm2, %v12086_v54 }
 0x206   : > { %8534 = vmatprep.mubr.msk.f32.mxu1 %vm9541_vm2, %v12086_v54 }
 0x208   : > { %8471 = vmatmul.mubr.msk.f32.gmra.mrb[174].mxu0 %vm1637_vm4, %v10536_v45 }
 0x209   : > { %8535 = vmatmul.mubr.msk.f32.gmra.mrb[172].mxu1 %vm1637_vm4, %v2537_v32  ;;  %8473 = vmatprep.mubr.msk.f32.mxu0 %vm9541_vm2, %v12086_v54 }
 0x20a   : > { %8537 = vmatprep.mubr.msk.f32.mxu1 %vm9541_vm2, %v12086_v54 }
 0x20c   : > { %8474 = vmatmul.mubr.msk.f32.gmra.mrb[176].mxu0 %vm1637_vm4, %v10545_v6 }
 0x20d   : > { %8538 = vmatmul.mubr.msk.f32.gmra.mrb[174].mxu1 %vm1637_vm4, %v2538_v7  ;;  %8476 = vmatprep.mubr.msk.f32.mxu0 %vm9541_vm2, %v12086_v54 }
 0x20e   : > { %8540 = vmatprep.mubr.msk.f32.mxu1 %vm9541_vm2, %v12086_v54 }
 0x210   : > { %8477 = vmatmul.mubr.msk.f32.gmra.mrb[178].mxu0 %vm1637_vm4, %v10554_v47 }
 0x211   : > { %8541 = vmatmul.mubr.msk.f32.gmra.mrb[176].mxu1 %vm1637_vm4, %v2539_v48  ;;  %8479 = vmatprep.mubr.msk.f32.mxu0 %vm9541_vm2, %v12086_v54 }
 0x212   : > { %8543 = vmatprep.mubr.msk.f32.mxu1 %vm9541_vm2, %v12086_v54 }
 0x214   : > { %8480 = vmatmul.mubr.msk.f32.gmra.mrb[180].mxu0 %vm1637_vm4, %v10563_v13 }
 0x215   : > { %8544 = vmatmul.mubr.msk.f32.gmra.mrb[178].mxu1 %vm1637_vm4, %v2540_v50  ;;  %8482 = vmatprep.mubr.msk.f32.mxu0 %vm9541_vm2, %v12086_v54  ;;  %v1943_v50 = vld [vmem:[#allocation2 + $0x2] sm:$0xff] }
 0x216   : > { %8546 = vmatprep.mubr.msk.f32.mxu1 %vm9541_vm2, %v12086_v54 }
 0x218   : > { %8483 = vmatmul.mubr.msk.f32.gmra.mrb[182].mxu0 %vm1637_vm4, %v10572_v52 }
 0x219   : > { %8547 = vmatmul.mubr.msk.f32.gmra.mrb[180].mxu1 %vm1637_vm4, %v2541_v53  ;;  %8485 = vmatprep.mubr.msk.f32.mxu0 %vm9541_vm2, %v12086_v54 }
 0x21a   : > { %8549 = vmatprep.mubr.msk.f32.mxu1 %vm9541_vm2, %v12086_v54 }
 0x21c   : > { %8486 = vmatmul.mubr.msk.f32.gmra.mrb[184].mxu0 %vm1637_vm4, %v2264_v33 }
 0x21d   : > { %8550 = vmatmul.mubr.msk.f32.gmra.mrb[182].mxu1 %vm1637_vm4, %v2542_v49  ;;  %8488 = vmatprep.mubr.msk.f32.mxu0 %vm9541_vm2, %v12086_v54 }
 0x21e   : > { %8552 = vmatprep.mubr.msk.f32.mxu1 %vm9541_vm2, %v12086_v54 }
 0x220   : > { %8489 = vmatmul.mubr.msk.f32.gmra.mrb[186].mxu0 %vm1637_vm4, %v2265_v56 }
 0x221   : > { %8553 = vmatmul.mubr.msk.f32.gmra.mrb[184].mxu1 %vm1637_vm4, %v2543_v20  ;;  %8562 = vmatprep.mubr.msk.f32.mxu0 %vm9541_vm2, %v12086_v54 }
 0x222   : > { %8555 = vmatprep.mubr.msk.f32.mxu1 %vm9541_vm2, %v12086_v54 }
 0x224   : > { %8563 = vmatmul.mubr.msk.f32.vlgmr.msra.gmra.mrb[188].mxu0 %vm1637_vm4, %v10144_v40  ;;  %v1665_v40 = vld [vmem:[#allocation2 + $0x8] sm:$0xff] }
 0x225   : > { %8556 = vmatmul.mubr.msk.f32.gmra.mrb[186].mxu1 %vm1637_vm4, %v2544_v3  ;;  %9223 = vmatpush3.bf16.msra.mxu0 %v9222_v60  ;;  %v1945_v3 = vld [vmem:[#allocation2 + $0x12] sm:$0xff] }
 0x226   : > { %8565 = vmatprep.mubr.msk.f32.mxu0 %vm9541_vm2, %v12086_v54  ;;  %8629 = vmatprep.mubr.msk.f32.mxu1 %vm9541_vm2, %v12086_v54 }
 0x227   : > { %9227 = vmatprep.subr.bf16.mxu0 %v12088_v28 }
 0x228   : > { %8566 = vmatmul.mubr.msk.f32.gmra.mrb[190].mxu0 %vm1637_vm4, %v10158_v31 }
 0x229   : > { %8630 = vmatmul.mubr.msk.f32.vlgmr.msra.gmra.mrb[188].mxu1 %vm1637_vm4, %v1664_v16  ;;  %8568 = vmatprep.mubr.msk.f32.mxu0 %vm9541_vm2, %v12086_v54 }
 0x22a   : > { %8632 = vmatprep.mubr.msk.f32.mxu1 %vm9541_vm2, %v12086_v54  ;;  %9226 = vmatpush3.bf16.msra.mxu1 %v9225_v59 }
 0x22b   : > { %9230 = vmatprep.subr.bf16.mxu1 %v12088_v28 }
 0x22c   : > { %8569 = vmatmul.mubr.msk.f32.gmra.mrb[192].mxu0 %vm1637_vm4, %v10172_v11 }
 0x22d   : > { %8633 = vmatmul.mubr.msk.f32.gmra.mrb[190].mxu1 %vm1637_vm4, %v1665_v40  ;;  %8571 = vmatprep.mubr.msk.f32.mxu0 %vm9541_vm2, %v12086_v54 }
 0x22e   : > { %8635 = vmatprep.mubr.msk.f32.mxu1 %vm9541_vm2, %v12086_v54 }
 0x230   : > { %8572 = vmatmul.mubr.msk.f32.gmra.mrb[194].mxu0 %vm1637_vm4, %v10186_v43 }
 0x231   : > { %8636 = vmatmul.mubr.msk.f32.gmra.mrb[192].mxu1 %vm1637_vm4, %v10398_v25  ;;  %8574 = vmatprep.mubr.msk.f32.mxu0 %vm9541_vm2, %v12086_v54 }
 0x232   : > { %8638 = vmatprep.mubr.msk.f32.mxu1 %vm9541_vm2, %v12086_v54 }
 0x234   : > { %8575 = vmatmul.mubr.msk.f32.gmra.mrb[196].mxu0 %vm1637_vm4, %v10200_v23 }
 0x235   : > { %8639 = vmatmul.mubr.msk.f32.gmra.mrb[194].mxu1 %vm1637_vm4, %v10418_v51  ;;  %8577 = vmatprep.mubr.msk.f32.mxu0 %vm9541_vm2, %v12086_v54 }
 0x236   : > { %8641 = vmatprep.mubr.msk.f32.mxu1 %vm9541_vm2, %v12086_v54 }
 0x238   : > { %8578 = vmatmul.mubr.msk.f32.gmra.mrb[198].mxu0 %vm1637_vm4, %v10214_v0 }
 0x239   : > { %8642 = vmatmul.mubr.msk.f32.gmra.mrb[196].mxu1 %vm1637_vm4, %v10427_v19  ;;  %8580 = vmatprep.mubr.msk.f32.mxu0 %vm9541_vm2, %v12086_v54 }
 0x23a   : > { %8644 = vmatprep.mubr.msk.f32.mxu1 %vm9541_vm2, %v12086_v54 }
 0x23c   : > { %8581 = vmatmul.mubr.msk.f32.gmra.mrb[200].mxu0 %vm1637_vm4, %v10228_v36 }
 0x23d   : > { %8645 = vmatmul.mubr.msk.f32.gmra.mrb[198].mxu1 %vm1637_vm4, %v10437_v10  ;;  %8583 = vmatprep.mubr.msk.f32.mxu0 %vm9541_vm2, %v12086_v54 }
 0x23e   : > { %8647 = vmatprep.mubr.msk.f32.mxu1 %vm9541_vm2, %v12086_v54 }
 0x240   : > { %8584 = vmatmul.mubr.msk.f32.gmra.mrb[202].mxu0 %vm1637_vm4, %v10242_v17 }
 0x241   : > { %8648 = vmatmul.mubr.msk.f32.gmra.mrb[200].mxu1 %vm1637_vm4, %v10446_v27  ;;  %8586 = vmatprep.mubr.msk.f32.mxu0 %vm9541_vm2, %v12086_v54 }
 0x242   : > { %8650 = vmatprep.mubr.msk.f32.mxu1 %vm9541_vm2, %v12086_v54 }
 0x244   : > { %8587 = vmatmul.mubr.msk.f32.gmra.mrb[204].mxu0 %vm1637_vm4, %v10256_v22 }
 0x245   : > { %8651 = vmatmul.mubr.msk.f32.gmra.mrb[202].mxu1 %vm1637_vm4, %v10455_v42  ;;  %8589 = vmatprep.mubr.msk.f32.mxu0 %vm9541_vm2, %v12086_v54 }
 0x246   : > { %8653 = vmatprep.mubr.msk.f32.mxu1 %vm9541_vm2, %v12086_v54 }
 0x248   : > { %8590 = vmatmul.mubr.msk.f32.gmra.mrb[206].mxu0 %vm1637_vm4, %v10270_v4 }
 0x249   : > { %8654 = vmatmul.mubr.msk.f32.gmra.mrb[204].mxu1 %vm1637_vm4, %v10464_v46  ;;  %8592 = vmatprep.mubr.msk.f32.mxu0 %vm9541_vm2, %v12086_v54 }
 0x24a   : > { %8656 = vmatprep.mubr.msk.f32.mxu1 %vm9541_vm2, %v12086_v54 }
 0x24c   : > { %8593 = vmatmul.mubr.msk.f32.gmra.mrb[208].mxu0 %vm1637_vm4, %v10284_v37 }
 0x24d   : > { %8657 = vmatmul.mubr.msk.f32.gmra.mrb[206].mxu1 %vm1637_vm4, %v10473_v58  ;;  %v10688_v31 = vpop.f32.mrb[104].mxu0  ;;  %8595 = vmatprep.mubr.msk.f32.mxu0 %vm9541_vm2, %v12086_v54 }
 0x24e   : > { %8659 = vmatprep.mubr.msk.f32.mxu1 %vm9541_vm2, %v12086_v54  ;;  %v8296_v11 = vpop.f32.mrb[105].mxu0 }
 0x24f   : > { %v1946_v11 = vld [vmem:[#allocation2 + $0x1a] sm:$0xff] }
 0x250   : > { %8596 = vmatmul.mubr.msk.f32.gmra.mrb[210].mxu0 %vm1637_vm4, %v10298_v18 }
 0x251   : > { %8660 = vmatmul.mubr.msk.f32.gmra.mrb[208].mxu1 %vm1637_vm4, %v10482_v62  ;;  %8598 = vmatprep.mubr.msk.f32.mxu0 %vm9541_vm2, %v12086_v54 }
 0x252   : > { %8662 = vmatprep.mubr.msk.f32.mxu1 %vm9541_vm2, %v12086_v54 }
 0x253   : > { %v10702_v43 = vpop.f32.mrb[106].mxu0 }
 0x254   : > { %v10704_v23 = vpop.f32.mrb[104].mxu1  ;;  %v8299_v0 = vpop.f32.mrb[107].mxu0  ;;  %8599 = vmatmul.mubr.msk.f32.gmra.mrb[212].mxu0 %vm1637_vm4, %v10312_v41 }
 0x255   : > { %v8363_v36 = vpop.f32.mrb[105].mxu1  ;;  %8663 = vmatmul.mubr.msk.f32.gmra.mrb[210].mxu1 %vm1637_vm4, %v10491_v34  ;;  %8601 = vmatprep.mubr.msk.f32.mxu0 %vm9541_vm2, %v12086_v54  ;;  %v2224_v0 = vld [vmem:[#allocation2 + $0x1f] sm:$0xff] }
 0x256   : > { %8665 = vmatprep.mubr.msk.f32.mxu1 %vm9541_vm2, %v12086_v54 }
 0x257   : > { %v10714_v17 = vpop.f32.mrb[108].mxu0 }
 0x258   : > { %v10716_v22 = vpop.f32.mrb[106].mxu1  ;;  %v8302_v4 = vpop.f32.mrb[109].mxu0  ;;  %8602 = vmatmul.mubr.msk.f32.gmra.mrb[214].mxu0 %vm1637_vm4, %v10326_v12 }
 0x259   : > { %v8366_v37 = vpop.f32.mrb[107].mxu1  ;;  %8666 = vmatmul.mubr.msk.f32.gmra.mrb[212].mxu1 %vm1637_vm4, %v10500_v30  ;;  %8604 = vmatprep.mubr.msk.f32.mxu0 %vm9541_vm2, %v12086_v54 }
 0x25a   : > { %8668 = vmatprep.mubr.msk.f32.mxu1 %vm9541_vm2, %v12086_v54 }
 0x25b   : > { %v10726_v18 = vpop.f32.mrb[110].mxu0 }
 0x25c   : > { %v10728_v41 = vpop.f32.mrb[108].mxu1  ;;  %v8305_v25 = vpop.f32.mrb[111].mxu0  ;;  %8605 = vmatmul.mubr.msk.f32.gmra.mrb[216].mxu0 %vm1637_vm4, %v10340_v15 }
 0x25d   : > { %v8369_v51 = vpop.f32.mrb[109].mxu1  ;;  %8669 = vmatmul.mubr.msk.f32.gmra.mrb[214].mxu1 %vm1637_vm4, %v10509_v39  ;;  %8607 = vmatprep.mubr.msk.f32.mxu0 %vm9541_vm2, %v12086_v54  ;;  %v2799_v39 = vld [vmem:[#allocation2 + $0xb6] sm:$0xff] }
 0x25e   : > { %8671 = vmatprep.mubr.msk.f32.mxu1 %vm9541_vm2, %v12086_v54  ;;  %v1947_v51 = vld [vmem:[#allocation2 + $0x22] sm:$0xff] }
 0x25f   : > { %v10738_v12 = vpop.f32.mrb[112].mxu0 }
 0x260   : > { %v10740_v19 = vpop.f32.mrb[110].mxu1  ;;  %v8308_v10 = vpop.f32.mrb[113].mxu0  ;;  %8608 = vmatmul.mubr.msk.f32.gmra.mrb[218].mxu0 %vm1637_vm4, %v10354_v57 }
 0x261   : > { %v8372_v27 = vpop.f32.mrb[111].mxu1  ;;  %8672 = vmatmul.mubr.msk.f32.gmra.mrb[216].mxu1 %vm1637_vm4, %v10518_v44  ;;  %8610 = vmatprep.mubr.msk.f32.mxu0 %vm9541_vm2, %v12086_v54  ;;  %v2225_v10 = vld [vmem:[#allocation2 + $0x27] sm:$0xff] }
 0x262   : > { %8674 = vmatprep.mubr.msk.f32.mxu1 %vm9541_vm2, %v12086_v54 }
 0x263   : > { %v10750_v15 = vpop.f32.mrb[114].mxu0 }
 0x264   : > { %v10752_v42 = vpop.f32.mrb[112].mxu1  ;;  %v8311_v46 = vpop.f32.mrb[115].mxu0  ;;  %8611 = vmatmul.mubr.msk.f32.gmra.mrb[220].mxu0 %vm1637_vm4, %v10368_v63 }
 0x265   : > { %v8375_v58 = vpop.f32.mrb[113].mxu1  ;;  %8675 = vmatmul.mubr.msk.f32.gmra.mrb[218].mxu1 %vm1637_vm4, %v10527_v61  ;;  %8613 = vmatprep.mubr.msk.f32.mxu0 %vm9541_vm2, %v12086_v54 }
 0x266   : > { %8677 = vmatprep.mubr.msk.f32.mxu1 %vm9541_vm2, %v12086_v54 }
 0x267   : > { %v10762_v57 = vpop.f32.mrb[116].mxu0 }
 0x268   : > { %v10764_v8 = vpop.f32.mrb[114].mxu1  ;;  %v8314_v62 = vpop.f32.mrb[117].mxu0  ;;  %8614 = vmatmul.mubr.msk.f32.gmra.mrb[222].mxu0 %vm1637_vm4, %v10388_v5 }
 0x269   : > { %v8378_v29 = vpop.f32.mrb[115].mxu1  ;;  %8678 = vmatmul.mubr.msk.f32.gmra.mrb[220].mxu1 %vm1637_vm4, %v10536_v45  ;;  %8616 = vmatprep.mubr.msk.f32.mxu0 %vm9541_vm2, %v12086_v54  ;;  %v2800_v45 = vld [vmem:[#allocation2 + $0xbe] sm:$0xff] }
 0x26a   : > { %8680 = vmatprep.mubr.msk.f32.mxu1 %vm9541_vm2, %v12086_v54  ;;  %v1948_v29 = vld [vmem:[#allocation2 + $0x2a] sm:$0xff] }
 0x26b   : > { %v10774_v63 = vpop.f32.mrb[118].mxu0 }
 0x26c   : > { %v10776_v34 = vpop.f32.mrb[116].mxu1  ;;  %v8317_v14 = vpop.f32.mrb[119].mxu0  ;;  %8617 = vmatmul.mubr.msk.f32.gmra.mrb[224].mxu0 %vm1637_vm4, %v10400_v55  ;;  %v2522_v55 = vld [vmem:[%s12057_s3 + $0x60] sm:$0xff] }
 0x26d   : > { %v8381_v30 = vpop.f32.mrb[117].mxu1  ;;  %8681 = vmatmul.mubr.msk.f32.gmra.mrb[222].mxu1 %vm1637_vm4, %v10545_v6  ;;  %8619 = vmatprep.mubr.msk.f32.mxu0 %vm9541_vm2, %v12086_v54  ;;  %v9228_v7 = vpack.c.bf16 %v2523_v21, %v2522_v55  ;;  %v2226_v14 = vld [vmem:[#allocation2 + $0x2f] sm:$0xff]  ;;  %v2227_v21 = vld [vmem:[#allocation2 + $0x37] sm:$0xff] }
 0x26e   : > { %8683 = vmatprep.mubr.msk.f32.mxu1 %vm9541_vm2, %v12086_v54  ;;  %v1949_v55 = vld [vmem:[#allocation2 + $0x32] sm:$0xff] }
 0x26f   : > { %v10786_v5 = vpop.f32.mrb[120].mxu0 }
 0x270   : > { %v10788_v35 = vpop.f32.mrb[118].mxu1  ;;  %v8320_v9 = vpop.f32.mrb[121].mxu0  ;;  %8620 = vmatmul.mubr.msk.f32.gmra.mrb[226].mxu0 %vm1637_vm4, %v2799_v39 }
 0x271   : > { %v8384_v44 = vpop.f32.mrb[119].mxu1  ;;  %8684 = vmatmul.mubr.msk.f32.gmra.mrb[224].mxu1 %vm1637_vm4, %v10554_v47  ;;  %8622 = vmatprep.mubr.msk.f32.mxu0 %vm9541_vm2, %v12086_v54 }
 0x272   : > { %8686 = vmatprep.mubr.msk.f32.mxu1 %vm9541_vm2, %v12086_v54 }
 0x273   : > { %v10803_v61 = vpop.f32.mrb[122].mxu0 }
 0x274   : > { %v10805_v2 = vpop.f32.mrb[120].mxu1  ;;  %v8323_v32 = vpop.f32.mrb[123].mxu0  ;;  %8623 = vmatmul.mubr.msk.f32.gmra.mrb[228].mxu0 %vm1637_vm4, %v2800_v45 }
 0x275   : > { %v8387_v6 = vpop.f32.mrb[121].mxu1  ;;  %8687 = vmatmul.mubr.msk.f32.gmra.mrb[226].mxu1 %vm1637_vm4, %v10563_v13  ;;  %8696 = vmatprep.mubr.msk.f32.mxu0 %vm9541_vm2, %v12086_v54 }
 0x276   : > { %8689 = vmatprep.mubr.msk.f32.mxu1 %vm9541_vm2, %v12086_v54 }
 0x277   : > { %v10814_v47 = vpop.f32.mrb[124].mxu0 }
 0x278   : > { %v10816_v48 = vpop.f32.mrb[122].mxu1  ;;  %v8326_v53 = vpop.f32.mrb[125].mxu0  ;;  %8697 = vmatmul.mubr.msk.f32.vlgmr.msra.gmra.mrb[230].mxu0 %vm1637_vm4, %v1943_v50  ;;  %v1950_v50 = vld [vmem:[#allocation2 + $0x3a] sm:$0xff] }
 0x279   : > { %v8390_v33 = vpop.f32.mrb[123].mxu1  ;;  %8690 = vmatmul.mubr.msk.f32.gmra.mrb[228].mxu1 %vm1637_vm4, %v10572_v52  ;;  %9229 = vmatpush3.bf16.msra.mxu0 %v9228_v7  ;;  %v2228_v53 = vld [vmem:[#allocation2 + $0x3f] sm:$0xff] }
 0x27a   : > { %8699 = vmatprep.mubr.msk.f32.mxu0 %vm9541_vm2, %v12086_v54  ;;  %8763 = vmatprep.mubr.msk.f32.mxu1 %vm9541_vm2, %v12086_v54 }
 0x27b   : > { %9293 = vmatprep.subr.bf16.mxu0 %v12088_v28  ;;  %v10826_v13 = vpop.f32.mrb[126].mxu0 }
 0x27c   : > { %v10828_v49 = vpop.f32.mrb[124].mxu1  ;;  %v8329_v56 = vpop.f32.mrb[127].mxu0  ;;  %8700 = vmatmul.mubr.msk.f32.gmra.mrb[232].mxu0 %vm1637_vm4, %v1944_v24 }
 0x27d   : > { %v8393_v20 = vpop.f32.mrb[125].mxu1  ;;  %8764 = vmatmul.mubr.msk.f32.vlgmr.msra.gmra.mrb[230].mxu1 %vm1637_vm4, %v2222_v38  ;;  %8702 = vmatprep.mubr.msk.f32.mxu0 %vm9541_vm2, %v12086_v54 }
 0x27e   : > { %8766 = vmatprep.mubr.msk.f32.mxu1 %vm9541_vm2, %v12086_v54  ;;  %v1951_v20 = vld [vmem:[#allocation2 + $0x42] sm:$0xff] }
 0x27f   : > { %v10836_v52 = vpop.f32.mrb[128].mxu0 }
 0x280   : > { %v10838_v60 = vpop.f32.mrb[126].mxu1  ;;  %v8332_v1 = vpop.f32.mrb[129].mxu0  ;;  %8703 = vmatmul.mubr.msk.f32.gmra.mrb[234].mxu0 %vm1637_vm4, %v1945_v3  ;;  %v2229_v3 = vld [vmem:[#allocation2 + $0x47] sm:$0xff] }
 0x281   : > { %v8396_v59 = vpop.f32.mrb[127].mxu1  ;;  %8767 = vmatmul.mubr.msk.f32.gmra.mrb[232].mxu1 %vm1637_vm4, %v2223_v26  ;;  %8705 = vmatprep.mubr.msk.f32.mxu0 %vm9541_vm2, %v12086_v54 }
 0x282   : > { %8769 = vmatprep.mubr.msk.f32.mxu1 %vm9541_vm2, %v12086_v54 }
 0x283   : > { %v10846_v16 = vpop.f32.mrb[130].mxu0 }
 0x284   : > { %v10848_v40 = vpop.f32.mrb[128].mxu1  ;;  %v8335_v36 = vpop.f32.mrb[131].mxu0  ;;  %8706 = vmatmul.mubr.msk.f32.gmra.mrb[236].mxu0 %vm1637_vm4, %v1946_v11 }
 0x285   : > { %v8399_v4 = vpop.f32.mrb[129].mxu1  ;;  %8770 = vmatmul.mubr.msk.f32.gmra.mrb[234].mxu1 %vm1637_vm4, %v2224_v0  ;;  %8708 = vmatprep.mubr.msk.f32.mxu0 %vm9541_vm2, %v12086_v54  ;;  %v1952_v0 = vld [vmem:[#allocation2 + $0x4a] sm:$0xff] }
 0x286   : > { %8772 = vmatprep.mubr.msk.f32.mxu1 %vm9541_vm2, %v12086_v54  ;;  %v2230_v36 = vld [vmem:[#allocation2 + $0x4f] sm:$0xff] }
 0x287   : > { %v10856_v37 = vpop.f32.mrb[132].mxu0 }
 0x288   : > { %v10858_v25 = vpop.f32.mrb[130].mxu1  ;;  %v8338_v27 = vpop.f32.mrb[133].mxu0  ;;  %8709 = vmatmul.mubr.msk.f32.gmra.mrb[238].mxu0 %vm1637_vm4, %v1947_v51 }
 0x289   : > { %v8402_v46 = vpop.f32.mrb[131].mxu1  ;;  %8773 = vmatmul.mubr.msk.f32.gmra.mrb[236].mxu1 %vm1637_vm4, %v2225_v10  ;;  %8711 = vmatprep.mubr.msk.f32.mxu0 %vm9541_vm2, %v12086_v54 }
 0x28a   : > { %8775 = vmatprep.mubr.msk.f32.mxu1 %vm9541_vm2, %v12086_v54  ;;  %v1953_v46 = vld [vmem:[#allocation2 + $0x52] sm:$0xff] }
 0x28b   : > { %v10866_v58 = vpop.f32.mrb[134].mxu0 }
 0x28c   : > { %v10868_v62 = vpop.f32.mrb[132].mxu1  ;;  %v8341_v30 = vpop.f32.mrb[135].mxu0  ;;  %8712 = vmatmul.mubr.msk.f32.gmra.mrb[240].mxu0 %vm1637_vm4, %v1948_v29  ;;  %v2231_v29 = vld [vmem:[#allocation2 + $0x57] sm:$0xff] }
 0x28d   : > { %v8405_v39 = vpop.f32.mrb[133].mxu1  ;;  %8776 = vmatmul.mubr.msk.f32.gmra.mrb[238].mxu1 %vm1637_vm4, %v2226_v14  ;;  %8714 = vmatprep.mubr.msk.f32.mxu0 %vm9541_vm2, %v12086_v54 }
 0x28e   : > { %8778 = vmatprep.mubr.msk.f32.mxu1 %vm9541_vm2, %v12086_v54 }
 0x28f   : > { %v10876_v9 = vpop.f32.mrb[136].mxu0 }
 0x290   : > { %v10878_v44 = vpop.f32.mrb[134].mxu1  ;;  %v8344_v45 = vpop.f32.mrb[137].mxu0  ;;  %8715 = vmatmul.mubr.msk.f32.gmra.mrb[242].mxu0 %vm1637_vm4, %v1949_v55 }
 0x291   : > { %12111 = vst [vmem:[#allocation8_spill] sm:$0xff] %v10878_v44  ;;  %v8408_v32 = vpop.f32.mrb[135].mxu1  ;;  %8779 = vmatmul.mubr.msk.f32.gmra.mrb[240].mxu1 %vm1637_vm4, %v2227_v21  ;;  %8717 = vmatprep.mubr.msk.f32.mxu0 %vm9541_vm2, %v12086_v54  ;;  %v1954_v21 = vld [vmem:[#allocation2 + $0x5a] sm:$0xff] }
 0x292   : > { %8781 = vmatprep.mubr.msk.f32.mxu1 %vm9541_vm2, %v12086_v54  ;;  %v2232_v45 = vld [vmem:[#allocation2 + $0x5f] sm:$0xff] }
 0x293   : > { %v10886_v6 = vpop.f32.mrb[138].mxu0 }
 0x294   : > { %v10888_v7 = vpop.f32.mrb[136].mxu1  ;;  %v8347_v33 = vpop.f32.mrb[139].mxu0  ;;  %8718 = vmatmul.mubr.msk.f32.gmra.mrb[244].mxu0 %vm1637_vm4, %v1950_v50 }
 0x295   : > { %12112 = vst [vmem:[#allocation9_spill] sm:$0xff] %v10888_v7  ;;  %v8411_v24 = vpop.f32.mrb[137].mxu1  ;;  %8782 = vmatmul.mubr.msk.f32.gmra.mrb[242].mxu1 %vm1637_vm4, %v2228_v53  ;;  %8720 = vmatprep.mubr.msk.f32.mxu0 %vm9541_vm2, %v12086_v54 }
 0x296   : > { %8784 = vmatprep.mubr.msk.f32.mxu1 %vm9541_vm2, %v12086_v54  ;;  %v1955_v24 = vld [vmem:[#allocation2 + $0x62] sm:$0xff] }
 0x297   : > { %v10896_v38 = vpop.f32.mrb[140].mxu0 }
 0x298   : > { %v10898_v56 = vpop.f32.mrb[138].mxu1  ;;  %v8350_v26 = vpop.f32.mrb[141].mxu0  ;;  %8721 = vmatmul.mubr.msk.f32.gmra.mrb[246].mxu0 %vm1637_vm4, %v1951_v20  ;;  %v2233_v20 = vld [vmem:[#allocation2 + $0x67] sm:$0xff] }
 0x299   : > { %12113 = vst [vmem:[#allocation10_spill] sm:$0xff] %v10898_v56  ;;  %v8414_v1 = vpop.f32.mrb[139].mxu1  ;;  %8785 = vmatmul.mubr.msk.f32.gmra.mrb[244].mxu1 %vm1637_vm4, %v2229_v3  ;;  %8723 = vmatprep.mubr.msk.f32.mxu0 %vm9541_vm2, %v12086_v54 }
 0x29a   : > { %8787 = vmatprep.mubr.msk.f32.mxu1 %vm9541_vm2, %v12086_v54 }
 0x29b   : > { %v10906_v59 = vpop.f32.mrb[142].mxu0 }
 0x29c   : > { %v10908_v11 = vpop.f32.mrb[140].mxu1  ;;  %v8353_v4 = vpop.f32.mrb[143].mxu0  ;;  %8724 = vmatmul.mubr.msk.f32.gmra.mrb[248].mxu0 %vm1637_vm4, %v1952_v0 }
 0x29d   : > { %12114 = vst [vmem:[#allocation11_spill] sm:$0xff] %v10908_v11  ;;  %v8417_v51 = vpop.f32.mrb[141].mxu1  ;;  %8788 = vmatmul.mubr.msk.f32.gmra.mrb[246].mxu1 %vm1637_vm4, %v2230_v36  ;;  %8726 = vmatprep.mubr.msk.f32.mxu0 %vm9541_vm2, %v12086_v54  ;;  %v1956_v36 = vld [vmem:[#allocation2 + $0x6a] sm:$0xff] }
 0x29e   : > { %8790 = vmatprep.mubr.msk.f32.mxu1 %vm9541_vm2, %v12086_v54  ;;  %v2234_v4 = vld [vmem:[#allocation2 + $0x6f] sm:$0xff] }
 0x29f   : > { %v10916_v10 = vpop.f32.mrb[144].mxu0 }
 0x2a0   : > { %v10918_v27 = vpop.f32.mrb[142].mxu1  ;;  %v8356_v14 = vpop.f32.mrb[145].mxu0  ;;  %8727 = vmatmul.mubr.msk.f32.gmra.mrb[250].mxu0 %vm1637_vm4, %v1953_v46 }
 0x2a1   : > { %12115 = vst [vmem:[#allocation12_spill] sm:$0xff] %v10918_v27  ;;  %v8420_v30 = vpop.f32.mrb[143].mxu1  ;;  %8791 = vmatmul.mubr.msk.f32.gmra.mrb[248].mxu1 %vm1637_vm4, %v2231_v29  ;;  %8729 = vmatprep.mubr.msk.f32.mxu0 %vm9541_vm2, %v12086_v54 }
 0x2a2   : > { %8793 = vmatprep.mubr.msk.f32.mxu1 %vm9541_vm2, %v12086_v54  ;;  %v1957_v30 = vld [vmem:[#allocation2 + $0x72] sm:$0xff] }
 0x2a3   : > { %v10928_v55 = vpop.f32.mrb[146].mxu0 }
 0x2a4   : > { %v10926_v39 = vpop.f32.mrb[144].mxu1  ;;  %v8430_v50 = vpop.f32.mrb[147].mxu0  ;;  %8730 = vmatmul.mubr.msk.f32.gmra.mrb[252].mxu0 %vm1637_vm4, %v1954_v21  ;;  %v2235_v21 = vld [vmem:[#allocation2 + $0x77] sm:$0xff] }
 0x2a5   : > { %12116 = vst [vmem:[#allocation13_spill] sm:$0xff] %v10926_v39  ;;  %v8423_v32 = vpop.f32.mrb[145].mxu1  ;;  %8794 = vmatmul.mubr.msk.f32.gmra.mrb[250].mxu1 %vm1637_vm4, %v2232_v45  ;;  %8732 = vmatprep.mubr.msk.f32.mxu0 %vm9541_vm2, %v12086_v54 }
 0x2a6   : > { %8796 = vmatprep.mubr.msk.f32.mxu1 %vm9541_vm2, %v12086_v54 }
 0x2a7   : > { %v10936_v53 = vpop.f32.mrb[148].mxu0 }
 0x2a8   : > { %v10938_v33 = vpop.f32.mrb[146].mxu1  ;;  %v8433_v3 = vpop.f32.mrb[149].mxu0  ;;  %8733 = vmatmul.mubr.msk.f32.gmra.mrb[254].mxu0 %vm1637_vm4, %v1955_v24 }
 0x2a9   : > { %12117 = vst [vmem:[#allocation14_spill] sm:$0xff] %v10938_v33  ;;  %v8497_v26 = vpop.f32.mrb[147].mxu1  ;;  %8797 = vmatmul.mubr.msk.f32.gmra.mrb[252].mxu1 %vm1637_vm4, %v2233_v20  ;;  %8735 = vmatprep.mubr.msk.f32.mxu0 %vm9541_vm2, %v12086_v54  ;;  %v1958_v20 = vld [vmem:[#allocation2 + $0x7a] sm:$0xff] }
 0x2aa   : > { %8799 = vmatprep.mubr.msk.f32.mxu1 %vm9541_vm2, %v12086_v54  ;;  %v2236_v3 = vld [vmem:[#allocation2 + $0x7f] sm:$0xff] }
 0x2ab   : > { %v10946_v1 = vpop.f32.mrb[150].mxu0 }
 0x2ac   : > { %v10948_v0 = vpop.f32.mrb[148].mxu1  ;;  %v8436_v51 = vpop.f32.mrb[151].mxu0  ;;  %8736 = vmatmul.mubr.msk.f32.gmra.mrb[0].mxu0 %vm1637_vm4, %v1956_v36 }
 0x2ad   : > { %12118 = vst [vmem:[#allocation15_spill] sm:$0xff] %v10948_v0  ;;  %v8500_v46 = vpop.f32.mrb[149].mxu1  ;;  %8800 = vmatmul.mubr.msk.f32.gmra.mrb[254].mxu1 %vm1637_vm4, %v2234_v4  ;;  %8738 = vmatprep.mubr.msk.f32.mxu0 %vm9541_vm2, %v12086_v54 }
 0x2ae   : > { %8802 = vmatprep.mubr.msk.f32.mxu1 %vm9541_vm2, %v12086_v54  ;;  %v1959_v46 = vld [vmem:[#allocation2 + $0x82] sm:$0xff] }
 0x2af   : > { %v10956_v29 = vpop.f32.mrb[152].mxu0 }
 0x2b0   : > { %v10958_v14 = vpop.f32.mrb[150].mxu1  ;;  %v8439_v45 = vpop.f32.mrb[153].mxu0  ;;  %8739 = vmatmul.mubr.msk.f32.gmra.mrb[2].mxu0 %vm1637_vm4, %v1957_v30  ;;  %v2237_v30 = vld [vmem:[#allocation2 + $0x87] sm:$0xff] }
 0x2b1   : > { %12119 = vst [vmem:[#allocation16_spill] sm:$0xff] %v10958_v14  ;;  %v8503_v32 = vpop.f32.mrb[151].mxu1  ;;  %8803 = vmatmul.mubr.msk.f32.gmra.mrb[0].mxu1 %vm1637_vm4, %v2235_v21  ;;  %8741 = vmatprep.mubr.msk.f32.mxu0 %vm9541_vm2, %v12086_v54 }
 0x2b2   : > { %8805 = vmatprep.mubr.msk.f32.mxu1 %vm9541_vm2, %v12086_v54 }
 0x2b3   : > { %v10966_v50 = vpop.f32.mrb[154].mxu0 }
 0x2b4   : > { %v10968_v24 = vpop.f32.mrb[152].mxu1  ;;  %v8442_v26 = vpop.f32.mrb[155].mxu0  ;;  %8742 = vmatmul.mubr.msk.f32.gmra.mrb[4].mxu0 %vm1637_vm4, %v1958_v20 }
 0x2b5   : > { %12120 = vst [vmem:[#allocation17_spill] sm:$0xff] %v10968_v24  ;;  %v8506_v36 = vpop.f32.mrb[153].mxu1  ;;  %8806 = vmatmul.mubr.msk.f32.gmra.mrb[2].mxu1 %vm1637_vm4, %v2236_v3  ;;  %8744 = vmatprep.mubr.msk.f32.mxu0 %vm9541_vm2, %v12086_v54  ;;  %v1960_v3 = vld [vmem:[#allocation2 + $0x8a] sm:$0xff] }
 0x2b6   : > { %8808 = vmatprep.mubr.msk.f32.mxu1 %vm9541_vm2, %v12086_v54  ;;  %v2238_v26 = vld [vmem:[#allocation2 + $0x8f] sm:$0xff] }
 0x2b7   : > { %v10976_v4 = vpop.f32.mrb[156].mxu0 }
 0x2b8   : > { %v10978_v51 = vpop.f32.mrb[154].mxu1  ;;  %v8445_v21 = vpop.f32.mrb[157].mxu0  ;;  %8745 = vmatmul.mubr.msk.f32.gmra.mrb[6].mxu0 %vm1637_vm4, %v1959_v46 }
 0x2b9   : > { %12121 = vst [vmem:[#allocation18_spill] sm:$0xff] %v10978_v51  ;;  %v8509_v45 = vpop.f32.mrb[155].mxu1  ;;  %8809 = vmatmul.mubr.msk.f32.gmra.mrb[4].mxu1 %vm1637_vm4, %v2237_v30  ;;  %8747 = vmatprep.mubr.msk.f32.mxu0 %vm9541_vm2, %v12086_v54  ;;  %v1961_v21 = vld [vmem:[#allocation2 + $0x92] sm:$0xff] }
 0x2ba   : > { %8811 = vmatprep.mubr.msk.f32.mxu1 %vm9541_vm2, %v12086_v54  ;;  %v2239_v45 = vld [vmem:[#allocation2 + $0x97] sm:$0xff] }
 0x2bb   : > { %v10986_v32 = vpop.f32.mrb[158].mxu0 }
 0x2bc   : > { %v10988_v20 = vpop.f32.mrb[156].mxu1  ;;  %v8448_v36 = vpop.f32.mrb[159].mxu0  ;;  %8748 = vmatmul.mubr.msk.f32.gmra.mrb[8].mxu0 %vm1637_vm4, %v1960_v3 }
 0x2bd   : > { %12122 = vst [vmem:[#allocation19_spill] sm:$0xff] %v10988_v20  ;;  %v8512_v51 = vpop.f32.mrb[157].mxu1  ;;  %8812 = vmatmul.mubr.msk.f32.gmra.mrb[6].mxu1 %vm1637_vm4, %v2238_v26  ;;  %8750 = vmatprep.mubr.msk.f32.mxu0 %vm9541_vm2, %v12086_v54  ;;  %v1962_v26 = vld [vmem:[#allocation2 + $0x9a] sm:$0xff] }
 0x2be   : > { %8814 = vmatprep.mubr.msk.f32.mxu1 %vm9541_vm2, %v12086_v54  ;;  %v2240_v36 = vld [vmem:[#allocation2 + $0x9f] sm:$0xff] }
 0x2bf   : > { %v10996_v46 = vpop.f32.mrb[160].mxu0 }
 0x2c0   : > { %v10998_v30 = vpop.f32.mrb[158].mxu1  ;;  %v8451_v20 = vpop.f32.mrb[161].mxu0  ;;  %8751 = vmatmul.mubr.msk.f32.gmra.mrb[10].mxu0 %vm1637_vm4, %v1961_v21  ;;  %v1963_v21 = vld [vmem:[#allocation2 + $0xa2] sm:$0xff] }
 0x2c1   : > { %12123 = vst [vmem:[#allocation20_spill] sm:$0xff] %v10998_v30  ;;  %v8515_v24 = vpop.f32.mrb[159].mxu1  ;;  %8815 = vmatmul.mubr.msk.f32.gmra.mrb[8].mxu1 %vm1637_vm4, %v2239_v45  ;;  %8753 = vmatprep.mubr.msk.f32.mxu0 %vm9541_vm2, %v12086_v54  ;;  %v2241_v45 = vld [vmem:[#allocation2 + $0xa7] sm:$0xff] }
 0x2c2   : > { %8817 = vmatprep.mubr.msk.f32.mxu1 %vm9541_vm2, %v12086_v54 }
 0x2c3   : > { %v11006_v51 = vpop.f32.mrb[162].mxu0 }
 0x2c4   : > { %v11008_v3 = vpop.f32.mrb[160].mxu1  ;;  %v8454_v30 = vpop.f32.mrb[163].mxu0  ;;  %8754 = vmatmul.mubr.msk.f32.gmra.mrb[12].mxu0 %vm1637_vm4, %v1962_v26  ;;  %v2242_v26 = vld [vmem:[#allocation2 + $0xaf] sm:$0xff] }
 0x2c5   : > { %12124 = vst [vmem:[#allocation21_spill] sm:$0xff] %v11008_v3  ;;  %v8518_v14 = vpop.f32.mrb[161].mxu1  ;;  %8818 = vmatmul.mubr.msk.f32.gmra.mrb[10].mxu1 %vm1637_vm4, %v2240_v36  ;;  %8756 = vmatprep.mubr.msk.f32.mxu0 %vm9541_vm2, %v12086_v54  ;;  %v2501_v36 = vld [vmem:[#allocation2 + $0x1c] sm:$0xff] }
 0x2c6   : > { %8820 = vmatprep.mubr.msk.f32.mxu1 %vm9541_vm2, %v12086_v54 }
 0x2c7   : > { %v11016_v24 = vpop.f32.mrb[164].mxu0 }
 0x2c8   : > { %v11018_v20 = vpop.f32.mrb[162].mxu1  ;;  %v8457_v3 = vpop.f32.mrb[165].mxu0  ;;  %8757 = vmatmul.mubr.msk.f32.gmra.mrb[14].mxu0 %vm1637_vm4, %v1963_v21  ;;  %v2502_v21 = vld [vmem:[#allocation2 + $0x24] sm:$0xff] }
 0x2c9   : > { %12125 = vst [vmem:[#allocation22_spill] sm:$0xff] %v11018_v20  ;;  %v8521_v0 = vpop.f32.mrb[163].mxu1  ;;  %8821 = vmatmul.mubr.msk.f32.gmra.mrb[12].mxu1 %vm1637_vm4, %v2241_v45  ;;  %8830 = vmatprep.mubr.msk.f32.mxu0 %vm9541_vm2, %v12086_v54 }
 0x2ca   : > { %8823 = vmatprep.mubr.msk.f32.mxu1 %vm9541_vm2, %v12086_v54 }
 0x2cb   : > { %v11026_v14 = vpop.f32.mrb[166].mxu0 }
 0x2cc   : > { %v11028_v30 = vpop.f32.mrb[164].mxu1  ;;  %v8460_v20 = vpop.f32.mrb[167].mxu0  ;;  %8831 = vmatmul.mubr.msk.f32.vlgmr.msra.gmra.mrb[16].mxu0 %vm1637_vm4, %v2501_v36 }
 0x2cd   : > { %12126 = vst [vmem:[#allocation23_spill] sm:$0xff] %v11028_v30  ;;  %v8524_v33 = vpop.f32.mrb[165].mxu1  ;;  %8824 = vmatmul.mubr.msk.f32.gmra.mrb[14].mxu1 %vm1637_vm4, %v2242_v26  ;;  %8833 = vmatprep.mubr.msk.f32.mxu0 %vm9541_vm2, %v12086_v54  ;;  %v2503_v26 = vld [vmem:[#allocation2 + $0x2c] sm:$0xff] }
 0x2ce   : > { %8897 = vmatprep.mubr.msk.f32.mxu1 %vm9541_vm2, %v12086_v54 }
 0x2cf   : > { %v11036_v0 = vpop.f32.mrb[168].mxu0 }
 0x2d0   : > { %v11038_v3 = vpop.f32.mrb[166].mxu1  ;;  %v8463_v45 = vpop.f32.mrb[169].mxu0  ;;  %8834 = vmatmul.mubr.msk.f32.gmra.mrb[18].mxu0 %vm1637_vm4, %v2502_v21  ;;  %v2504_v21 = vld [vmem:[#allocation2 + $0x34] sm:$0xff] }
 0x2d1   : > { %12127 = vst [vmem:[#allocation24_spill] sm:$0xff] %v11038_v3  ;;  %v8527_v30 = vpop.f32.mrb[167].mxu1  ;;  %8836 = vmatprep.mubr.msk.f32.mxu0 %vm9541_vm2, %v12086_v54 }
 0x2d3   : > { %v11043_v33 = vpop.f32.mrb[170].mxu0 }
 0x2d4   : > { %v11045_v20 = vpop.f32.mrb[168].mxu1  ;;  %v8466_v36 = vpop.f32.mrb[171].mxu0  ;;  %8837 = vmatmul.mubr.msk.f32.gmra.mrb[20].mxu0 %vm1637_vm4, %v2503_v26  ;;  %v2505_v26 = vld [vmem:[#allocation2 + $0x3c] sm:$0xff] }
 0x2d5   : > { %12128 = vst [vmem:[#allocation25_spill] sm:$0xff] %v11045_v20  ;;  %v8530_v39 = vpop.f32.mrb[169].mxu1  ;;  %8839 = vmatprep.mubr.msk.f32.mxu0 %vm9541_vm2, %v12086_v54 }
 0x2d7   : > { %v11050_v3 = vpop.f32.mrb[172].mxu0 }
 0x2d8   : > { %12129 = vst [vmem:[#allocation26_spill] sm:$0xff] %v11050_v3  ;;  %v11052_v30 = vpop.f32.mrb[170].mxu1  ;;  %v8469_v45 = vpop.f32.mrb[173].mxu0  ;;  %8840 = vmatmul.mubr.msk.f32.gmra.mrb[22].mxu0 %vm1637_vm4, %v2504_v21  ;;  %v2506_v21 = vld [vmem:[#allocation2 + $0x44] sm:$0xff] }
 0x2d9   : > { %12130 = vst [vmem:[#allocation27_spill] sm:$0xff] %v11052_v30  ;;  %v8533_v27 = vpop.f32.mrb[171].mxu1  ;;  %8842 = vmatprep.mubr.msk.f32.mxu0 %vm9541_vm2, %v12086_v54 }
 0x2db   : > { %v11057_v20 = vpop.f32.mrb[174].mxu0 }
 0x2dc   : > { %12131 = vst [vmem:[#allocation28_spill] sm:$0xff] %v11057_v20  ;;  %v11059_v39 = vpop.f32.mrb[172].mxu1  ;;  %v8472_v36 = vpop.f32.mrb[175].mxu0  ;;  %8843 = vmatmul.mubr.msk.f32.gmra.mrb[24].mxu0 %vm1637_vm4, %v2505_v26  ;;  %v2507_v26 = vld [vmem:[#allocation2 + $0x4c] sm:$0xff] }
 0x2dd   : > { %12132 = vst [vmem:[#allocation29_spill] sm:$0xff] %v11059_v39  ;;  %v8536_v11 = vpop.f32.mrb[173].mxu1  ;;  %8845 = vmatprep.mubr.msk.f32.mxu0 %vm9541_vm2, %v12086_v54 }
 0x2df   : > { %v11064_v30 = vpop.f32.mrb[176].mxu0 }
 0x2e0   : > { %12133 = vst [vmem:[#allocation30_spill] sm:$0xff] %v11064_v30  ;;  %v11066_v27 = vpop.f32.mrb[174].mxu1  ;;  %v8475_v45 = vpop.f32.mrb[177].mxu0  ;;  %8846 = vmatmul.mubr.msk.f32.gmra.mrb[26].mxu0 %vm1637_vm4, %v2506_v21  ;;  %v2508_v21 = vld [vmem:[#allocation2 + $0x54] sm:$0xff] }
 0x2e1   : > { %12134 = vst [vmem:[#allocation31_spill] sm:$0xff] %v11066_v27  ;;  %v8539_v56 = vpop.f32.mrb[175].mxu1  ;;  %8848 = vmatprep.mubr.msk.f32.mxu0 %vm9541_vm2, %v12086_v54 }
 0x2e3   : > { %v11071_v39 = vpop.f32.mrb[178].mxu0 }
 0x2e4   : > { %12135 = vst [vmem:[#allocation32_spill] sm:$0xff] %v11071_v39  ;;  %v11073_v11 = vpop.f32.mrb[176].mxu1  ;;  %v8478_v36 = vpop.f32.mrb[179].mxu0  ;;  %8849 = vmatmul.mubr.msk.f32.gmra.mrb[28].mxu0 %vm1637_vm4, %v2507_v26  ;;  %v2509_v26 = vld [vmem:[#allocation2 + $0x5c] sm:$0xff] }
 0x2e5   : > { %12136 = vst [vmem:[#allocation33_spill] sm:$0xff] %v11073_v11  ;;  %v8542_v7 = vpop.f32.mrb[177].mxu1  ;;  %8851 = vmatprep.mubr.msk.f32.mxu0 %vm9541_vm2, %v12086_v54 }
 0x2e7   : > { %v11078_v27 = vpop.f32.mrb[180].mxu0 }
 0x2e8   : > { %12137 = vst [vmem:[#allocation34_spill] sm:$0xff] %v11078_v27  ;;  %v11080_v56 = vpop.f32.mrb[178].mxu1  ;;  %v8481_v45 = vpop.f32.mrb[181].mxu0  ;;  %8852 = vmatmul.mubr.msk.f32.gmra.mrb[30].mxu0 %vm1637_vm4, %v2508_v21  ;;  %v2510_v21 = vld [vmem:[#allocation2 + $0x64] sm:$0xff] }
 0x2e9   : > { %12138 = vst [vmem:[#allocation35_spill] sm:$0xff] %v11080_v56  ;;  %v8545_v30 = vpop.f32.mrb[179].mxu1  ;;  %8854 = vmatprep.mubr.msk.f32.mxu0 %vm9541_vm2, %v12086_v54 }
 0x2eb   : > { %v11085_v11 = vpop.f32.mrb[182].mxu0 }
 0x2ec   : > { %12139 = vst [vmem:[#allocation36_spill] sm:$0xff] %v11085_v11  ;;  %v11087_v7 = vpop.f32.mrb[180].mxu1  ;;  %v8484_v36 = vpop.f32.mrb[183].mxu0  ;;  %8855 = vmatmul.mubr.msk.f32.gmra.mrb[32].mxu0 %vm1637_vm4, %v2509_v26  ;;  %v2511_v26 = vld [vmem:[#allocation2 + $0x6c] sm:$0xff] }
 0x2ed   : > { %12140 = vst [vmem:[#allocation37_spill] sm:$0xff] %v11087_v7  ;;  %v8548_v39 = vpop.f32.mrb[181].mxu1  ;;  %8857 = vmatprep.mubr.msk.f32.mxu0 %vm9541_vm2, %v12086_v54 }
 0x2ef   : > { %v11092_v56 = vpop.f32.mrb[184].mxu0 }
 0x2f0   : > { %12141 = vst [vmem:[#allocation38_spill] sm:$0xff] %v11092_v56  ;;  %v11094_v30 = vpop.f32.mrb[182].mxu1  ;;  %v8487_v45 = vpop.f32.mrb[185].mxu0  ;;  %8858 = vmatmul.mubr.msk.f32.gmra.mrb[34].mxu0 %vm1637_vm4, %v2510_v21  ;;  %v2512_v21 = vld [vmem:[#allocation2 + $0x74] sm:$0xff] }
 0x2f1   : > { %12142 = vst [vmem:[#allocation39_spill] sm:$0xff] %v11094_v30  ;;  %v8551_v27 = vpop.f32.mrb[183].mxu1  ;;  %8860 = vmatprep.mubr.msk.f32.mxu0 %vm9541_vm2, %v12086_v54 }
 0x2f3   : > { %v11099_v7 = vpop.f32.mrb[186].mxu0 }
 0x2f4   : > { %12143 = vst [vmem:[#allocation40_spill] sm:$0xff] %v11099_v7  ;;  %v11101_v39 = vpop.f32.mrb[184].mxu1  ;;  %v8490_v36 = vpop.f32.mrb[187].mxu0  ;;  %8861 = vmatmul.mubr.msk.f32.gmra.mrb[36].mxu0 %vm1637_vm4, %v2511_v26 }
 0x2f5   : > { %12144 = vst [vmem:[#allocation41_spill] sm:$0xff] %v11101_v39  ;;  %v8554_v11 = vpop.f32.mrb[185].mxu1  ;;  %8863 = vmatprep.mubr.msk.f32.mxu0 %vm9541_vm2, %v12086_v54  ;;  %v2513_v36 = vld [vmem:[#allocation2 + $0x7c] sm:$0xff] }
 0x2f7   : > { %v11108_v27 = vpop.f32.mrb[188].mxu0 }
 0x2f8   : > { %v11106_v30 = vpop.f32.mrb[186].mxu1  ;;  %12146 = vst [vmem:[#allocation43_spill] sm:$0xff] %v11108_v27  ;;  %v8564_v56 = vpop.f32.mrb[189].mxu0  ;;  %8864 = vmatmul.mubr.msk.f32.gmra.mrb[38].mxu0 %vm1637_vm4, %v2512_v21  ;;  %v4279_v21 = vld [vmem:[%s12059_s5 + $0x18] sm:$0xff] }
 0x2f9   : > { %12145 = vst [vmem:[#allocation42_spill] sm:$0xff] %v11106_v30  ;;  %v8557_v45 = vpop.f32.mrb[187].mxu1  ;;  %8866 = vmatprep.mubr.msk.f32.mxu0 %vm9541_vm2, %v12086_v54  ;;  %v4278_v56 = vld [vmem:[%s12059_s5 + $0x10] sm:$0xff] }
 0x2fb   : > { %v11113_v39 = vpop.f32.mrb[190].mxu0 }
 0x2fc   : > { %12147 = vst [vmem:[#allocation44_spill] sm:$0xff] %v11113_v39  ;;  %v3165_v11 = vpop.f32.mrb[188].mxu1  ;;  %v8567_v7 = vpop.f32.mrb[191].mxu0  ;;  %8867 = vmatmul.mubr.msk.f32.gmra.mrb[40].mxu0 %vm1637_vm4, %v2513_v36 }
 0x2fd   : > { %v11116_v26 = vadd.f32 %v3165_v11, %v10688_v31  ;;  %v8631_v20 = vpop.f32.mrb[189].mxu1  ;;  %8869 = vmatprep.mubr.msk.f32.mxu0 %vm9541_vm2, %v12086_v54  ;;  %v2514_v31 = vld [vmem:[#allocation2 + $0x84] sm:$0xff]  ;;  %v9231_v11 = vpack.c.bf16 %v4279_v21, %v4278_v56 }
 0x2ff   : > { %v11127_v45 = vpop.f32.mrb[192].mxu0  ;;  %9232 = vmatpush3.bf16.msra.mxu1 %v9231_v11 }
 0x300   : > { %12148 = vst [vmem:[#allocation45_spill] sm:$0xff] %v11127_v45  ;;  %v3170_v30 = vpop.f32.mrb[190].mxu1  ;;  %v8570_v7 = vpop.f32.mrb[193].mxu0  ;;  %8870 = vmatmul.mubr.msk.f32.gmra.mrb[42].mxu0 %vm1637_vm4, %v2514_v31  ;;  %9233 = vmatprep.subr.bf16.mxu1 %v12088_v28  ;;  %v2515_v45 = vld [vmem:[#allocation2 + $0x8c] sm:$0xff]  ;;  %v2516_v31 = vld [vmem:[#allocation2 + $0x94] sm:$0xff] }
 0x301   : > { %v11130_v20 = vadd.f32 %v3170_v30, %v10702_v43  ;;  %v8634_v36 = vpop.f32.mrb[191].mxu1  ;;  %8872 = vmatprep.mubr.msk.f32.mxu0 %vm9541_vm2, %v12086_v54 }
 0x303   : > { %v11136_v39 = vpop.f32.mrb[194].mxu0 }
 0x304   : > { %12149 = vst [vmem:[#allocation46_spill] sm:$0xff] %v11136_v39  ;;  %v3175_v27 = vpop.f32.mrb[192].mxu1  ;;  %v8573_v56 = vpop.f32.mrb[195].mxu0  ;;  %8873 = vmatmul.mubr.msk.f32.gmra.mrb[44].mxu0 %vm1637_vm4, %v2515_v45  ;;  %v2517_v45 = vld [vmem:[#allocation2 + $0x9c] sm:$0xff] }
 0x305   : > { %v11139_v44 = vadd.f32 %v3175_v27, %v10714_v17  ;;  %v8637_v43 = vpop.f32.mrb[193].mxu1  ;;  %8875 = vmatprep.mubr.msk.f32.mxu0 %vm9541_vm2, %v12086_v54 }
 0x307   : > { %v11144_v30 = vpop.f32.mrb[196].mxu0 }
 0x308   : > { %12150 = vst [vmem:[#allocation47_spill] sm:$0xff] %v11144_v30  ;;  %v3180_v21 = vpop.f32.mrb[194].mxu1  ;;  %v8576_v7 = vpop.f32.mrb[197].mxu0  ;;  %8876 = vmatmul.mubr.msk.f32.gmra.mrb[46].mxu0 %vm1637_vm4, %v2516_v31  ;;  %v2518_v31 = vld [vmem:[#allocation2 + $0xa4] sm:$0xff] }
 0x309   : > { %v11147_v11 = vadd.f32 %v3180_v21, %v10726_v18  ;;  %v8640_v36 = vpop.f32.mrb[195].mxu1  ;;  %8878 = vmatprep.mubr.msk.f32.mxu0 %vm9541_vm2, %v12086_v54 }
 0x30b   : > { %v11152_v17 = vpop.f32.mrb[198].mxu0 }
 0x30c   : > { %12151 = vst [vmem:[#allocation48_spill] sm:$0xff] %v11152_v17  ;;  %v3185_v27 = vpop.f32.mrb[196].mxu1  ;;  %v8579_v43 = vpop.f32.mrb[199].mxu0  ;;  %8879 = vmatmul.mubr.msk.f32.gmra.mrb[48].mxu0 %vm1637_vm4, %v2517_v45 }
 0x30d   : > { %v11155_v56 = vadd.f32 %v3185_v27, %v10738_v12  ;;  %v8643_v30 = vpop.f32.mrb[197].mxu1  ;;  %8881 = vmatprep.mubr.msk.f32.mxu0 %vm9541_vm2, %v12086_v54  ;;  %v2519_v27 = vld [vmem:[#allocation2 + $0xac] sm:$0xff] }
 0x30f   : > { %v11160_v18 = vpop.f32.mrb[200].mxu0 }
 0x310   : > { %12152 = vst [vmem:[#allocation49_spill] sm:$0xff] %v11160_v18  ;;  %v3190_v21 = vpop.f32.mrb[198].mxu1  ;;  %v8582_v36 = vpop.f32.mrb[201].mxu0  ;;  %8882 = vmatmul.mubr.msk.f32.gmra.mrb[50].mxu0 %vm1637_vm4, %v2518_v31 }
 0x311   : > { %v11163_v7 = vadd.f32 %v3190_v21, %v10750_v15  ;;  %v8646_v17 = vpop.f32.mrb[199].mxu1  ;;  %8884 = vmatprep.mubr.msk.f32.mxu0 %vm9541_vm2, %v12086_v54  ;;  %v2520_v21 = vld [vmem:[#allocation2 + $0xb4] sm:$0xff] }
 0x313   : > { %v11168_v12 = vpop.f32.mrb[202].mxu0 }
 0x314   : > { %12153 = vst [vmem:[#allocation50_spill] sm:$0xff] %v11168_v12  ;;  %v3195_v30 = vpop.f32.mrb[200].mxu1  ;;  %v8585_v43 = vpop.f32.mrb[203].mxu0  ;;  %8885 = vmatmul.mubr.msk.f32.gmra.mrb[52].mxu0 %vm1637_vm4, %v2519_v27 }
 0x315   : > { %v11171_v45 = vadd.f32 %v3195_v30, %v10762_v57  ;;  %v8649_v18 = vpop.f32.mrb[201].mxu1  ;;  %8887 = vmatprep.mubr.msk.f32.mxu0 %vm9541_vm2, %v12086_v54  ;;  %v2521_v30 = vld [vmem:[#allocation2 + $0xbc] sm:$0xff] }
 0x317   : > { %v11176_v15 = vpop.f32.mrb[204].mxu0 }
 0x318   : > { %12154 = vst [vmem:[#allocation51_spill] sm:$0xff] %v11176_v15  ;;  %v3200_v17 = vpop.f32.mrb[202].mxu1  ;;  %v8588_v36 = vpop.f32.mrb[205].mxu0  ;;  %8888 = vmatmul.mubr.msk.f32.gmra.mrb[54].mxu0 %vm1637_vm4, %v2520_v21 }
 0x319   : > { %v11179_v31 = vadd.f32 %v3200_v17, %v10774_v63  ;;  %v8652_v12 = vpop.f32.mrb[203].mxu1  ;;  %8890 = vmatprep.mubr.msk.f32.mxu0 %vm9541_vm2, %v12086_v54 }
 0x31b   : > { %v11184_v57 = vpop.f32.mrb[206].mxu0 }
 0x31c   : > { %12155 = vst [vmem:[#allocation52_spill] sm:$0xff] %v11184_v57  ;;  %v3205_v18 = vpop.f32.mrb[204].mxu1  ;;  %v8591_v43 = vpop.f32.mrb[207].mxu0  ;;  %8891 = vmatmul.mubr.msk.f32.gmra.mrb[56].mxu0 %vm1637_vm4, %v2521_v30 }
 0x31d   : > { %v11187_v27 = vadd.f32 %v3205_v18, %v10786_v5  ;;  %v8655_v15 = vpop.f32.mrb[205].mxu1  ;;  %9044 = vmatprep.mubr.msk.f32.mxu0 %vm9541_vm2, %v12086_v54 }
 0x31f   : > { %v11192_v63 = vpop.f32.mrb[208].mxu0 }
 0x320   : > { %12156 = vst [vmem:[#allocation53_spill] sm:$0xff] %v11192_v63  ;;  %v3210_v12 = vpop.f32.mrb[206].mxu1  ;;  %v8594_v21 = vpop.f32.mrb[209].mxu0 }
 0x321   : > { %v11195_v17 = vadd.f32 %v3210_v12, %v10803_v61  ;;  %v8658_v36 = vpop.f32.mrb[207].mxu1 }
 0x323   : > { %v11197_v57 = vpop.f32.mrb[210].mxu0 }
 0x324   : > { %12157 = vst [vmem:[#allocation54_spill] sm:$0xff] %v11197_v57  ;;  %v3215_v39 = vpop.f32.mrb[208].mxu1  ;;  %v8597_v15 = vpop.f32.mrb[211].mxu0 }
 0x325   : > { %v11200_v5 = vadd.f32 %v3215_v39, %v10814_v47  ;;  %v8661_v18 = vpop.f32.mrb[209].mxu1 }
 0x327   : > { %v11202_v30 = vpop.f32.mrb[212].mxu0 }
 0x328   : > { %12158 = vst [vmem:[#allocation55_spill] sm:$0xff] %v11202_v30  ;;  %v3220_v43 = vpop.f32.mrb[210].mxu1  ;;  %v8600_v63 = vpop.f32.mrb[213].mxu0 }
 0x329   : > { %v11205_v54 = vadd.f32 %v3220_v43, %v10826_v13  ;;  %v8664_v3 = vpop.f32.mrb[211].mxu1 }
 0x32b   : > { %v11207_v61 = vpop.f32.mrb[214].mxu0 }
 0x32c   : > { %12159 = vst [vmem:[#allocation56_spill] sm:$0xff] %v11207_v61  ;;  %v3225_v12 = vpop.f32.mrb[212].mxu1  ;;  %v8603_v36 = vpop.f32.mrb[215].mxu0 }
 0x32d   : > { %v11210_v21 = vadd.f32 %v3225_v12, %v10836_v52  ;;  %v8667_v57 = vpop.f32.mrb[213].mxu1 }
 0x32f   : > { %v11212_v47 = vpop.f32.mrb[216].mxu0 }
 0x330   : > { %12160 = vst [vmem:[#allocation57_spill] sm:$0xff] %v11212_v47  ;;  %v3230_v39 = vpop.f32.mrb[214].mxu1  ;;  %v8606_v18 = vpop.f32.mrb[217].mxu0 }
 0x331   : > { %v11215_v15 = vadd.f32 %v3230_v39, %v10846_v16  ;;  %v8670_v30 = vpop.f32.mrb[215].mxu1 }
 0x333   : > { %v11217_v13 = vpop.f32.mrb[218].mxu0 }
 0x334   : > { %12161 = vst [vmem:[#allocation58_spill] sm:$0xff] %v11217_v13  ;;  %v3235_v63 = vpop.f32.mrb[216].mxu1  ;;  %v8609_v43 = vpop.f32.mrb[219].mxu0 }
 0x335   : > { %v11220_v3 = vadd.f32 %v3235_v63, %v10856_v37  ;;  %v8673_v61 = vpop.f32.mrb[217].mxu1 }
 0x337   : > { %v11222_v52 = vpop.f32.mrb[220].mxu0 }
 0x338   : > { %12162 = vst [vmem:[#allocation59_spill] sm:$0xff] %v11222_v52  ;;  %v3240_v12 = vpop.f32.mrb[218].mxu1  ;;  %v8612_v36 = vpop.f32.mrb[221].mxu0 }
 0x339   : > { %v11225_v57 = vadd.f32 %v3240_v12, %v10866_v58  ;;  %v8676_v47 = vpop.f32.mrb[219].mxu1 }
 0x33b   : > { %v11227_v16 = vpop.f32.mrb[222].mxu0 }
 0x33c   : > { %12163 = vst [vmem:[#allocation60_spill] sm:$0xff] %v11227_v16  ;;  %v3245_v39 = vpop.f32.mrb[220].mxu1  ;;  %v8615_v18 = vpop.f32.mrb[223].mxu0 }
 0x33d   : > { %v11230_v30 = vadd.f32 %v3245_v39, %v10876_v9  ;;  %v8679_v13 = vpop.f32.mrb[221].mxu1 }
 0x33f   : > { %v11232_v37 = vpop.f32.mrb[224].mxu0 }
 0x340   : > { %12164 = vst [vmem:[#allocation61_spill] sm:$0xff] %v11232_v37  ;;  %v3250_v63 = vpop.f32.mrb[222].mxu1  ;;  %v8618_v43 = vpop.f32.mrb[225].mxu0 }
 0x341   : > { %v11235_v61 = vadd.f32 %v3250_v63, %v10886_v6  ;;  %v8682_v52 = vpop.f32.mrb[223].mxu1 }
 0x343   : > { %v11237_v58 = vpop.f32.mrb[226].mxu0 }
 0x344   : > { %12165 = vst [vmem:[#allocation62_spill] sm:$0xff] %v11237_v58  ;;  %v3255_v12 = vpop.f32.mrb[224].mxu1  ;;  %v8621_v36 = vpop.f32.mrb[227].mxu0 }
 0x345   : > { %v11240_v47 = vadd.f32 %v3255_v12, %v10896_v38  ;;  %v8685_v16 = vpop.f32.mrb[225].mxu1 }
 0x347   : > { %v11242_v9 = vpop.f32.mrb[228].mxu0 }
 0x348   : > { %12166 = vst [vmem:[#allocation63_spill] sm:$0xff] %v11242_v9  ;;  %v3260_v39 = vpop.f32.mrb[226].mxu1  ;;  %v8624_v18 = vpop.f32.mrb[229].mxu0 }
 0x349   : > { %v11245_v13 = vadd.f32 %v3260_v39, %v10906_v59  ;;  %v8688_v37 = vpop.f32.mrb[227].mxu1 }
 0x34b   : > { %v3398_v63 = vpop.f32.mrb[230].mxu0 }
 0x34c   : > { %v3265_v6 = vpop.f32.mrb[228].mxu1  ;;  %v3399_v43 = vadd.f32 %v3398_v63, %v10704_v23  ;;  %v8698_v38 = vpop.f32.mrb[231].mxu0  ;;  %v4512_v23 = vld [vmem:[%s12059_s5 + $0x60] sm:$0xff] }
 0x34d   : > { %v11248_v52 = vadd.f32 %v3265_v6, %v10916_v10  ;;  %v8691_v58 = vpop.f32.mrb[229].mxu1  ;;  %v4513_v10 = vld [vmem:[%s12059_s5 + $0x68] sm:$0xff] }
 0x34e   : > { %v11252_v12 = vadd.f32 %v3399_v43, %v11116_v26  ;;  %v9294_v6 = vpack.c.bf16 %v4513_v10, %v4512_v23 }
 0x34f   : > { %v3403_v16 = vpop.f32.mrb[232].mxu0 }
 0x350   : > { %v3631_v36 = vpop.f32.mrb[230].mxu1  ;;  %v3404_v9 = vadd.f32 %v3403_v16, %v10716_v22  ;;  %v8701_v37 = vpop.f32.mrb[233].mxu0  ;;  %9295 = vmatpush3.bf16.msra.mxu0 %v9294_v6 }
 0x351   : > { %v11256_v59 = vadd.f32 %v3631_v36, %v10928_v55  ;;  %v8765_v39 = vpop.f32.mrb[231].mxu1  ;;  %9299 = vmatprep.subr.bf16.mxu0 %v12088_v28 }
 0x352   : > { %v11259_v18 = vadd.f32 %v3404_v9, %v11130_v20 }
 0x353   : > { %v3408_v26 = vpop.f32.mrb[234].mxu0 }
 0x354   : > { %v3636_v58 = vpop.f32.mrb[232].mxu1  ;;  %v3409_v22 = vadd.f32 %v3408_v26, %v10728_v41  ;;  %v8704_v63 = vpop.f32.mrb[235].mxu0 }
 0x355   : > { %v11269_v55 = vadd.f32 %v3636_v58, %v10936_v53  ;;  %v8768_v43 = vpop.f32.mrb[233].mxu1 }
 0x356   : > { %v11272_v20 = vadd.f32 %v3409_v22, %v11139_v44 }
 0x357   : > { %v3413_v9 = vpop.f32.mrb[236].mxu0 }
 0x358   : > { %v3641_v38 = vpop.f32.mrb[234].mxu1  ;;  %v3414_v16 = vadd.f32 %v3413_v9, %v10740_v19  ;;  %v8707_v37 = vpop.f32.mrb[237].mxu0 }
 0x359   : > { %v11277_v36 = vadd.f32 %v3641_v38, %v10946_v1  ;;  %v8771_v41 = vpop.f32.mrb[235].mxu1 }
 0x35a   : > { %v11280_v53 = vadd.f32 %v3414_v16, %v11147_v11 }
 0x35b   : > { %v3418_v39 = vpop.f32.mrb[238].mxu0 }
 0x35c   : > { %v3646_v23 = vpop.f32.mrb[236].mxu1  ;;  %v3419_v10 = vadd.f32 %v3418_v39, %v10752_v42  ;;  %v8710_v26 = vpop.f32.mrb[239].mxu0 }
 0x35d   : > { %v11284_v44 = vadd.f32 %v3646_v23, %v10956_v29  ;;  %v8774_v58 = vpop.f32.mrb[237].mxu1 }
 0x35e   : > { %v11287_v6 = vadd.f32 %v3419_v10, %v11155_v56 }
 0x35f   : > { %v3423_v19 = vpop.f32.mrb[240].mxu0 }
 0x360   : > { %v3651_v1 = vpop.f32.mrb[238].mxu1  ;;  %v3424_v22 = vadd.f32 %v3423_v19, %v10764_v8  ;;  %v8713_v11 = vpop.f32.mrb[241].mxu0 }
 0x361   : > { %v11291_v63 = vadd.f32 %v3651_v1, %v10966_v50  ;;  %v8777_v43 = vpop.f32.mrb[239].mxu1 }
 0x362   : > { %v11294_v9 = vadd.f32 %v3424_v22, %v11163_v7 }
 0x363   : > { %v3428_v42 = vpop.f32.mrb[242].mxu0 }
 0x364   : > { %v3656_v29 = vpop.f32.mrb[240].mxu1  ;;  %v3429_v38 = vadd.f32 %v3428_v42, %v10776_v34  ;;  %v8716_v56 = vpop.f32.mrb[243].mxu0 }
 0x365   : > { %v11298_v16 = vadd.f32 %v3656_v29, %v10976_v4  ;;  %v8780_v37 = vpop.f32.mrb[241].mxu1 }
 0x366   : > { %v11301_v41 = vadd.f32 %v3429_v38, %v11171_v45 }
 0x367   : > { %v3433_v8 = vpop.f32.mrb[244].mxu0 }
 0x368   : > { %v3661_v50 = vpop.f32.mrb[242].mxu1  ;;  %v3434_v39 = vadd.f32 %v3433_v8, %v10788_v35  ;;  %v8719_v7 = vpop.f32.mrb[245].mxu0 }
 0x369   : > { %v11305_v23 = vadd.f32 %v3661_v50, %v10986_v32  ;;  %v8783_v10 = vpop.f32.mrb[243].mxu1 }
 0x36a   : > { %v11308_v26 = vadd.f32 %v3434_v39, %v11179_v31 }
 0x36b   : > { %v3438_v34 = vpop.f32.mrb[246].mxu0 }
 0x36c   : > { %v3666_v4 = vpop.f32.mrb[244].mxu1  ;;  %v3439_v58 = vadd.f32 %v3438_v34, %v10805_v2  ;;  %v8722_v45 = vpop.f32.mrb[247].mxu0 }
 0x36d   : > { %v11312_v19 = vadd.f32 %v3666_v4, %v10996_v46  ;;  %v8786_v1 = vpop.f32.mrb[245].mxu1 }
 0x36e   : > { %v11315_v22 = vadd.f32 %v3439_v58, %v11187_v27 }
 0x36f   : > { %v3443_v35 = vpop.f32.mrb[248].mxu0 }
 0x370   : > { %v3671_v32 = vpop.f32.mrb[246].mxu1  ;;  %v3444_v11 = vadd.f32 %v3443_v35, %v10816_v48  ;;  %v8725_v31 = vpop.f32.mrb[249].mxu0 }
 0x371   : > { %v11319_v43 = vadd.f32 %v3671_v32, %v11006_v51  ;;  %v8789_v42 = vpop.f32.mrb[247].mxu1 }
 0x372   : > { %v11322_v29 = vadd.f32 %v3444_v11, %v11195_v17  ;;  %v12167_v42 = vld [vmem:[#allocation26_spill] sm:$0xff] }
 0x373   : > { %v3448_v2 = vpop.f32.mrb[250].mxu0 }
 0x374   : > { %v3676_v46 = vpop.f32.mrb[248].mxu1  ;;  %v3449_v38 = vadd.f32 %v3448_v2, %v10828_v49  ;;  %v8728_v27 = vpop.f32.mrb[251].mxu0 }
 0x375   : > { %v11326_v56 = vadd.f32 %v3676_v46, %v11016_v24  ;;  %v8792_v37 = vpop.f32.mrb[249].mxu1  ;;  %v12168_v27 = vld [vmem:[#allocation8_spill] sm:$0xff] }
 0x376   : > { %v11329_v8 = vadd.f32 %v3449_v38, %v11200_v5 }
 0x377   : > { %v3453_v48 = vpop.f32.mrb[252].mxu0 }
 0x378   : > { %v3681_v51 = vpop.f32.mrb[250].mxu1  ;;  %v3454_v50 = vadd.f32 %v3453_v48, %v10838_v60  ;;  %v8731_v17 = vpop.f32.mrb[253].mxu0  ;;  %v12169_v48 = vld [vmem:[#allocation28_spill] sm:$0xff] }
 0x379   : > { %v11333_v39 = vadd.f32 %v3681_v51, %v11026_v14  ;;  %v8795_v7 = vpop.f32.mrb[251].mxu1 }
 0x37a   : > { %v11336_v10 = vadd.f32 %v3454_v50, %v11205_v54 }
 0x37b   : > { %v3458_v49 = vpop.f32.mrb[254].mxu0 }
 0x37c   : > { %v3686_v24 = vpop.f32.mrb[252].mxu1  ;;  %v3459_v34 = vadd.f32 %v3458_v49, %v10848_v40  ;;  %v8734_v5 = vpop.f32.mrb[255].mxu0  ;;  %v12170_v49 = vld [vmem:[#allocation9_spill] sm:$0xff] }
 0x37d   : > { %v11340_v4 = vadd.f32 %v3686_v24, %v11036_v0  ;;  %v8798_v58 = vpop.f32.mrb[253].mxu1 }
 0x37e   : > { %v11343_v45 = vadd.f32 %v3459_v34, %v11210_v21  ;;  %v12171_v34 = vld [vmem:[#allocation30_spill] sm:$0xff] }
 0x37f   : > { %v3463_v60 = vpop.f32.mrb[0].mxu0 }
 0x380   : > { %v3691_v14 = vpop.f32.mrb[254].mxu1  ;;  %v3464_v1 = vadd.f32 %v3463_v60, %v10858_v25  ;;  %v8737_v54 = vpop.f32.mrb[1].mxu0 }
 0x381   : > { %v11347_v35 = vadd.f32 %v3691_v14, %v11043_v33  ;;  %v8801_v32 = vpop.f32.mrb[255].mxu1  ;;  %v12172_v54 = vld [vmem:[#allocation10_spill] sm:$0xff] }
 0x382   : > { %v11350_v11 = vadd.f32 %v3464_v1, %v11215_v15 }
 0x383   : > { %v3468_v40 = vpop.f32.mrb[2].mxu0 }
 0x384   : > { %v3696_v0 = vpop.f32.mrb[0].mxu1  ;;  %v3469_v31 = vadd.f32 %v3468_v40, %v10868_v62  ;;  %v8740_v21 = vpop.f32.mrb[3].mxu0  ;;  %v12173_v40 = vld [vmem:[#allocation32_spill] sm:$0xff] }
 0x385   : > { %v11354_v2 = vadd.f32 %v3696_v0, %v12167_v42  ;;  %v8804_v46 = vpop.f32.mrb[1].mxu1 }
 0x386   : > { %v11357_v38 = vadd.f32 %v3469_v31, %v11220_v3 }
 0x387   : > { %v3473_v25 = vpop.f32.mrb[4].mxu0 }
 0x388   : > { %v3701_v33 = vpop.f32.mrb[2].mxu1  ;;  %v3474_v37 = vadd.f32 %v3473_v25, %v12168_v27  ;;  %v8743_v15 = vpop.f32.mrb[5].mxu0  ;;  %v12174_v25 = vld [vmem:[#allocation11_spill] sm:$0xff]  ;;  %v12175_v27 = vld [vmem:[#allocation34_spill] sm:$0xff] }
 0x389   : > { %v11361_v51 = vadd.f32 %v3701_v33, %v12169_v48  ;;  %v8807_v50 = vpop.f32.mrb[3].mxu1 }
 0x38a   : > { %v11364_v17 = vadd.f32 %v3474_v37, %v11225_v57 }
 0x38b   : > { %v3478_v62 = vpop.f32.mrb[6].mxu0 }
 0x38c   : > { %v3706_v7 = vpop.f32.mrb[4].mxu1  ;;  %v3479_v24 = vadd.f32 %v3478_v62, %v12170_v49  ;;  %v8746_v3 = vpop.f32.mrb[7].mxu0 }
 0x38d   : > { %v11368_v5 = vadd.f32 %v3706_v7, %v12171_v34  ;;  %v8810_v58 = vpop.f32.mrb[5].mxu1  ;;  %v12176_v7 = vld [vmem:[#allocation12_spill] sm:$0xff] }
 0x38e   : > { %v11371_v60 = vadd.f32 %v3479_v24, %v11230_v30  ;;  %v12177_v24 = vld [vmem:[#allocation36_spill] sm:$0xff] }
 0x38f   : > { %v3483_v14 = vpop.f32.mrb[8].mxu0 }
 0x390   : > { %v3711_v1 = vpop.f32.mrb[6].mxu1  ;;  %v3484_v32 = vadd.f32 %v3483_v14, %v12172_v54  ;;  %v8749_v57 = vpop.f32.mrb[9].mxu0  ;;  %v12178_v54 = vld [vmem:[#allocation13_spill] sm:$0xff] }
 0x391   : > { %v11375_v0 = vadd.f32 %v3711_v1, %v12173_v40  ;;  %v8813_v31 = vpop.f32.mrb[7].mxu1  ;;  %v12179_v40 = vld [vmem:[#allocation38_spill] sm:$0xff] }
 0x392   : > { %v11378_v42 = vadd.f32 %v3484_v32, %v11235_v61 }
 0x393   : > { %v3488_v21 = vpop.f32.mrb[10].mxu0 }
 0x394   : > { %v3716_v46 = vpop.f32.mrb[8].mxu1  ;;  %v3489_v33 = vadd.f32 %v3488_v21, %v12174_v25  ;;  %v8752_v30 = vpop.f32.mrb[11].mxu0 }
 0x395   : > { %v11382_v37 = vadd.f32 %v3716_v46, %v12175_v27  ;;  %v8816_v48 = vpop.f32.mrb[9].mxu1  ;;  %v12181_v30 = vld [vmem:[#allocation14_spill] sm:$0xff] }
 0x396   : > { %v11385_v15 = vadd.f32 %v3489_v33, %v11240_v47  ;;  %v12180_v33 = vld [vmem:[#allocation40_spill] sm:$0xff] }
 0x397   : > { %v3493_v50 = vpop.f32.mrb[12].mxu0 }
 0x398   : > { %v3721_v62 = vpop.f32.mrb[10].mxu1  ;;  %v3494_v49 = vadd.f32 %v3493_v50, %v12176_v7  ;;  %v8755_v61 = vpop.f32.mrb[13].mxu0 }
 0x399   : > { %v11389_v34 = vadd.f32 %v3721_v62, %v12177_v24  ;;  %v8819_v3 = vpop.f32.mrb[11].mxu1  ;;  %v12182_v24 = vld [vmem:[#allocation15_spill] sm:$0xff] }
 0x39a   : > { %v11392_v58 = vadd.f32 %v3494_v49, %v11245_v13 }
 0x39b   : > { %v3498_v14 = vpop.f32.mrb[14].mxu0 }
 0x39c   : > { %v3726_v1 = vpop.f32.mrb[12].mxu1  ;;  %v3499_v32 = vadd.f32 %v3498_v14, %v12178_v54  ;;  %v8758_v47 = vpop.f32.mrb[15].mxu0  ;;  %v12183_v14 = vld [vmem:[#allocation43_spill] sm:$0xff] }
 0x39d   : > { %v11396_v57 = vadd.f32 %v3726_v1, %v12179_v40  ;;  %v8822_v31 = vpop.f32.mrb[13].mxu1  ;;  %v12184_v47 = vld [vmem:[#allocation16_spill] sm:$0xff] }
 0x39e   : > { %v11399_v21 = vadd.f32 %v3499_v32, %v11248_v52  ;;  %v11411_v52 = vld [vmem:[%s12058_s4] ss:$0 sm:$0xff] }
 0x39f   : > { %v3864_v25 = vpop.f32.mrb[16].mxu0 }
 0x3a0   : > { %v3731_v46 = vpop.f32.mrb[14].mxu1  ;;  %v3865_v13 = vadd.f32 %v3864_v25, %v12181_v30  ;;  %v8832_v50 = vpop.f32.mrb[17].mxu0  ;;  %v12185_v25 = vld [vmem:[#allocation44_spill] sm:$0xff] }
 0x3a1   : > { %v11402_v27 = vadd.f32 %v3731_v46, %v12180_v33  ;;  %v8825_v48 = vpop.f32.mrb[15].mxu1  ;;  %v12186_v50 = vld [vmem:[#allocation17_spill] sm:$0xff] }
 0x3a2   : > { %v3989_v62 = vadd.f32 %v3865_v13, %v11256_v59 }
 0x3a3   : > { %v3869_v7 = vpop.f32.mrb[18].mxu0 }
 0x3a4   : > { %v4010_v49 = vadd.f32 %v3989_v62, %v11252_v12  ;;  %v3870_v61 = vadd.f32 %v3869_v7, %v12182_v24  ;;  %v8835_v3 = vpop.f32.mrb[19].mxu0 }
 0x3a6   : > { %v4031_v1 = vadd.f32 %v4010_v49, %v12183_v14  ;;  %v3990_v54 = vadd.f32 %v3870_v61, %v11269_v55 }
 0x3a7   : > { %v3874_v32 = vpop.f32.mrb[20].mxu0 }
 0x3a8   : > { %v4059_v40 = vadd.f32 %v11411_v52, %v4031_v1  ;;  %v4011_v59 = vadd.f32 %v3990_v54, %v11259_v18  ;;  %v3875_v31 = vadd.f32 %v3874_v32, %v12184_v47  ;;  %v8838_v12 = vpop.f32.mrb[21].mxu0  ;;  %v12187_v18 = vld [vmem:[#allocation45_spill] sm:$0xff]  ;;  %v12188_v1 = vld [vmem:[#allocation18_spill] sm:$0xff] }
 0x3aa   : > { %v4080_v46 = vmax.f32 %v4059_v40, 0.0  ;;  %v4032_v33 = vadd.f32 %v4011_v59, %v12185_v25  ;;  %v3991_v30 = vadd.f32 %v3875_v31, %v11277_v36 }
 0x3ab   : > { %v3879_v13 = vpop.f32.mrb[22].mxu0 }
 0x3ac   : > { %4101 = vst.msk [vmem:[#allocation3] sm:$0xff] %vm1637_vm4, %v4080_v46  ;;  %v4060_v48 = vadd.f32 %v11411_v52, %v4032_v33  ;;  %v4012_v55 = vadd.f32 %v3991_v30, %v11272_v20  ;;  %v3880_v62 = vadd.f32 %v3879_v13, %v12186_v50  ;;  %v8841_v7 = vpop.f32.mrb[23].mxu0  ;;  %v12189_v20 = vld [vmem:[#allocation46_spill] sm:$0xff]  ;;  %v12190_v46 = vld [vmem:[#allocation19_spill] sm:$0xff] }
 0x3ae   : > { %v4081_v49 = vmax.f32 %v4060_v48, 0.0  ;;  %v4033_v24 = vadd.f32 %v4012_v55, %v12187_v18  ;;  %v3992_v61 = vadd.f32 %v3880_v62, %v11284_v44  ;;  %v12192_v62 = vld [vmem:[#allocation20_spill] sm:$0xff] }
 0x3af   : > { %v3884_v3 = vpop.f32.mrb[24].mxu0 }
 0x3b0   : > { %4102 = vst.msk [vmem:[#allocation3 + $0x8] sm:$0xff] %vm1637_vm4, %v4081_v49  ;;  %v4061_v36 = vadd.f32 %v11411_v52, %v4033_v24  ;;  %v4013_v14 = vadd.f32 %v3992_v61, %v11280_v53  ;;  %v3885_v54 = vadd.f32 %v3884_v3, %v12188_v1  ;;  %v8844_v32 = vpop.f32.mrb[25].mxu0  ;;  %v12191_v53 = vld [vmem:[#allocation47_spill] sm:$0xff]  ;;  %v12193_v24 = vld [vmem:[#allocation48_spill] sm:$0xff] }
 0x3b2   : > { %v4082_v40 = vmax.f32 %v4061_v36, 0.0  ;;  %v4034_v59 = vadd.f32 %v4013_v14, %v12189_v20  ;;  %v3993_v47 = vadd.f32 %v3885_v54, %v11291_v63 }
 0x3b3   : > { %v3889_v31 = vpop.f32.mrb[26].mxu0  ;;  %v4122_v1 = vld [vmem:[#allocation3] sm:$0xff] }
 0x3b4   : > { %4103 = vst.msk [vmem:[#allocation3 + $0x10] sm:$0xff] %vm1637_vm4, %v4082_v40  ;;  %v4062_v44 = vadd.f32 %v11411_v52, %v4034_v59  ;;  %v4014_v12 = vadd.f32 %v3993_v47, %v11287_v6  ;;  %v3890_v25 = vadd.f32 %v3889_v31, %v12190_v46  ;;  %v8847_v33 = vpop.f32.mrb[27].mxu0 }
 0x3b6   : > { %v4083_v30 = vmax.f32 %v4062_v44, 0.0  ;;  %v4035_v13 = vadd.f32 %v4014_v12, %v12191_v53  ;;  %v3994_v48 = vadd.f32 %v3890_v25, %v11298_v16  ;;  %v12195_v12 = vld [vmem:[#allocation49_spill] sm:$0xff] }
 0x3b7   : > { %v3894_v55 = vpop.f32.mrb[28].mxu0  ;;  %v4141_v18 = vld [vmem:[#allocation3 + $0x1] sm:$0xff] }
 0x3b8   : > { %4104 = vst.msk [vmem:[#allocation3 + $0x18] sm:$0xff] %vm1637_vm4, %v4083_v30  ;;  %v4063_v63 = vadd.f32 %v11411_v52, %v4035_v13  ;;  %v4015_v50 = vadd.f32 %v3994_v48, %v11294_v9  ;;  %v3895_v7 = vadd.f32 %v3894_v55, %v12192_v62  ;;  %v8850_v49 = vpop.f32.mrb[29].mxu0  ;;  %v12194_v9 = vld [vmem:[#allocation21_spill] sm:$0xff]  ;;  %v4160_v59 = vmax.f32 %v4122_v1, %v4141_v18  ;;  %v12196_v55 = vld [vmem:[#allocation22_spill] sm:$0xff]  ;;  %v12198_v1 = vld [vmem:[#allocation23_spill] sm:$0xff] }
 0x3b9   : > { %v4123_v53 = vld [vmem:[#allocation3 + $0x8] sm:$0xff] }
 0x3ba   : > { %v4084_v6 = vmax.f32 %v4063_v63, 0.0  ;;  %v4036_v61 = vadd.f32 %v4015_v50, %v12193_v24  ;;  %v3995_v3 = vadd.f32 %v3895_v7, %v11305_v23 }
 0x3bb   : > { %v4179_v36 = vld [vmem:[#allocation3 + $0xe] sm:$0xff]  ;;  %v3899_v14 = vpop.f32.mrb[30].mxu0 }
 0x3bc   : > { %v4198_v16 = vld [vmem:[#allocation3 + $0xf] sm:$0xff]  ;;  %4105 = vst.msk [vmem:[#allocation3 + $0x20] sm:$0xff] %vm1637_vm4, %v4084_v6  ;;  %v4064_v54 = vadd.f32 %v11411_v52, %v4036_v61  ;;  %v4016_v32 = vadd.f32 %v3995_v3, %v11301_v41  ;;  %v3900_v40 = vadd.f32 %v3899_v14, %v12194_v9  ;;  %v8853_v20 = vpop.f32.mrb[31].mxu0  ;;  %v4357_v61 = vld [vmem:[%s12059_s5 + $0x30] sm:$0xff] }
 0x3bd   : > { %v4217_v47 = vmax.f32 %v4179_v36, %v4198_v16  ;;  %v4142_v31 = vld [vmem:[#allocation3 + $0x9] sm:$0xff]  ;;  %v12199_v9 = vld [vmem:[#allocation51_spill] sm:$0xff] }
 0x3be   : > { %v4085_v44 = vmax.f32 %v4064_v54, 0.0  ;;  %v4037_v46 = vadd.f32 %v4016_v32, %v12195_v12  ;;  %v3996_v23 = vadd.f32 %v3900_v40, %v11312_v19  ;;  %v4161_v62 = vmax.f32 %v4123_v53, %v4142_v31  ;;  %v12197_v19 = vld [vmem:[#allocation50_spill] sm:$0xff] }
 0x3bf   : > { %v4236_v25 = vmax.f32 %v4160_v59, %v4217_v47  ;;  %v4180_v33 = vld [vmem:[#allocation3 + $0x16] sm:$0xff]  ;;  %v3904_v30 = vpop.f32.mrb[32].mxu0 }
 0x3c0   : > { %v4199_v13 = vld [vmem:[#allocation3 + $0x17] sm:$0xff]  ;;  %4106 = vst.msk [vmem:[#allocation3 + $0x28] sm:$0xff] %vm1637_vm4, %v4085_v44  ;;  %v4065_v41 = vadd.f32 %v11411_v52, %v4037_v46  ;;  %v4017_v48 = vadd.f32 %v3996_v23, %v11308_v26  ;;  %v3905_v63 = vadd.f32 %v3904_v30, %v12196_v55  ;;  %v8856_v50 = vpop.f32.mrb[33].mxu0  ;;  %v4358_v26 = vld [vmem:[%s12059_s5 + $0x38] sm:$0xff]  ;;  %v4436_v44 = vld [vmem:[%s12059_s5 + $0x50] sm:$0xff] }
 0x3c1   : > { %4255 = vst.msk [vmem:[#allocation4] sm:$0xff] %vm1637_vm4, %v4236_v25  ;;  %v4218_v7 = vmax.f32 %v4180_v33, %v4199_v13  ;;  %v9234_v59 = vpack.c.bf16 %v4358_v26, %v4357_v61  ;;  %v4125_v12 = vld [vmem:[#allocation3 + $0x18] sm:$0xff] }
 0x3c2   : > { %v4086_v49 = vmax.f32 %v4065_v41, 0.0  ;;  %v4038_v18 = vadd.f32 %v4017_v48, %v12197_v19  ;;  %v3997_v6 = vadd.f32 %v3905_v63, %v11319_v43  ;;  %v12201_v63 = vld [vmem:[#allocation52_spill] sm:$0xff] }
 0x3c3   : > { %v3909_v24 = vpop.f32.mrb[34].mxu0  ;;  %v4237_v3 = vmax.f32 %v4161_v62, %v4218_v7  ;;  %v4144_v43 = vld [vmem:[#allocation3 + $0x19] sm:$0xff]  ;;  %v12202_v7 = vmov 0.0  }
 0x3c4   : > { %4107 = vst.msk [vmem:[#allocation3 + $0x30] sm:$0xff] %vm1637_vm4, %v4086_v49  ;;  %v4066_v36 = vadd.f32 %v11411_v52, %v4038_v18  ;;  %v4018_v14 = vadd.f32 %v3997_v6, %v11315_v22  ;;  %v3910_v16 = vadd.f32 %v3909_v24, %v12198_v1  ;;  %v8859_v54 = vpop.f32.mrb[35].mxu0  ;;  %v4437_v22 = vld [vmem:[%s12059_s5 + $0x58] sm:$0xff]  ;;  %v4163_v13 = vmax.f32 %v4125_v12, %v4144_v43  ;;  %v4515_v18 = vld [vmem:[%s12059_s5 + $0x70] sm:$0xff] }
 0x3c5   : > { %4256 = vst.msk [vmem:[#allocation4 + $0x8] sm:$0xff] %vm1637_vm4, %v4237_v3  ;;  %v9237_v49 = vpack.c.bf16 %v4437_v22, %v4436_v44  ;;  %v4516_v6 = vld [vmem:[%s12059_s5 + $0x78] sm:$0xff]  ;;  %v4126_v61 = vld [vmem:[#allocation3 + $0x20] sm:$0xff]  ;;  %v4671_v44 = vld [vmem:[%s12059_s5 + $0xa8] sm:$0xff] }
 0x3c6   : > { %v4087_v32 = vmax.f32 %v4066_v36, 0.0  ;;  %v4039_v40 = vadd.f32 %v4018_v14, %v12199_v9  ;;  %v3998_v20 = vadd.f32 %v3910_v16, %v11326_v56  ;;  %v12200_v56 = vld [vmem:[#allocation24_spill] sm:$0xff]  ;;  %v12203_v36 = vld [vmem:[#allocation25_spill] sm:$0xff] }
 0x3c7   : > { %v4182_v47 = vld [vmem:[#allocation3 + $0x26] sm:$0xff]  ;;  %v3914_v31 = vpop.f32.mrb[36].mxu0 }
 0x3c8   : > { %v4201_v46 = vld [vmem:[#allocation3 + $0x27] sm:$0xff]  ;;  %4108 = vst.msk [vmem:[#allocation3 + $0x38] sm:$0xff] %vm1637_vm4, %v4087_v32  ;;  %v4067_v23 = vadd.f32 %v11411_v52, %v4039_v40  ;;  %v4019_v25 = vadd.f32 %v3998_v20, %v11322_v29  ;;  %v3915_v33 = vadd.f32 %v3914_v31, %v12200_v56  ;;  %v8862_v30 = vpop.f32.mrb[37].mxu0 }
 0x3c9   : > { %v4277_v53 = vld [vmem:[#allocation4 + $0x2] sm:$0x1]  ;;  %v4220_v41 = vmax.f32 %v4182_v47, %v4201_v46  ;;  %v4145_v48 = vld [vmem:[#allocation3 + $0x21] sm:$0xff]  ;;  %v4356_v16 = vld [vmem:[#allocation4 + $0x6] sm:$0x1] }
 0x3ca   : > { %8898 = vmatmul.mubr.msk.f32.vlgmr.msra.gmra.mrb[16].mxu1 %vm1637_vm4, %v4277_v53  ;;  %v4088_v55 = vmax.f32 %v4067_v23, 0.0  ;;  %v4040_v50 = vadd.f32 %v4019_v25, %v12201_v63  ;;  %v3999_v62 = vadd.f32 %v3915_v33, %v11333_v39  ;;  %v4164_v54 = vmax.f32 %v4126_v61, %v4145_v48  ;;  %v12204_v9 = vld [vmem:[#allocation53_spill] sm:$0xff]  ;;  %v12205_v23 = vld [vmem:[#allocation27_spill] sm:$0xff] }
 0x3cb   : > { %9235 = vmatpush3.bf16.msra.mxu1 %v9234_v59  ;;  %8904 = vmatprep.mubr.msk.f32.mxu1 %vm9541_vm2, %v12202_v7  ;;  %v4183_v29 = vld [vmem:[#allocation3 + $0x2e] sm:$0xff]  ;;  %v3919_v19 = vpop.f32.mrb[38].mxu0  ;;  %v4239_v24 = vmax.f32 %v4163_v13, %v4220_v41  ;;  %v4594_v59 = vld [vmem:[%s12059_s5 + $0x90] sm:$0xff]  ;;  %v4829_v61 = vld [vmem:[%s12059_s5 + $0xe8] sm:$0xff] }
 0x3cc   : > { %9236 = vmatprep.subr.bf16.mxu1 %v12088_v28  ;;  %v4202_v39 = vld [vmem:[#allocation3 + $0x2f] sm:$0xff]  ;;  %4109 = vst.msk [vmem:[#allocation3 + $0x40] sm:$0xff] %vm1637_vm4, %v4088_v55  ;;  %v4068_v26 = vadd.f32 %v11411_v52, %v4040_v50  ;;  %v4020_v3 = vadd.f32 %v3999_v62, %v11329_v8  ;;  %v3920_v14 = vadd.f32 %v3919_v19, %v12203_v36  ;;  %v8865_v1 = vpop.f32.mrb[39].mxu0 }
 0x3cd   : > { %v4221_v43 = vmax.f32 %v4183_v29, %v4202_v39  ;;  %4258 = vst.msk [vmem:[#allocation4 + $0x18] sm:$0xff] %vm1637_vm4, %v4239_v24  ;;  %v9240_v8 = vpack.c.bf16 %v4516_v6, %v4515_v18  ;;  %v4595_v47 = vld [vmem:[%s12059_s5 + $0x98] sm:$0xff]  ;;  %v4435_v33 = vld [vmem:[#allocation4 + $0xa] sm:$0x1]  ;;  %v4752_v1 = vld [vmem:[%s12059_s5 + $0xd0] sm:$0xff] }
 0x3ce   : > { %8905 = vmatmul.mubr.msk.f32.vlgmr.msra.gmra.mrb[18].mxu1 %vm1637_vm4, %v4356_v16  ;;  %v4089_v32 = vmax.f32 %v4068_v26, 0.0  ;;  %v4041_v40 = vadd.f32 %v4020_v3, %v12204_v9  ;;  %v4000_v20 = vadd.f32 %v3920_v14, %v11340_v4  ;;  %v4670_v4 = vld [vmem:[%s12059_s5 + $0xa0] sm:$0xff]  ;;  %v9243_v30 = vpack.c.bf16 %v4595_v47, %v4594_v59  ;;  %v4674_v50 = vld [vmem:[%s12059_s5 + $0xb8] sm:$0xff] }
 0x3cf   : > { %9238 = vmatpush3.bf16.msra.mxu1 %v9237_v49  ;;  %8911 = vmatprep.mubr.msk.f32.mxu1 %vm9541_vm2, %v12202_v7  ;;  %v3924_v31 = vpop.f32.mrb[40].mxu0  ;;  %v4240_v22 = vmax.f32 %v4164_v54, %v4221_v43  ;;  %v12206_v13 = vld [vmem:[#allocation54_spill] sm:$0xff]  ;;  %v9300_v55 = vpack.c.bf16 %v4671_v44, %v4670_v4  ;;  %v12207_v49 = vld [vmem:[#allocation29_spill] sm:$0xff] }
 0x3d0   : > { %9239 = vmatprep.subr.bf16.mxu1 %v12088_v28  ;;  %4110 = vst.msk [vmem:[#allocation3 + $0x48] sm:$0xff] %vm1637_vm4, %v4089_v32  ;;  %v4069_v12 = vadd.f32 %v11411_v52, %v4041_v40  ;;  %v4021_v46 = vadd.f32 %v4000_v20, %v11336_v10  ;;  %v3925_v25 = vadd.f32 %v3924_v31, %v12205_v23  ;;  %v8868_v56 = vpop.f32.mrb[41].mxu0  ;;  %v4673_v10 = vld [vmem:[%s12059_s5 + $0xb0] sm:$0xff]  ;;  %v4828_v24 = vld [vmem:[%s12059_s5 + $0xe0] sm:$0xff]  ;;  %v4129_v16 = vld [vmem:[#allocation3 + $0x38] sm:$0xff] }
 0x3d1   : > { %4259 = vst.msk [vmem:[#allocation4 + $0x20] sm:$0xff] %vm1637_vm4, %v4240_v22  ;;  %v9246_v14 = vpack.c.bf16 %v4674_v50, %v4673_v10  ;;  %v12209_v20 = vld [vmem:[#allocation31_spill] sm:$0xff]  ;;  %v9306_v4 = vpack.c.bf16 %v4829_v61, %v4828_v24  ;;  %v12210_v23 = vld [vmem:[#allocation56_spill] sm:$0xff] }
 0x3d2   : > { %8912 = vmatmul.mubr.msk.f32.vlgmr.msra.gmra.mrb[20].mxu1 %vm1637_vm4, %v4435_v33  ;;  %v4090_v53 = vmax.f32 %v4069_v12, 0.0  ;;  %v4042_v41 = vadd.f32 %v4021_v46, %v12206_v13  ;;  %v4001_v48 = vadd.f32 %v3925_v25, %v11347_v35  ;;  %v4832_v24 = vld [vmem:[%s12059_s5 + $0xf8] sm:$0xff] }
 0x3d3   : > { %9241 = vmatpush3.bf16.msra.mxu1 %v9240_v8  ;;  %8918 = vmatprep.mubr.msk.f32.mxu1 %vm9541_vm2, %v12202_v7  ;;  %v3929_v63 = vpop.f32.mrb[42].mxu0  ;;  %v4148_v39 = vld [vmem:[#allocation3 + $0x39] sm:$0xff] }
 0x3d4   : > { %9242 = vmatprep.subr.bf16.mxu1 %v12088_v28  ;;  %4111 = vst.msk [vmem:[#allocation3 + $0x50] sm:$0xff] %vm1637_vm4, %v4090_v53  ;;  %v4070_v35 = vadd.f32 %v11411_v52, %v4042_v41  ;;  %v4022_v62 = vadd.f32 %v4001_v48, %v11343_v45  ;;  %v3930_v29 = vadd.f32 %v3929_v63, %v12207_v49  ;;  %v8871_v19 = vpop.f32.mrb[43].mxu0  ;;  %v4514_v18 = vld [vmem:[#allocation4 + $0x1e] sm:$0x1]  ;;  %v4511_v6 = vld [vmem:[#allocation4 + $0x1c] sm:$0x1] }
 0x3d5   : > { %9045 = vmatmul.mubr.msk.f32.vlgmr.msra.gmra.mrb[58].mxu0 %vm1637_vm4, %v4511_v6  ;;  %v12208_v45 = vld [vmem:[#allocation55_spill] sm:$0xff]  ;;  %v4167_v44 = vmax.f32 %v4129_v16, %v4148_v39 }
 0x3d6   : > { %8919 = vmatmul.mubr.msk.f32.vlgmr.msra.gmra.mrb[22].mxu1 %vm1637_vm4, %v4514_v18  ;;  %v4091_v26 = vmax.f32 %v4070_v35, 0.0  ;;  %v4043_v3 = vadd.f32 %v4022_v62, %v12208_v45  ;;  %v4002_v36 = vadd.f32 %v3930_v29, %v11354_v2  ;;  %9301 = vmatpush3.bf16.msra.mxu0 %v9300_v55  ;;  %v4753_v2 = vld [vmem:[%s12059_s5 + $0xd8] sm:$0xff]  ;;  %v4130_v13 = vld [vmem:[#allocation3 + $0x40] sm:$0xff] }
 0x3d7   : > { %9244 = vmatpush3.bf16.msra.mxu1 %v9243_v30  ;;  %v4186_v54 = vld [vmem:[#allocation3 + $0x46] sm:$0xff]  ;;  %v3934_v43 = vpop.f32.mrb[44].mxu0  ;;  %8925 = vmatprep.mubr.msk.f32.mxu1 %vm9541_vm2, %v12202_v7  ;;  %v9249_v56 = vpack.c.bf16 %v4753_v2, %v4752_v1  ;;  %v12213_v45 = vld [vmem:[#allocation35_spill] sm:$0xff] }
 0x3d8   : > { %9058 = vmatprep.mubr.msk.f32.mxu0 %vm9541_vm2, %v12202_v7  ;;  %v4205_v32 = vld [vmem:[#allocation3 + $0x47] sm:$0xff]  ;;  %4112 = vst.msk [vmem:[#allocation3 + $0x58] sm:$0xff] %vm1637_vm4, %v4091_v26  ;;  %v4071_v9 = vadd.f32 %v11411_v52, %v4043_v3  ;;  %v4023_v40 = vadd.f32 %v4002_v36, %v11350_v11  ;;  %v3935_v8 = vadd.f32 %v3934_v43, %v12209_v20  ;;  %v8874_v59 = vpop.f32.mrb[45].mxu0 }
 0x3d9   : > { %v4593_v47 = vld [vmem:[#allocation4 + $0x22] sm:$0x1]  ;;  %9245 = vmatprep.subr.bf16.mxu1 %v12088_v28  ;;  %v4669_v31 = vld [vmem:[#allocation4 + $0x24] sm:$0x1]  ;;  %v4224_v22 = vmax.f32 %v4186_v54, %v4205_v32  ;;  %v4149_v12 = vld [vmem:[#allocation3 + $0x41] sm:$0xff]  ;;  %9305 = vmatprep.subr.bf16.mxu0 %v12088_v28 }
 0x3da   : > { %8926 = vmatmul.mubr.msk.f32.vlgmr.msra.gmra.mrb[24].mxu1 %vm1637_vm4, %v4593_v47  ;;  %9059 = vmatmul.mubr.msk.f32.vlgmr.msra.gmra.mrb[60].mxu0 %vm1637_vm4, %v4669_v31  ;;  %v4092_v46 = vmax.f32 %v4071_v9, 0.0  ;;  %v4044_v25 = vadd.f32 %v4023_v40, %v12210_v23  ;;  %v4003_v11 = vadd.f32 %v3935_v8, %v11361_v51  ;;  %v12211_v55 = vld [vmem:[#allocation33_spill] sm:$0xff]  ;;  %v4168_v35 = vmax.f32 %v4130_v13, %v4149_v12  ;;  %v12214_v54 = vld [vmem:[#allocation58_spill] sm:$0xff] }
 0x3db   : > { %9247 = vmatpush3.bf16.msra.mxu1 %v9246_v14  ;;  %8932 = vmatprep.mubr.msk.f32.mxu1 %vm9541_vm2, %v12202_v7  ;;  %v4187_v33 = vld [vmem:[#allocation3 + $0x4e] sm:$0xff]  ;;  %v3939_v30 = vpop.f32.mrb[46].mxu0  ;;  %v4243_v53 = vmax.f32 %v4167_v44, %v4224_v22  ;;  %v4987_v14 = vld [vmem:[%s12059_s5 + $0x128] sm:$0xff] }
 0x3dc   : > { %9248 = vmatprep.subr.bf16.mxu1 %v12088_v28  ;;  %v4206_v41 = vld [vmem:[#allocation3 + $0x4f] sm:$0xff]  ;;  %4113 = vst.msk [vmem:[#allocation3 + $0x60] sm:$0xff] %vm1637_vm4, %v4092_v46  ;;  %v4072_v48 = vadd.f32 %v11411_v52, %v4044_v25  ;;  %v4024_v51 = vadd.f32 %v4003_v11, %v11357_v38  ;;  %v3940_v10 = vadd.f32 %v3939_v30, %v12211_v55  ;;  %v8877_v63 = vpop.f32.mrb[47].mxu0  ;;  %v4672_v50 = vld [vmem:[#allocation4 + $0x26] sm:$0x1]  ;;  %v4831_v38 = vld [vmem:[%s12059_s5 + $0xf0] sm:$0xff] }
 0x3dd   : > { %9307 = vmatpush3.bf16.msra.mxu0 %v9306_v4  ;;  %v4225_v62 = vmax.f32 %v4187_v33, %v4206_v41  ;;  %9072 = vmatprep.mubr.msk.f32.mxu0 %vm9541_vm2, %v12202_v7  ;;  %4262 = vst.msk [vmem:[#allocation4 + $0x38] sm:$0xff] %vm1637_vm4, %v4243_v53  ;;  %v12212_v29 = vld [vmem:[#allocation57_spill] sm:$0xff]  ;;  %v9252_v32 = vpack.c.bf16 %v4832_v24, %v4831_v38  ;;  %v12216_v33 = vld [vmem:[#allocation59_spill] sm:$0xff] }
 0x3de   : > { %8933 = vmatmul.mubr.msk.f32.vlgmr.msra.gmra.mrb[26].mxu1 %vm1637_vm4, %v4672_v50  ;;  %v4093_v49 = vmax.f32 %v4072_v48, 0.0  ;;  %v4045_v19 = vadd.f32 %v4024_v51, %v12212_v29  ;;  %v4004_v18 = vadd.f32 %v3940_v10, %v11368_v5  ;;  %9311 = vmatprep.subr.bf16.mxu0 %v12088_v28  ;;  %v4986_v5 = vld [vmem:[%s12059_s5 + $0x120] sm:$0xff]  ;;  %v4911_v8 = vld [vmem:[%s12059_s5 + $0x118] sm:$0xff]  ;;  %v4989_v48 = vld [vmem:[%s12059_s5 + $0x130] sm:$0xff] }
 0x3df   : > { %9250 = vmatpush3.bf16.msra.mxu1 %v9249_v56  ;;  %8939 = vmatprep.mubr.msk.f32.mxu1 %vm9541_vm2, %v12202_v7  ;;  %v3944_v6 = vpop.f32.mrb[48].mxu0  ;;  %v4244_v61 = vmax.f32 %v4168_v35, %v4225_v62  ;;  %v4151_v1 = vld [vmem:[#allocation3 + $0x51] sm:$0xff]  ;;  %v9312_v59 = vpack.c.bf16 %v4987_v14, %v4986_v5  ;;  %v4990_v51 = vld [vmem:[%s12059_s5 + $0x138] sm:$0xff]  ;;  %v12217_v35 = vld [vmem:[#allocation39_spill] sm:$0xff] }
 0x3e0   : > { %9251 = vmatprep.subr.bf16.mxu1 %v12088_v28  ;;  %4114 = vst.msk [vmem:[#allocation3 + $0x68] sm:$0xff] %vm1637_vm4, %v4093_v49  ;;  %v4073_v39 = vadd.f32 %v11411_v52, %v4045_v19  ;;  %v4025_v26 = vadd.f32 %v4004_v18, %v11364_v17  ;;  %v3945_v3 = vadd.f32 %v3944_v6, %v12213_v45  ;;  %v8880_v36 = vpop.f32.mrb[49].mxu0  ;;  %v4910_v17 = vld [vmem:[%s12059_s5 + $0x110] sm:$0xff]  ;;  %v4132_v9 = vld [vmem:[#allocation3 + $0x50] sm:$0xff]  ;;  %v5145_v45 = vld [vmem:[%s12059_s5 + $0x168] sm:$0xff] }
 0x3e1   : > { %4263 = vst.msk [vmem:[#allocation4 + $0x40] sm:$0xff] %vm1637_vm4, %v4244_v61  ;;  %v12215_v4 = vld [vmem:[#allocation37_spill] sm:$0xff]  ;;  %v4170_v23 = vmax.f32 %v4132_v9, %v4151_v1  ;;  %v12218_v6 = vld [vmem:[#allocation60_spill] sm:$0xff]  ;;  %v9258_v61 = vpack.c.bf16 %v4990_v51, %v4989_v48 }
 0x3e2   : > { %v4094_v16 = vmax.f32 %v4073_v39, 0.0  ;;  %v4046_v43 = vadd.f32 %v4025_v26, %v12214_v54  ;;  %v4005_v2 = vadd.f32 %v3945_v3, %v11375_v0  ;;  %v5068_v5 = vld [vmem:[%s12059_s5 + $0x150] sm:$0xff]  ;;  %v5069_v39 = vld [vmem:[%s12059_s5 + $0x158] sm:$0xff] }
 0x3e3   : > { %v4189_v40 = vld [vmem:[#allocation3 + $0x5e] sm:$0xff]  ;;  %v3949_v20 = vpop.f32.mrb[50].mxu0  ;;  %v12219_v1 = vld [vmem:[#allocation41_spill] sm:$0xff] }
 0x3e4   : > { %v4208_v47 = vld [vmem:[#allocation3 + $0x5f] sm:$0xff]  ;;  %4115 = vst.msk [vmem:[#allocation3 + $0x70] sm:$0xff] %vm1637_vm4, %v4094_v16  ;;  %v4074_v31 = vadd.f32 %v11411_v52, %v4046_v43  ;;  %v4026_v0 = vadd.f32 %v4005_v2, %v11371_v60  ;;  %v3950_v44 = vadd.f32 %v3949_v20, %v12215_v4  ;;  %v8883_v22 = vpop.f32.mrb[51].mxu0  ;;  %v9255_v60 = vpack.c.bf16 %v4911_v8, %v4910_v17  ;;  %v12220_v9 = vld [vmem:[#allocation61_spill] sm:$0xff]  ;;  %v12221_v4 = vld [vmem:[#allocation42_spill] sm:$0xff] }
 0x3e5   : > { %v4751_v12 = vld [vmem:[#allocation4 + $0x3a] sm:$0x1]  ;;  %v4827_v46 = vld [vmem:[#allocation4 + $0x3c] sm:$0x1]  ;;  %v4227_v25 = vmax.f32 %v4189_v40, %v4208_v47  ;;  %v4152_v11 = vld [vmem:[#allocation3 + $0x59] sm:$0xff]  ;;  %v9261_v2 = vpack.c.bf16 %v5069_v39, %v5068_v5 }
 0x3e6   : > { %8940 = vmatmul.mubr.msk.f32.vlgmr.msra.gmra.mrb[28].mxu1 %vm1637_vm4, %v4751_v12  ;;  %9073 = vmatmul.mubr.msk.f32.vlgmr.msra.gmra.mrb[62].mxu0 %vm1637_vm4, %v4827_v46  ;;  %v4095_v56 = vmax.f32 %v4074_v31, 0.0  ;;  %v4047_v30 = vadd.f32 %v4026_v0, %v12216_v33  ;;  %v4006_v53 = vadd.f32 %v3950_v44, %v11382_v37  ;;  %v4133_v37 = vld [vmem:[#allocation3 + $0x58] sm:$0xff]  ;;  %v4830_v29 = vld [vmem:[#allocation4 + $0x3e] sm:$0x1]  ;;  %v5148_v8 = vld [vmem:[%s12059_s5 + $0x178] sm:$0xff] }
 0x3e7   : > { %9253 = vmatpush3.bf16.msra.mxu1 %v9252_v32  ;;  %8946 = vmatprep.mubr.msk.f32.mxu1 %vm9541_vm2, %v12202_v7  ;;  %v4190_v13 = vld [vmem:[#allocation3 + $0x66] sm:$0xff]  ;;  %v3954_v41 = vpop.f32.mrb[52].mxu0  ;;  %v4246_v55 = vmax.f32 %v4170_v23, %v4227_v25  ;;  %v4171_v19 = vmax.f32 %v4133_v37, %v4152_v11  ;;  %v12222_v11 = vld [vmem:[#allocation62_spill] sm:$0xff] }
 0x3e8   : > { %9254 = vmatprep.subr.bf16.mxu1 %v12088_v28  ;;  %9313 = vmatpush3.bf16.msra.mxu0 %v9312_v59  ;;  %v4209_v10 = vld [vmem:[#allocation3 + $0x67] sm:$0xff]  ;;  %4116 = vst.msk [vmem:[#allocation3 + $0x78] sm:$0xff] %vm1637_vm4, %v4095_v56  ;;  %v4075_v63 = vadd.f32 %v11411_v52, %v4047_v30  ;;  %v4027_v50 = vadd.f32 %v4006_v53, %v11378_v42  ;;  %v8886_v49 = vpop.f32.mrb[53].mxu0  ;;  %v5302_v59 = vld [vmem:[%s12059_s5 + $0x1a0] sm:$0xff] }
 0x3e9   : > { %v3955_v62 = vadd.f32 %v3954_v41, %v12217_v35  ;;  %9086 = vmatprep.mubr.msk.f32.mxu0 %vm9541_vm2, %v12202_v7  ;;  %v4228_v18 = vmax.f32 %v4190_v13, %v4209_v10  ;;  %4265 = vst.msk [vmem:[#allocation4 + $0x50] sm:$0xff] %vm1637_vm4, %v4246_v55  ;;  %9317 = vmatprep.subr.bf16.mxu0 %v12088_v28  ;;  %v4909_v43 = vld [vmem:[#allocation4 + $0x42] sm:$0x1]  ;;  %v5147_v32 = vld [vmem:[%s12059_s5 + $0x170] sm:$0xff] }
 0x3ea   : > { %8947 = vmatmul.mubr.msk.f32.vlgmr.msra.gmra.mrb[30].mxu1 %vm1637_vm4, %v4830_v29  ;;  %v4096_v38 = vmax.f32 %v4075_v63, 0.0  ;;  %v4048_v24 = vadd.f32 %v4027_v50, %v12218_v6  ;;  %v9264_v30 = vpack.c.bf16 %v5148_v8, %v5147_v32  ;;  %v5227_v13 = vld [vmem:[%s12059_s5 + $0x198] sm:$0xff]  ;;  %v5463_v8 = vld [vmem:[%s12059_s5 + $0x1f0] sm:$0xff] }
 0x3eb   : > { %v4007_v42 = vadd.f32 %v3955_v62, %v11389_v34  ;;  %9256 = vmatpush3.bf16.msra.mxu1 %v9255_v60  ;;  %8953 = vmatprep.mubr.msk.f32.mxu1 %vm9541_vm2, %v12202_v7  ;;  %v3959_v26 = vpop.f32.mrb[54].mxu0  ;;  %v5144_v34 = vld [vmem:[%s12059_s5 + $0x160] sm:$0xff]  ;;  %v4247_v3 = vmax.f32 %v4171_v19, %v4228_v18  ;;  %v12223_v62 = vld [vmem:[#allocation63_spill] sm:$0xff]  ;;  %v5306_v39 = vld [vmem:[%s12059_s5 + $0x1b8] sm:$0xff] }
 0x3ec   : > { %9257 = vmatprep.subr.bf16.mxu1 %v12088_v28  ;;  %4117 = vst.msk [vmem:[#allocation3 + $0x80] sm:$0xff] %vm1637_vm4, %v4096_v38  ;;  %v4076_v36 = vadd.f32 %v11411_v52, %v4048_v24  ;;  %v3960_v16 = vadd.f32 %v3959_v26, %v12219_v1  ;;  %v8889_v54 = vpop.f32.mrb[55].mxu0  ;;  %v4136_v53 = vld [vmem:[#allocation3 + $0x70] sm:$0xff]  ;;  %v5385_v1 = vld [vmem:[%s12059_s5 + $0x1d8] sm:$0xff] }
 0x3ed   : > { %v4028_v14 = vadd.f32 %v4007_v42, %v11385_v15  ;;  %4266 = vst.msk [vmem:[#allocation4 + $0x58] sm:$0xff] %vm1637_vm4, %v4247_v3  ;;  %v9318_v15 = vpack.c.bf16 %v5145_v45, %v5144_v34  ;;  %v5460_v34 = vld [vmem:[%s12059_s5 + $0x1e0] sm:$0xff]  ;;  %v5461_v45 = vld [vmem:[%s12059_s5 + $0x1e8] sm:$0xff] }
 0x3ee   : > { %8954 = vmatmul.mubr.msk.f32.vlgmr.msra.gmra.mrb[32].mxu1 %vm1637_vm4, %v4909_v43  ;;  %v4097_v17 = vmax.f32 %v4076_v36, 0.0  ;;  %v4008_v20 = vadd.f32 %v3960_v16, %v11396_v57  ;;  %v5303_v57 = vld [vmem:[%s12059_s5 + $0x1a8] sm:$0xff] }
 0x3ef   : > { %v4049_v40 = vadd.f32 %v4028_v14, %v12220_v9  ;;  %9259 = vmatpush3.bf16.msra.mxu1 %v9258_v61  ;;  %8960 = vmatprep.mubr.msk.f32.mxu1 %vm9541_vm2, %v12202_v7  ;;  %v3964_v47 = vpop.f32.mrb[56].mxu0  ;;  %v4155_v23 = vld [vmem:[#allocation3 + $0x71] sm:$0xff]  ;;  %v5384_v14 = vld [vmem:[%s12059_s5 + $0x1d0] sm:$0xff] }
 0x3f0   : > { %9260 = vmatprep.subr.bf16.mxu1 %v12088_v28  ;;  %4118 = vst.msk [vmem:[#allocation3 + $0x88] sm:$0xff] %vm1637_vm4, %v4097_v17  ;;  %v4029_v0 = vadd.f32 %v4008_v20, %v11392_v58  ;;  %v3965_v44 = vadd.f32 %v3964_v47, %v12221_v4  ;;  %v8892_v22 = vpop.f32.mrb[57].mxu0  ;;  %v4988_v12 = vld [vmem:[#allocation4 + $0x56] sm:$0x1]  ;;  %v4985_v46 = vld [vmem:[#allocation4 + $0x54] sm:$0x1]  ;;  %v4174_v10 = vmax.f32 %v4136_v53, %v4155_v23 }
 0x3f1   : > { %v4077_v31 = vadd.f32 %v11411_v52, %v4049_v40  ;;  %9087 = vmatmul.mubr.msk.f32.vlgmr.msra.gmra.mrb[64].mxu0 %vm1637_vm4, %v4985_v46  ;;  %v5226_v58 = vld [vmem:[%s12059_s5 + $0x190] sm:$0xff]  ;;  %v4137_v18 = vld [vmem:[#allocation3 + $0x78] sm:$0xff]  ;;  %v5618_v46 = vld [vmem:[%s12059_s5 + $0x220] sm:$0xff] }
 0x3f2   : > { %8961 = vmatmul.mubr.msk.f32.vlgmr.msra.gmra.mrb[34].mxu1 %vm1637_vm4, %v4988_v12  ;;  %v4050_v56 = vadd.f32 %v4029_v0, %v12222_v11  ;;  %v4009_v33 = vadd.f32 %v3965_v44, %v11402_v27  ;;  %9319 = vmatpush3.bf16.msra.mxu0 %v9318_v15  ;;  %v9324_v27 = vpack.c.bf16 %v5303_v57, %v5302_v59  ;;  %v5464_v59 = vld [vmem:[%s12059_s5 + $0x1f8] sm:$0xff]  ;;  %v5619_v23 = vld [vmem:[%s12059_s5 + $0x228] sm:$0xff]  ;;  %v5542_v11 = vld [vmem:[%s12059_s5 + $0x210] sm:$0xff] }
 0x3f3   : > { %v4098_v25 = vmax.f32 %v4077_v31, 0.0  ;;  %9262 = vmatpush3.bf16.msra.mxu1 %v9261_v2  ;;  %v4193_v60 = vld [vmem:[#allocation3 + $0x7e] sm:$0xff]  ;;  %8967 = vmatprep.mubr.msk.f32.mxu1 %vm9541_vm2, %v12202_v7  ;;  %v9330_v2 = vpack.c.bf16 %v5461_v45, %v5460_v34  ;;  %v9273_v15 = vpack.c.bf16 %v5385_v1, %v5384_v14  ;;  %v9276_v12 = vpack.c.bf16 %v5464_v59, %v5463_v8  ;;  %v4590_v34 = vld [vmem:[#allocation4 + $0x20] sm:$0x1] }
 0x3f4   : > { %9100 = vmatprep.mubr.msk.f32.mxu0 %vm9541_vm2, %v12202_v7  ;;  %v4212_v41 = vld [vmem:[#allocation3 + $0x7f] sm:$0xff]  ;;  %v4078_v48 = vadd.f32 %v11411_v52, %v4050_v56  ;;  %v4030_v51 = vadd.f32 %v4009_v33, %v11399_v21  ;;  %9263 = vmatprep.subr.bf16.mxu1 %v12088_v28  ;;  %v9267_v21 = vpack.c.bf16 %v5227_v13, %v5226_v58  ;;  %v5543_v56 = vld [vmem:[%s12059_s5 + $0x218] sm:$0xff] }
 0x3f5   : > { %4119 = vst.msk [vmem:[#allocation3 + $0x90] sm:$0xff] %vm1637_vm4, %v4098_v25  ;;  %v5067_v55 = vld [vmem:[#allocation4 + $0x5a] sm:$0x1]  ;;  %v5143_v37 = vld [vmem:[#allocation4 + $0x5c] sm:$0x1]  ;;  %9323 = vmatprep.subr.bf16.mxu0 %v12088_v28  ;;  %v4231_v63 = vmax.f32 %v4193_v60, %v4212_v41  ;;  %v4156_v50 = vld [vmem:[#allocation3 + $0x79] sm:$0xff]  ;;  %v9279_v58 = vpack.c.bf16 %v5543_v56, %v5542_v11 }
 0x3f6   : > { %8968 = vmatmul.mubr.msk.f32.vlgmr.msra.gmra.mrb[36].mxu1 %vm1637_vm4, %v5067_v55  ;;  %9101 = vmatmul.mubr.msk.f32.vlgmr.msra.gmra.mrb[66].mxu0 %vm1637_vm4, %v5143_v37  ;;  %v4099_v35 = vmax.f32 %v4078_v48, 0.0  ;;  %v4051_v49 = vadd.f32 %v4030_v51, %v12223_v62  ;;  %v5146_v24 = vld [vmem:[#allocation4 + $0x5e] sm:$0x1]  ;;  %v4175_v42 = vmax.f32 %v4137_v18, %v4156_v50  ;;  %v4275_v48 = vld [vmem:[%s12059_s5] sm:$0xff]  ;;  %v4276_v37 = vld [vmem:[%s12059_s5 + $0x8] sm:$0xff] }
 0x3f7   : > { %9265 = vmatpush3.bf16.msra.mxu1 %v9264_v30  ;;  %8974 = vmatprep.mubr.msk.f32.mxu1 %vm9541_vm2, %v12202_v7  ;;  %v4194_v29 = vld [vmem:[#allocation3 + $0x86] sm:$0xff]  ;;  %v4250_v19 = vmax.f32 %v4174_v10, %v4231_v63  ;;  %v9336_v30 = vpack.c.bf16 %v5619_v23, %v5618_v46  ;;  %v9285_v10 = vpack.c.bf16 %v4276_v37, %v4275_v48  ;;  %v4354_v63 = vld [vmem:[%s12059_s5 + $0x20] sm:$0xff]  ;;  %v4355_v50 = vld [vmem:[%s12059_s5 + $0x28] sm:$0xff] }
 0x3f8   : > { %9266 = vmatprep.subr.bf16.mxu1 %v12088_v28  ;;  %9325 = vmatpush3.bf16.msra.mxu0 %v9324_v27  ;;  %v4213_v38 = vld [vmem:[#allocation3 + $0x87] sm:$0xff]  ;;  %4120 = vst.msk [vmem:[#allocation3 + $0x98] sm:$0xff] %vm1637_vm4, %v4099_v35  ;;  %v4079_v6 = vadd.f32 %v11411_v52, %v4051_v49  ;;  %v9288_v62 = vpack.c.bf16 %v4355_v50, %v4354_v63  ;;  %v4433_v49 = vld [vmem:[%s12059_s5 + $0x40] sm:$0xff]  ;;  %v4748_v14 = vld [vmem:[#allocation4 + $0x38] sm:$0x1] }
 0x3f9   : > { %9114 = vmatprep.mubr.msk.f32.mxu0 %vm9541_vm2, %v12202_v7  ;;  %9329 = vmatprep.subr.bf16.mxu0 %v12088_v28  ;;  %v4232_v61 = vmax.f32 %v4194_v29, %v4213_v38  ;;  %4269 = vst.msk [vmem:[#allocation4 + $0x70] sm:$0xff] %vm1637_vm4, %v4250_v19  ;;  %v5305_v52 = vld [vmem:[%s12059_s5 + $0x1b0] sm:$0xff]  ;;  %v4139_v16 = vld [vmem:[#allocation3 + $0x88] sm:$0xff]  ;;  %v4591_v18 = vld [vmem:[%s12059_s5 + $0x80] sm:$0xff] }
 0x3fa   : > { %8975 = vmatmul.mubr.msk.f32.vlgmr.msra.gmra.mrb[38].mxu1 %vm1637_vm4, %v5146_v24  ;;  %v4100_v5 = vmax.f32 %v4079_v6, 0.0  ;;  %v9270_v36 = vpack.c.bf16 %v5306_v39, %v5305_v52  ;;  %v5621_v53 = vld [vmem:[%s12059_s5 + $0x230] sm:$0xff]  ;;  %v5622_v27 = vld [vmem:[%s12059_s5 + $0x238] sm:$0xff]  ;;  %v4592_v38 = vld [vmem:[%s12059_s5 + $0x88] sm:$0xff] }
 0x3fb   : > { %9268 = vmatpush3.bf16.msra.mxu1 %v9267_v21  ;;  %8981 = vmatprep.mubr.msk.f32.mxu1 %vm9541_vm2, %v12202_v7  ;;  %v4251_v26 = vmax.f32 %v4175_v42, %v4232_v61  ;;  %v9282_v41 = vpack.c.bf16 %v5622_v27, %v5621_v53  ;;  %v4434_v21 = vld [vmem:[%s12059_s5 + $0x48] sm:$0xff]  ;;  %v4274_v29 = vld [vmem:[#allocation4] sm:$0x1]  ;;  %v4353_v6 = vld [vmem:[#allocation4 + $0x4] sm:$0x1]  ;;  %v9297_v24 = vpack.c.bf16 %v4592_v38, %v4591_v18 }
 0x3fc   : > { %9269 = vmatprep.subr.bf16.mxu1 %v12088_v28  ;;  %4121 = vst.msk [vmem:[#allocation3 + $0xa0] sm:$0xff] %vm1637_vm4, %v4100_v5  ;;  %v4158_v3 = vld [vmem:[#allocation3 + $0x89] sm:$0xff]  ;;  %v9291_v19 = vpack.c.bf16 %v4434_v21, %v4433_v49  ;;  %v4750_v61 = vld [vmem:[%s12059_s5 + $0xc8] sm:$0xff]  ;;  %v7036_v11 = vld [vmem:[%s12061_s7 + $0x30] sm:$0xff] }
 0x3fd   : > { %4270 = vst.msk [vmem:[#allocation4 + $0x78] sm:$0xff] %vm1637_vm4, %v4251_v26  ;;  %v4177_v32 = vmax.f32 %v4139_v16, %v4158_v3  ;;  %v4140_v57 = vld [vmem:[#allocation3 + $0x90] sm:$0xff]  ;;  %v4908_v26 = vld [vmem:[%s12059_s5 + $0x108] sm:$0xff]  ;;  %v7037_v56 = vld [vmem:[%s12061_s7 + $0x38] sm:$0xff] }
 0x3fe   : > { %v4749_v42 = vld [vmem:[%s12059_s5 + $0xc0] sm:$0xff]  ;;  %v7035_v23 = vld [vmem:[%s12061_s7 + $0x28] sm:$0xff]  ;;  %v7044_v37 = vld [vmem:[%s12061_s7 + $0x70] sm:$0xff] }
 0x3ff   : > { %v4196_v54 = vld [vmem:[#allocation3 + $0x96] sm:$0xff]  ;;  %v4432_v5 = vld [vmem:[#allocation4 + $0x8] sm:$0x1]  ;;  %v9303_v52 = vpack.c.bf16 %v4750_v61, %v4749_v42  ;;  %v7124_v49 = vld [vmem:[%s12063_s9 + $0x18] sm:$0xff] }
 0x400   : > { %v4215_v43 = vld [vmem:[#allocation3 + $0x97] sm:$0xff]  ;;  %v7127_v61 = vld [vmem:[%s12063_s9 + $0x30] sm:$0xff] }
 0x401   : > { %v4234_v17 = vmax.f32 %v4196_v54, %v4215_v43  ;;  %v5225_v9 = vld [vmem:[#allocation4 + $0x72] sm:$0x1]  ;;  %v5301_v40 = vld [vmem:[#allocation4 + $0x74] sm:$0x1]  ;;  %v4159_v20 = vld [vmem:[#allocation3 + $0x91] sm:$0xff] }
 0x402   : > { %8982 = vmatmul.mubr.msk.f32.vlgmr.msra.gmra.mrb[40].mxu1 %vm1637_vm4, %v5225_v9  ;;  %9115 = vmatmul.mubr.msk.f32.vlgmr.msra.gmra.mrb[68].mxu0 %vm1637_vm4, %v5301_v40  ;;  %v4178_v4 = vmax.f32 %v4140_v57, %v4159_v20  ;;  %v5304_v22 = vld [vmem:[#allocation4 + $0x76] sm:$0x1]  ;;  %v4907_v39 = vld [vmem:[%s12059_s5 + $0x100] sm:$0xff]  ;;  %v4906_v43 = vld [vmem:[#allocation4 + $0x40] sm:$0x1] }
 0x403   : > { %9271 = vmatpush3.bf16.msra.mxu1 %v9270_v36  ;;  %8988 = vmatprep.mubr.msk.f32.mxu1 %vm9541_vm2, %v12202_v7  ;;  %v4253_v47 = vmax.f32 %v4177_v32, %v4234_v17  ;;  %v4197_v31 = vld [vmem:[#allocation3 + $0x9e] sm:$0xff]  ;;  %v9309_v45 = vpack.c.bf16 %v4908_v26, %v4907_v39  ;;  %v5065_v3 = vld [vmem:[%s12059_s5 + $0x140] sm:$0xff]  ;;  %v5222_v8 = vld [vmem:[#allocation4 + $0x70] sm:$0x1] }
 0x404   : > { %v4216_v0 = vld [vmem:[#allocation3 + $0x9f] sm:$0xff]  ;;  %9272 = vmatprep.subr.bf16.mxu1 %v12088_v28  ;;  %9331 = vmatpush3.bf16.msra.mxu0 %v9330_v2  ;;  %v5223_v16 = vld [vmem:[%s12059_s5 + $0x180] sm:$0xff] }
 0x405   : > { %v4235_v44 = vmax.f32 %v4197_v31, %v4216_v0  ;;  %9128 = vmatprep.mubr.msk.f32.mxu0 %vm9541_vm2, %v12202_v7  ;;  %4272 = vst.msk [vmem:[#allocation4 + $0x88] sm:$0xff] %vm1637_vm4, %v4253_v47  ;;  %9335 = vmatprep.subr.bf16.mxu0 %v12088_v28  ;;  %v5383_v33 = vld [vmem:[#allocation4 + $0x7a] sm:$0x1]  ;;  %v5066_v36 = vld [vmem:[%s12059_s5 + $0x148] sm:$0xff]  ;;  %v5381_v32 = vld [vmem:[%s12059_s5 + $0x1c0] sm:$0xff] }
 0x406   : > { %8989 = vmatmul.mubr.msk.f32.vlgmr.msra.gmra.mrb[42].mxu1 %vm1637_vm4, %v5304_v22  ;;  %v9315_v1 = vpack.c.bf16 %v5066_v36, %v5065_v3  ;;  %v5224_v54 = vld [vmem:[%s12059_s5 + $0x188] sm:$0xff]  ;;  %v5064_v9 = vld [vmem:[#allocation4 + $0x58] sm:$0x1]  ;;  %v5539_v20 = vld [vmem:[%s12059_s5 + $0x200] sm:$0xff] }
 0x407   : > { %9274 = vmatpush3.bf16.msra.mxu1 %v9273_v15  ;;  %8995 = vmatprep.mubr.msk.f32.mxu1 %vm9541_vm2, %v12202_v7  ;;  %v4254_v25 = vmax.f32 %v4178_v4, %v4235_v44  ;;  %v9321_v2 = vpack.c.bf16 %v5224_v54, %v5223_v16  ;;  %v5382_v17 = vld [vmem:[%s12059_s5 + $0x1c8] sm:$0xff]  ;;  %v5380_v47 = vld [vmem:[#allocation4 + $0x78] sm:$0x1]  ;;  %v7030_v31 = vld [vmem:[%s12061_s7] sm:$0xff] }
 0x408   : > { %9275 = vmatprep.subr.bf16.mxu1 %v12088_v28  ;;  %v9327_v40 = vpack.c.bf16 %v5382_v17, %v5381_v32  ;;  %v5540_v15 = vld [vmem:[%s12059_s5 + $0x208] sm:$0xff]  ;;  %v7032_v44 = vld [vmem:[%s12061_s7 + $0x10] sm:$0xff]  ;;  %v7033_v22 = vld [vmem:[%s12061_s7 + $0x18] sm:$0xff] }
 0x409   : > { %4273 = vst.msk [vmem:[#allocation4 + $0x90] sm:$0xff] %vm1637_vm4, %v4254_v25  ;;  %v9333_v59 = vpack.c.bf16 %v5540_v15, %v5539_v20  ;;  %v7031_v0 = vld [vmem:[%s12061_s7 + $0x8] sm:$0xff]  ;;  %v7034_v46 = vld [vmem:[%s12061_s7 + $0x20] sm:$0xff] }
 0x40a   : > { %8996 = vmatmul.mubr.msk.f32.vlgmr.msra.gmra.mrb[44].mxu1 %vm1637_vm4, %v5383_v33  ;;  %v9339_v4 = vpack.c.bf16 %v7031_v0, %v7030_v31  ;;  %v9345_v25 = vpack.c.bf16 %v7035_v23, %v7034_v46  ;;  %v9348_v33 = vpack.c.bf16 %v7037_v56, %v7036_v11  ;;  %v7043_v48 = vld [vmem:[%s12061_s7 + $0x68] sm:$0xff]  ;;  %v7121_v63 = vld [vmem:[%s12063_s9] sm:$0xff] }
 0x40b   : > { %9277 = vmatpush3.bf16.msra.mxu1 %v9276_v12  ;;  %9002 = vmatprep.mubr.msk.f32.mxu1 %vm9541_vm2, %v12202_v7  ;;  %v9342_v12 = vpack.c.bf16 %v7033_v22, %v7032_v44  ;;  %v7122_v50 = vld [vmem:[%s12063_s9 + $0x8] sm:$0xff]  ;;  %v7125_v18 = vld [vmem:[%s12063_s9 + $0x20] sm:$0xff] }
 0x40c   : > { %v5462_v60 = vld [vmem:[#allocation4 + $0x8e] sm:$0x1]  ;;  %9278 = vmatprep.subr.bf16.mxu1 %v12088_v28  ;;  %v5459_v13 = vld [vmem:[#allocation4 + $0x8c] sm:$0x1]  ;;  %v7126_v38 = vld [vmem:[%s12063_s9 + $0x28] sm:$0xff] }
 0x40d   : > { %9129 = vmatmul.mubr.msk.f32.vlgmr.msra.gmra.mrb[70].mxu0 %vm1637_vm4, %v5459_v13  ;;  %v7041_v13 = vld [vmem:[%s12061_s7 + $0x58] sm:$0xff] }
 0x40e   : > { %9003 = vmatmul.mubr.msk.f32.vlgmr.msra.gmra.mrb[46].mxu1 %vm1637_vm4, %v5462_v60  ;;  %9337 = vmatpush3.bf16.msra.mxu0 %v9336_v30  ;;  %v7038_v30 = vld [vmem:[%s12061_s7 + $0x40] sm:$0xff]  ;;  %v7040_v60 = vld [vmem:[%s12061_s7 + $0x50] sm:$0xff] }
 0x40f   : > { %9280 = vmatpush3.bf16.msra.mxu1 %v9279_v58  ;;  %9009 = vmatprep.mubr.msk.f32.mxu1 %vm9541_vm2, %v12202_v7  ;;  %v7039_v58 = vld [vmem:[%s12061_s7 + $0x48] sm:$0xff]  ;;  %v9354_v27 = vpack.c.bf16 %v7041_v13, %v7040_v60 }
 0x410   : > { %9142 = vmatprep.mubr.msk.f32.mxu0 %vm9541_vm2, %v12202_v7  ;;  %v5541_v51 = vld [vmem:[#allocation4 + $0x92] sm:$0x1]  ;;  %9281 = vmatprep.subr.bf16.mxu1 %v12088_v28  ;;  %v5617_v55 = vld [vmem:[#allocation4 + $0x94] sm:$0x1]  ;;  %v5620_v35 = vld [vmem:[#allocation4 + $0x96] sm:$0x1]  ;;  %v9351_v53 = vpack.c.bf16 %v7039_v58, %v7038_v30 }
 0x411   : > { %9143 = vmatmul.mubr.msk.f32.vlgmr.msra.gmra.mrb[72].mxu0 %vm1637_vm4, %v5617_v55  ;;  %9359 = vmatprep.subr.bf16.mxu0 %v12088_v28  ;;  %v5538_v57 = vld [vmem:[#allocation4 + $0x90] sm:$0x1] }
 0x412   : > { %9010 = vmatmul.mubr.msk.f32.vlgmr.msra.gmra.mrb[48].mxu1 %vm1637_vm4, %v5541_v51  ;;  %9200 = vmatprep.mubr.msk.f32.mxu0 %vm9541_vm2, %v12202_v7 }
 0x413   : > { %9283 = vmatpush3.bf16.msra.mxu1 %v9282_v41  ;;  %9016 = vmatprep.mubr.msk.f32.mxu1 %vm9541_vm2, %v12202_v7  ;;  %v7042_v41 = vld [vmem:[%s12061_s7 + $0x60] sm:$0xff] }
 0x414   : > { %9284 = vmatprep.subr.bf16.mxu1 %v12088_v28  ;;  %v9357_v51 = vpack.c.bf16 %v7043_v48, %v7042_v41 }
 0x416   : > { %9017 = vmatmul.mubr.msk.f32.vlgmr.msra.gmra.mrb[50].mxu1 %vm1637_vm4, %v5620_v35  ;;  %v7123_v35 = vld [vmem:[%s12063_s9 + $0x10] sm:$0xff] }
 0x417   : > { %9286 = vmatpush3.bf16.msra.mxu1 %v9285_v10  ;;  %9023 = vmatprep.mubr.msk.f32.mxu1 %vm9541_vm2, %v12202_v7 }
 0x418   : > { %9287 = vmatprep.subr.bf16.mxu1 %v12088_v28 }
 0x41a   : > { %9024 = vmatmul.mubr.msk.f32.vlgmr.msra.gmra.mrb[52].mxu1 %vm1637_vm4, %v4274_v29  ;;  %v9363_v29 = vpack.c.bf16 %v7124_v49, %v7123_v35 }
 0x41b   : > { %9289 = vmatpush3.bf16.msra.mxu1 %v9288_v62  ;;  %9030 = vmatprep.mubr.msk.f32.mxu1 %vm9541_vm2, %v12202_v7  ;;  %v9360_v62 = vpack.c.bf16 %v7122_v50, %v7121_v63 }
 0x41c   : > { %9290 = vmatprep.subr.bf16.mxu1 %v12088_v28 }
 0x41d   : > { %9361 = vmatpush3.bf16.msra.mxu0 %v9360_v62 }
 0x41e   : > { %9031 = vmatmul.mubr.msk.f32.vlgmr.msra.gmra.mrb[54].mxu1 %vm1637_vm4, %v4353_v6  ;;  %9362 = vmatprep.subr.bf16.mxu0 %v12088_v28 }
 0x41f   : > { %9292 = vmatpush3.bf16.msra.mxu1 %v9291_v19  ;;  %9037 = vmatprep.mubr.msk.f32.mxu1 %vm9541_vm2, %v12202_v7 }
 0x420   : > { %9296 = vmatprep.subr.bf16.mxu1 %v12088_v28 }
 0x421   : > { %9364 = vmatpush3.bf16.msra.mxu0 %v9363_v29 }
 0x422   : > { %9038 = vmatmul.mubr.msk.f32.vlgmr.msra.gmra.mrb[56].mxu1 %vm1637_vm4, %v4432_v5  ;;  %9365 = vmatprep.subr.bf16.mxu0 %v12088_v28  ;;  %v7128_v5 = vld [vmem:[%s12063_s9 + $0x38] sm:$0xff] }
 0x423   : > { %9298 = vmatpush3.bf16.msra.mxu1 %v9297_v24  ;;  %9051 = vmatprep.mubr.msk.f32.mxu1 %vm9541_vm2, %v12202_v7  ;;  %v9366_v24 = vpack.c.bf16 %v7126_v38, %v7125_v18  ;;  %v9369_v26 = vpack.c.bf16 %v7128_v5, %v7127_v61 }
 0x424   : > { %9302 = vmatprep.subr.bf16.mxu1 %v12088_v28 }
 0x425   : > { %9367 = vmatpush3.bf16.msra.mxu0 %v9366_v24 }
 0x426   : > { %9052 = vmatmul.mubr.msk.f32.vlgmr.msra.gmra.mrb[58].mxu1 %vm1637_vm4, %v4590_v34  ;;  %9368 = vmatprep.subr.bf16.mxu0 %v12088_v28 }
 0x427   : > { %9304 = vmatpush3.bf16.msra.mxu1 %v9303_v52  ;;  %9065 = vmatprep.mubr.msk.f32.mxu1 %vm9541_vm2, %v12202_v7 }
 0x428   : > { %9308 = vmatprep.subr.bf16.mxu1 %v12088_v28 }
 0x429   : > { %9370 = vmatpush3.bf16.msra.mxu0 %v9369_v26 }
 0x42a   : > { %9066 = vmatmul.mubr.msk.f32.vlgmr.msra.gmra.mrb[60].mxu1 %vm1637_vm4, %v4748_v14  ;;  %9371 = vmatprep.subr.bf16.mxu0 %v12088_v28 }
 0x42b   : > { %9310 = vmatpush3.bf16.msra.mxu1 %v9309_v45  ;;  %9079 = vmatprep.mubr.msk.f32.mxu1 %vm9541_vm2, %v12202_v7 }
 0x42c   : > { %9314 = vmatprep.subr.bf16.mxu1 %v12088_v28 }
 0x42e   : > { %9080 = vmatmul.mubr.msk.f32.vlgmr.msra.gmra.mrb[62].mxu1 %vm1637_vm4, %v4906_v43 }
 0x42f   : > { %9316 = vmatpush3.bf16.msra.mxu1 %v9315_v1  ;;  %9093 = vmatprep.mubr.msk.f32.mxu1 %vm9541_vm2, %v12202_v7 }
 0x430   : > { %9320 = vmatprep.subr.bf16.mxu1 %v12088_v28 }
 0x432   : > { %9094 = vmatmul.mubr.msk.f32.vlgmr.msra.gmra.mrb[64].mxu1 %vm1637_vm4, %v5064_v9 }
 0x433   : > { %9322 = vmatpush3.bf16.msra.mxu1 %v9321_v2  ;;  %9107 = vmatprep.mubr.msk.f32.mxu1 %vm9541_vm2, %v12202_v7 }
 0x434   : > { %9326 = vmatprep.subr.bf16.mxu1 %v12088_v28 }
 0x436   : > { %9108 = vmatmul.mubr.msk.f32.vlgmr.msra.gmra.mrb[66].mxu1 %vm1637_vm4, %v5222_v8 }
 0x437   : > { %9328 = vmatpush3.bf16.msra.mxu1 %v9327_v40  ;;  %9121 = vmatprep.mubr.msk.f32.mxu1 %vm9541_vm2, %v12202_v7 }
 0x438   : > { %9332 = vmatprep.subr.bf16.mxu1 %v12088_v28 }
 0x43a   : > { %9122 = vmatmul.mubr.msk.f32.vlgmr.msra.gmra.mrb[68].mxu1 %vm1637_vm4, %v5380_v47 }
 0x43b   : > { %9334 = vmatpush3.bf16.msra.mxu1 %v9333_v59  ;;  %9135 = vmatprep.mubr.msk.f32.mxu1 %vm9541_vm2, %v12202_v7 }
 0x43c   : > { %9338 = vmatprep.subr.bf16.mxu1 %v12088_v28 }
 0x43e   : > { %9136 = vmatmul.mubr.msk.f32.vlgmr.msra.gmra.mrb[70].mxu1 %vm1637_vm4, %v5538_v57 }
 0x43f   : > { %9175 = vmatprep.mubr.msk.f32.mxu1 %vm9541_vm2, %v12202_v7  ;;  %9340 = vmatpush3.bf16.msra.mxu1 %v9339_v4 }
 0x440   : > { %9341 = vmatprep.subr.bf16.mxu1 %v12088_v28 }
 0x443   : > { %9343 = vmatpush3.bf16.msra.mxu1 %v9342_v12 }
 0x444   : > { %9344 = vmatprep.subr.bf16.mxu1 %v12088_v28 }
 0x447   : > { %9346 = vmatpush3.bf16.msra.mxu1 %v9345_v25 }
 0x448   : > { %9347 = vmatprep.subr.bf16.mxu1 %v12088_v28 }
 0x44b   : > { %9349 = vmatpush3.bf16.msra.mxu1 %v9348_v33 }
 0x44c   : > { %9350 = vmatprep.subr.bf16.mxu1 %v12088_v28 }
 0x44f   : > { %9352 = vmatpush3.bf16.msra.mxu1 %v9351_v53 }
 0x450   : > { %9353 = vmatprep.subr.bf16.mxu1 %v12088_v28 }
 0x453   : > { %9355 = vmatpush3.bf16.msra.mxu1 %v9354_v27 }
 0x454   : > { %9356 = vmatprep.subr.bf16.mxu1 %v12088_v28 }
 0x457   : > { %9358 = vmatpush3.bf16.msra.mxu1 %v9357_v51 }
 0x458   : > { %9173 = vmatprep.subr.mxu1 %v12202_v7 }
 0x45b   : > { %9174 = vmatpush3.msra.mxu1 %v7044_v37 }
 0x49d   : > { %v11941_v55 = vpop.f32.mrb[16].mxu1 }
 0x49e   : > { %v8899_v10 = vpop.f32.mrb[17].mxu1 }
 0x4a1   : > { %v11959_v21 = vpop.f32.mrb[18].mxu1 }
 0x4a2   : > { %v8906_v19 = vpop.f32.mrb[19].mxu1 }
 0x4a5   : > { %v11968_v6 = vpop.f32.mrb[20].mxu1 }
 0x4a6   : > { %v8913_v42 = vpop.f32.mrb[21].mxu1 }
 0x4a8   : > { %v5984_v39 = vpop.f32.mrb[58].mxu0 }
 0x4a9   : > { %v4586_v52 = vpop.f32.mrb[22].mxu1  ;;  %v9046_v3 = vpop.f32.mrb[59].mxu0 }
 0x4aa   : > { %v11977_v34 = vadd.f32 %v5984_v39, %v4586_v52  ;;  %v8920_v45 = vpop.f32.mrb[23].mxu1 }
 0x4ad   : > { %v11980_v36 = vpop.f32.mrb[24].mxu1  ;;  %v6130_v14 = vpop.f32.mrb[60].mxu0 }
 0x4ae   : > { %v8927_v1 = vpop.f32.mrb[25].mxu1  ;;  %v9060_v16 = vpop.f32.mrb[61].mxu0 }
 0x4b1   : > { %v4744_v54 = vpop.f32.mrb[26].mxu1 }
 0x4b2   : > { %v6131_v43 = vadd.f32 %v6130_v14, %v4744_v54  ;;  %v8934_v2 = vpop.f32.mrb[27].mxu1 }
 0x4b9   : > { %v4823_v32 = vpop.f32.mrb[28].mxu1  ;;  %v6276_v17 = vpop.f32.mrb[62].mxu0 }
 0x4ba   : > { %v8941_v9 = vpop.f32.mrb[29].mxu1  ;;  %v9074_v40 = vpop.f32.mrb[63].mxu0 }
 0x4bd   : > { %v4902_v20 = vpop.f32.mrb[30].mxu1 }
 0x4be   : > { %v6277_v15 = vadd.f32 %v6276_v17, %v4902_v20  ;;  %v8948_v8 = vpop.f32.mrb[31].mxu1 }
 0x4c1   : > { %v4981_v59 = vpop.f32.mrb[32].mxu1 }
 0x4c2   : > { %v8955_v47 = vpop.f32.mrb[33].mxu1 }
 0x4c4   : > { %v6422_v31 = vpop.f32.mrb[64].mxu0 }
 0x4c5   : > { %v5060_v57 = vpop.f32.mrb[34].mxu1  ;;  %v9088_v44 = vpop.f32.mrb[65].mxu0 }
 0x4c6   : > { %v6423_v0 = vadd.f32 %v6422_v31, %v5060_v57  ;;  %v8962_v4 = vpop.f32.mrb[35].mxu1 }
 0x4c9   : > { %v5139_v22 = vpop.f32.mrb[36].mxu1  ;;  %v6568_v12 = vpop.f32.mrb[66].mxu0 }
 0x4ca   : > { %v8969_v28 = vpop.f32.mrb[37].mxu1  ;;  %v9102_v46 = vpop.f32.mrb[67].mxu0 }
 0x4cd   : > { %v5218_v23 = vpop.f32.mrb[38].mxu1 }
 0x4ce   : > { %v6569_v25 = vadd.f32 %v6568_v12, %v5218_v23  ;;  %v8976_v11 = vpop.f32.mrb[39].mxu1 }
 0x4d5   : > { %v5297_v56 = vpop.f32.mrb[40].mxu1  ;;  %v6714_v33 = vpop.f32.mrb[68].mxu0 }
 0x4d6   : > { %v8983_v30 = vpop.f32.mrb[41].mxu1  ;;  %v9116_v58 = vpop.f32.mrb[69].mxu0 }
 0x4d9   : > { %v5376_v53 = vpop.f32.mrb[42].mxu1 }
 0x4da   : > { %v6715_v60 = vadd.f32 %v6714_v33, %v5376_v53  ;;  %v8990_v13 = vpop.f32.mrb[43].mxu1 }
 0x4dd   : > { %v5455_v27 = vpop.f32.mrb[44].mxu1 }
 0x4de   : > { %v8997_v41 = vpop.f32.mrb[45].mxu1 }
 0x4e0   : > { %v6860_v48 = vpop.f32.mrb[70].mxu0 }
 0x4e1   : > { %v5534_v51 = vpop.f32.mrb[46].mxu1  ;;  %v9130_v37 = vpop.f32.mrb[71].mxu0 }
 0x4e2   : > { %v6861_v10 = vadd.f32 %v6860_v48, %v5534_v51  ;;  %v9004_v63 = vpop.f32.mrb[47].mxu1  ;;  %v7131_v37 = vld [vmem:[%s12063_s9 + $0x50] sm:$0xf] }
 0x4e4   : > { %v7006_v50 = vpop.f32.mrb[72].mxu0 }
 0x4e5   : > { %v5613_v35 = vpop.f32.mrb[48].mxu1  ;;  %v9144_v62 = vpop.f32.mrb[73].mxu0 }
 0x4e6   : > { %v9011_v49 = vpop.f32.mrb[49].mxu1 }
 0x4e9   : > { %v5692_v29 = vpop.f32.mrb[50].mxu1 }
 0x4ea   : > { %v7007_v19 = vadd.f32 %v7006_v50, %v5692_v29  ;;  %v9018_v18 = vpop.f32.mrb[51].mxu1 }
 0x4ed   : > { %v5765_v38 = vpop.f32.mrb[52].mxu1 }
 0x4ee   : > { %v5766_v24 = vadd.f32 %v5765_v38, %v11941_v55  ;;  %v9025_v42 = vpop.f32.mrb[53].mxu1 }
 0x4f1   : > { %v5838_v61 = vpop.f32.mrb[54].mxu1 }
 0x4f2   : > { %v5839_v5 = vadd.f32 %v5838_v61, %v11959_v21  ;;  %v9032_v52 = vpop.f32.mrb[55].mxu1 }
 0x4f4   : > { %v7010_v39 = vadd.f32 %v5839_v5, %v5766_v24 }
 0x4f5   : > { %v5911_v26 = vpop.f32.mrb[56].mxu1 }
 0x4f6   : > { %v5912_v45 = vadd.f32 %v5911_v26, %v11968_v6  ;;  %v9039_v3 = vpop.f32.mrb[57].mxu1 }
 0x4f8   : > { %v7011_v14 = vadd.f32 %v11977_v34, %v5912_v45 }
 0x4f9   : > { %v6057_v1 = vpop.f32.mrb[58].mxu1 }
 0x4fa   : > { %v7019_v16 = vadd.f32 %v7011_v14, %v7010_v39  ;;  %v6058_v54 = vadd.f32 %v6057_v1, %v11980_v36  ;;  %v9053_v2 = vpop.f32.mrb[59].mxu1 }
 0x4fc   : > { %v7012_v17 = vadd.f32 %v6131_v43, %v6058_v54 }
 0x4fd   : > { %v6203_v9 = vpop.f32.mrb[60].mxu1 }
 0x4fe   : > { %v6204_v55 = vadd.f32 %v6203_v9, %v4823_v32  ;;  %v9067_v40 = vpop.f32.mrb[61].mxu1 }
 0x500   : > { %v7013_v20 = vadd.f32 %v6277_v15, %v6204_v55 }
 0x501   : > { %v6349_v8 = vpop.f32.mrb[62].mxu1 }
 0x502   : > { %v7020_v21 = vadd.f32 %v7013_v20, %v7012_v17  ;;  %v6350_v47 = vadd.f32 %v6349_v8, %v4981_v59  ;;  %v9081_v57 = vpop.f32.mrb[63].mxu1 }
 0x504   : > { %v7023_v31 = vadd.f32 %v7020_v21, %v7019_v16  ;;  %v7014_v4 = vadd.f32 %v6423_v0, %v6350_v47 }
 0x505   : > { %v6495_v6 = vpop.f32.mrb[64].mxu1 }
 0x506   : > { %v6496_v44 = vadd.f32 %v6495_v6, %v5139_v22  ;;  %v9095_v12 = vpop.f32.mrb[65].mxu1  ;;  %v7027_v22 = vld [vmem:[%s12060_s6] sm:$0x1] }
 0x508   : > { %v7015_v34 = vadd.f32 %v6569_v25, %v6496_v44 }
 0x509   : > { %v6641_v28 = vpop.f32.mrb[66].mxu1 }
 0x50a   : > { %v7021_v46 = vadd.f32 %v7015_v34, %v7014_v4  ;;  %v6642_v23 = vadd.f32 %v6641_v28, %v5297_v56  ;;  %v9109_v36 = vpop.f32.mrb[67].mxu1 }
 0x50c   : > { %v7016_v11 = vadd.f32 %v6715_v60, %v6642_v23  ;;  %v7129_v60 = vld [vmem:[%s12063_s9 + $0x40] sm:$0xff] }
 0x50d   : > { %v6787_v43 = vpop.f32.mrb[68].mxu1 }
 0x50e   : > { %v6788_v33 = vadd.f32 %v6787_v43, %v5455_v27  ;;  %v9123_v32 = vpop.f32.mrb[69].mxu1  ;;  %v7130_v27 = vld [vmem:[%s12063_s9 + $0x48] sm:$0xff] }
 0x50f   : > { %v9372_v51 = vpack.c.bf16 %v7130_v27, %v7129_v60 }
 0x510   : > { %v7017_v30 = vadd.f32 %v6861_v10, %v6788_v33  ;;  %v7045_v10 = vld [vmem:[%s12062_s8] sm:$0x1] }
 0x511   : > { %v6933_v15 = vpop.f32.mrb[70].mxu1  ;;  %9373 = vmatpush3.bf16.msra.mxu0 %v9372_v51 }
 0x512   : > { %v7022_v58 = vadd.f32 %v7017_v30, %v7016_v11  ;;  %v6934_v53 = vadd.f32 %v6933_v15, %v5613_v35  ;;  %v9137_v59 = vpop.f32.mrb[71].mxu1  ;;  %9198 = vmatprep.subr.mxu0 %v12202_v7  ;;  %v7132_v7 = vld [vmem:[%s12064_s10] sm:$0x1] }
 0x514   : > { %v7024_v13 = vadd.f32 %v7022_v58, %v7021_v46  ;;  %v7018_v41 = vadd.f32 %v7007_v19, %v6934_v53 }
 0x515   : > { %9199 = vmatpush3.msk.msra.mxu0 %vm7137_vm6, %v7131_v37 }
 0x516   : > { %v7025_v0 = vadd.f32 %v7024_v13, %v7023_v31 }
 0x518   : > { %v7026_v25 = vadd.f32 %v7025_v0, %v7018_v41 }
 0x51a   : > { %v7028_v48 = vadd.f32 %v7027_v22, %v7026_v25 }
 0x51c   : > { %v7029_v56 = vmax.f32 %v7028_v48, 0.0 }
 0x51e   : > { %9176 = vmatmul.mubr.msk.f32.vlgmr.msra.gmra.mrb[72].mxu1 %vm7046_vm5, %v7029_v56 }
 0x5f1   : > { %v7116_v63 = vpop.f32.mrb[72].mxu1 }
 0x5f2   : > { %v7117_v50 = vadd.f32 %v7116_v63, %v7045_v10  ;;  %v9177_v35 = vpop.f32.mrb[73].mxu1 }
 0x5f4   : > { %v7120_v62 = vmax.f32 %v7117_v50, 0.0 }
 0x5f6   : > { %9201 = vmatmul.mubr.msk.f32.vlgmr.msra.gmra.mrb[74].mxu0 %vm7133_vm7, %v7120_v62 }
 0x6c9   : > { %v7207_v49 = vpop.f32.mrb[74].mxu0 }
 0x6ca   : > { %v7208_v29 = vadd.f32 %v7207_v49, %v7132_v7  ;;  %v9202_v19 = vpop.f32.mrb[75].mxu0 }
 0x6cc   : > { %7211 = vst [vmem:[%s378_s25] sm:$0x1] %v7208_v29 }
 0x6cd   : > { %9488 = shalt.err (!%p9485_p3)
}
 0x6ce   : > { %s9489_s15 = scalar_lea.hbm %s12012_s13, 16  ;;  %s9493_s30 = scalar_lea.hbm %s12065_s11, 32 }
 0x6cf   : > { %p9490_p4 = scmp.ne.s32.totalorder %s12012_s13, %s9489_s15  ;;  %p9494_p9 = scmp.lt.u32.totalorder %s12012_s13, %s12065_s11 }
 0x6d0   : > { %p9495_p10 = scmp.lt.u32.totalorder %s9493_s30, %s9489_s15  ;;  %p9497_p12 = scmp.lt.u32.totalorder %s9489_s15, %s12012_s13 }
 0x6d1   : > { %p9491_p7 = pnand %p9490_p4, %p9642_p5 }
 0x6d2   : > { %p9496_p11 = por %p9495_p10, %p9494_p9 }
 0x6d3   : > { %p9492_p8 = pneg %p9491_p7 }
 0x6d4   : > { %p9498_p13 = por %p9497_p12, %p9496_p11 }
 0x6d6   : > { %p9499_p0 = pnand %p9498_p13, %p9492_p8 }
 0x6d8   : > { %9502 = shalt.err (!%p9499_p0)
}
 0x6d9   : > { %9375 = dma.vmem_to_hbm [thread:$0]  (%p9642_p5), %s12014_s29, 16, %s12012_s13, %s7213_s14  }
 0x6da PF: > { %p9381_p1 = scmp.ge.s32.totalorder %s9537_s20, 2  ;;  %s7237_s0 = sand.u32 1, %s9525_s17  }
 0x6db   : > { %s7238_s16 = scalar_lea.sflag [#allocation6], %s7237_s0 }
 0x6dc   : > { %p9378_p2 = pnand %p9381_p1, %p9646_p6 }
 0x6de   : > { %9520 = dma.done.wait (!%p9378_p2), %s7238_s16, 16  }
 0x6df   : > { %9522 = vsyncadd (!%p9378_p2), %s7238_s16, 4294967280  ;;  %p21_p3 = scmp.ge.s32.totalorder %s9629_s23, 4   ;;  %s12224_s17 = smov %s9529_s18 }
 0x6e0   : > { %s12225_s18 = smov %s9533_s19  ;;  %s12226_s19 = smov %s9640_s26 }
 0x6e1   : > { %s12227_s20 = smov %s9629_s23  ;;  %23 = sbr.rel (!%p21_p3) target bundleno = 5 (0x5), region = 99 }
 0x6e8   :  { %7242 = vsyncpa [#allocation6], 1 }
 0x6e9   :  { %7244 = vsyncpa [#allocation6 + $0x1], 1 }

</bundles_post_ra>
